<compile_context>
chip_gen: v6e
topology: v6e:2x2x1
jax: 0.10.0
libtpu: 0.0.40
codegen_flags: <defaults>
</compile_context>

<pallas_src>
import numpy as np
import jax
import jax.numpy as jnp
from jax import lax
from jax.experimental import pallas as pl
from jax.experimental.pallas import tpu as pltpu

# ---- shrunk-but-structurally-identical config (see model.Config) -----------
BATCH = 2
NUM_CLASSES = 2
FILTER_SIZES = (1, 3, 5)          # config.filter_sizes (shrunk)
PUB_FILTER_SIZES = (1, 3, 5)      # config.pub_filter_sizes (shrunk)
NUM_FILTERS = 32                  # config.num_filters
HIDDEN_SIZE = 64                  # config.hidden_size (shrunk)
PUB_HIDDEN_SIZE = 96              # config.pub_hidden_size (shrunk)
LSTM_OUTDIM = 16                  # config.lstm_outdim
NUM_LAYERS = 2                    # config.num_layers
CAP_IN_DIM = 2 * LSTM_OUTDIM      # config.cap_in_dim = 32 (BiLSTM output dim)
CAP_OUT_DIM = 16                  # config.cap_out_dim
ROUTING_ITERS = 5
ESM_LEN = 18                      # includes [CLS]/[EOS]; forward strips them
PUB_LEN = 18

assert len(FILTER_SIZES) == len(PUB_FILTER_SIZES)
assert ESM_LEN == PUB_LEN
assert CAP_IN_DIM == 2 * LSTM_OUTDIM

T_SEQ = len(FILTER_SIZES)                      # LSTM sequence length (3)
N_CAPS = 2 * T_SEQ                             # in-capsules (6)
BEFF = 2 * BATCH                               # both branches batched through shared LSTM (4)
KMAX = max(max(FILTER_SIZES), max(PUB_FILTER_SIZES))   # 5
T_POS = ESM_LEN - 2                            # conv positions per example (16)
CONV_ROWS = 2 * BATCH * T_POS                  # stacked conv rows (64)
HPAD = PUB_HIDDEN_SIZE                         # common conv input lane width (96)
F_BR = len(FILTER_SIZES) * NUM_FILTERS         # conv features per branch (96)
F_TOT = 2 * F_BR                               # total conv features (192)
GATES = 8 * LSTM_OUTDIM                        # fused gate lanes: 4 gates x 2 dirs (128)
HH = 2 * LSTM_OUTDIM                           # hidden lanes [fwd|bwd] (32)
NDO = N_CAPS * CAP_OUT_DIM                     # (in-cap, dim) lanes per class (96)

# TODO(synk): on v7x with production batch >= 8-16, grid over the batch dim and
# use ("parallel",) so both TensorCores are used; at BATCH=2 it gains nothing.
_COMPILER_PARAMS = pltpu.CompilerParams(dimension_semantics=("arbitrary",))


def _vmem_spec(shape):
    n = len(shape)
    return pl.BlockSpec(shape, lambda i, n=n: (0,) * n)


# ------------------------------ fused kernel ---------------------------------
def _fused_classifier_kernel(xc_ref, cw_ref, cbm_ref,
                             wih_ref, whh_ref, bias_ref,
                             capw_ref, fc_ref, out_ref):
    f32 = jnp.float32
    T = T_SEQ
    H = LSTM_OUTDIM

    # ---------------- 1. conv + ReLU + global max-pool (both branches) -------
    # rows of x: [esm_b0 | esm_b1 | pub_b0 | pub_b1], 16 positions each.
    x = xc_ref[...]                                                  # (64, 96)
    acc = jnp.dot(x, cw_ref[0:HPAD, :], preferred_element_type=f32)
    for dk in range(1, KMAX):
        # rolled[t] = x[t + dk]; wrapped rows only hit overhang positions which
        # the -1e9 mask removes, and zero weight taps for shorter filters.
        xs = pltpu.roll(x, CONV_ROWS - dk, axis=0)
        acc = acc + jnp.dot(xs, cw_ref[dk * HPAD:(dk + 1) * HPAD, :],
                            preferred_element_type=f32)
    acc = jnp.maximum(acc + cbm_ref[0:1, :], 0.0) + cbm_ref[8:8 + CONV_ROWS, :]
    pooled = jnp.concatenate(
        [jnp.max(acc[g * T_POS:(g + 1) * T_POS, :], axis=0, keepdims=True)
         for g in range(BEFF)], axis=0)                              # (4, 192)
    # zero the cross-branch (masked to -1e9) entries before the LSTM matmul
    prow = lax.broadcasted_iota(jnp.int32, (BEFF, F_TOT), 0)
    pcol = lax.broadcasted_iota(jnp.int32, (BEFF, F_TOT), 1)
    er = prow < BATCH
    ec = pcol < F_BR
    keep = (er & ec) | (jnp.logical_not(er) & jnp.logical_not(ec))
    pooled = jnp.where(keep, pooled, 0.0)

    # ---------------- 2. shared 2-layer BiLSTM (branches batched on rows) ----
    lane = lax.broadcasted_iota(jnp.int32, (BEFF, GATES), 1)
    fwd_mask = ((lane >> 4) & 1) == 0                 # [i_f,i_b,f_f,f_b,g_f,g_b,o_f,o_b]
    g_mask = (lane >= 4 * H) & (lane < 6 * H)

    def bilstm_layer(gx, whh):
        # gx: (BEFF, T*128) hoisted input projection (+bias); whh: (32, 128).
        h = jnp.zeros((BEFF, HH), f32)
        c = jnp.zeros((BEFF, HH), f32)
        hs = []
        for s in range(T):                                           # static unroll
            gxf = gx[:, s * GATES:(s + 1) * GATES]                   # aligned lane slice
            gxb = gx[:, (T - 1 - s) * GATES:(T - s) * GATES]
            gates = (jnp.dot(h, whh, preferred_element_type=f32)
                     + jnp.where(fwd_mask, gxf, gxb))
            # single EUP pass: i/f/o columns are 0.5-pre-scaled offline,
            # sigmoid(z) = 0.5*tanh(z/2) + 0.5.
            th = jnp.tanh(gates)
            act = jnp.where(g_mask, th, 0.5 * th + 0.5)
            i_g = act[:, 0 * HH:1 * HH]
            f_g = act[:, 1 * HH:2 * HH]
            g_g = act[:, 2 * HH:3 * HH]
            o_g = act[:, 3 * HH:4 * HH]
            c = f_g * c + i_g * g_g
            h = o_g * jnp.tanh(c)
            hs.append(h)                # h = [h_fwd(time s) | h_bwd(time T-1-s)]
        return hs

    # layer 0: one hoisted input projection (time-block-diag, branch-duplicated)
    gx0 = (jnp.dot(pooled, wih_ref[0:F_TOT, :], preferred_element_type=f32)
           + bias_ref[0:1, :])
    hs0 = bilstm_layer(gx0, whh_ref[0:HH, :])

    # layer 1: per-step slabs consume raw h_s directly (no [h_f|h_b] re-concat)
    # TODO(synk): nn.LSTM inter-layer dropout omitted (inference / eval mode).
    gx1 = bias_ref[8:9, :]
    for s in range(T):
        r0 = F_TOT + s * HH
        gx1 = gx1 + jnp.dot(hs0[s], wih_ref[r0:r0 + HH, :],
                            preferred_element_type=f32)
    hs1 = bilstm_layer(gx1, whh_ref[HH:2 * HH, :])

    # ---------------- 3. capsule u_hat (block-structured weight) -------------
    uhw = jnp.zeros((BEFF, NUM_CLASSES * NDO), f32)
    for s in range(T):
        uhw = uhw + jnp.dot(hs1[s], capw_ref[s * HH:(s + 1) * HH, :],
                            preferred_element_type=f32)             # (4, 192)
    crow = lax.broadcasted_iota(jnp.int32, (BEFF, NUM_CLASSES * NDO), 0)
    ccol = lax.broadcasted_iota(jnp.int32, (BEFF, NUM_CLASSES * NDO), 1)
    er2 = crow < BATCH
    ec2 = (ccol < T * CAP_OUT_DIM) | ((ccol >= NDO) & (ccol < NDO + T * CAP_OUT_DIM))
    keep2 = (er2 & ec2) | (jnp.logical_not(er2) & jnp.logical_not(ec2))
    uhw = jnp.where(keep2, uhw, 0.0)
    # merge branch row-pairs -> rows (class, batch), all 6 in-caps on lanes
    uh = jnp.concatenate(
        [uhw[0:BATCH, 0:NDO] + uhw[BATCH:BEFF, 0:NDO],
         uhw[0:BATCH, NDO:2 * NDO] + uhw[BATCH:BEFF, NDO:2 * NDO]], axis=0)   # (4, 96)

    # ---------------- 4. dynamic routing (classes fused, fully unrolled) -----
    ri = lax.broadcasted_iota(jnp.int32, (NDO, NDO), 0)
    ci = lax.broadcasted_iota(jnp.int32, (NDO, NDO), 1)
    same_m = ((ri & (CAP_OUT_DIM - 1)) == (ci & (CAP_OUT_DIM - 1))).astype(f32)
    same_i = ((ri >> 4) == (ci >> 4)).astype(f32)

    b_rep = jnp.zeros((BEFF, NDO), f32)          # logits replicated over the dim axis
    v_rep = jnp.zeros((BEFF, NDO), f32)
    for it in range(ROUTING_ITERS):
        mx = jnp.max(b_rep, axis=-1, keepdims=True)
        e = jnp.exp(b_rep - mx)
        csum = jnp.sum(e, axis=-1, keepdims=True) * (1.0 / CAP_OUT_DIM)
        c_rep = e / csum                                           # softmax over in-caps
        s_rep = jnp.dot(c_rep * uh, same_m, preferred_element_type=f32)   # sum over i
        s2 = jnp.sum(s_rep * s_rep, axis=-1, keepdims=True) * (1.0 / N_CAPS)
        v_rep = (s2 / (1.0 + s2)) * (s_rep * lax.rsqrt(s2 + 1e-8))        # squash
        if it + 1 < ROUTING_ITERS:
            b_rep = b_rep + jnp.dot(v_rep * uh, same_i,
                                    preferred_element_type=f32)           # <v, u_hat>

    v = v_rep[:, 0:CAP_OUT_DIM]                  # (4, 16) rows = (class, batch)

    # ---------------- 5. FC head ---------------------------------------------
    out_ref[...] = (jnp.dot(v[0:BATCH, :], fc_ref[0:CAP_OUT_DIM, :],
                            preferred_element_type=f32)
                    + jnp.dot(v[BATCH:BEFF, :],
                              fc_ref[CAP_OUT_DIM:2 * CAP_OUT_DIM, :],
                              preferred_element_type=f32)
                    + fc_ref[2 * CAP_OUT_DIM:2 * CAP_OUT_DIM + 1, :])


# ---------------------------- parameter packing -------------------------------
def _fuse_dir_cols(wf, wb):
    """(in,4H) per dir [i|f|g|o] -> (in,8H) [i_f,i_b,...,o_f,o_b]; 0.5 scale on i/f/o."""
    H = LSTM_OUTDIM
    cols = []
    for g in range(4):
        sc = 1.0 if g == 2 else 0.5
        cols.append(sc * wf[:, g * H:(g + 1) * H])
        cols.append(sc * wb[:, g * H:(g + 1) * H])
    return np.concatenate(cols, axis=-1).astype(np.float32)


def _fuse_whh(whh_f, whh_b):
    H = LSTM_OUTDIM
    out = np.zeros((2 * H, 8 * H), np.float32)
    for g in range(4):
        sc = 1.0 if g == 2 else 0.5
        out[0:H, 2 * g * H:(2 * g + 1) * H] = sc * whh_f[:, g * H:(g + 1) * H]
        out[H:2 * H, (2 * g + 1) * H:(2 * g + 2) * H] = sc * whh_b[:, g * H:(g + 1) * H]
    return out


def _pack_conv(convs_esm, convs_pub):
    """One weight slab (KMAX*HPAD, F_TOT) + bias/mask slab (8+CONV_ROWS, F_TOT)."""
    w = np.zeros((KMAX * HPAD, F_TOT), np.float32)
    bias = np.zeros((F_TOT,), np.float32)
    for br, (convs, hin) in enumerate(((convs_esm, HIDDEN_SIZE),
                                       (convs_pub, PUB_HIDDEN_SIZE))):
        for fi, (wk, bk) in enumerate(convs):           # wk: (k, hin, NF)
            k = wk.shape[0]
            c0 = br * F_BR + fi * NUM_FILTERS
            for dk in range(k):
                w[dk * HPAD:dk * HPAD + hin, c0:c0 + NUM_FILTERS] = wk[dk]
            bias[c0:c0 + NUM_FILTERS] = np.reshape(bk, (-1,))
    mask = np.full((CONV_ROWS, F_TOT), -1e9, np.float32)
    sizes = tuple(FILTER_SIZES) + tuple(PUB_FILTER_SIZES)
    for r in range(CONV_ROWS):
        g, t = divmod(r, T_POS)
        row_br = 0 if g < BATCH else 1
        for bfi, k in enumerate(sizes):
            col_br = 0 if bfi < len(FILTER_SIZES) else 1
            if row_br == col_br and t <= T_POS - k:
                mask[r, bfi * NUM_FILTERS:(bfi + 1) * NUM_FILTERS] = 0.0
    bm = np.zeros((8 + CONV_ROWS, F_TOT), np.float32)
    bm[0] = bias
    bm[8:] = mask
    return w, bm


def _pack_lstm(lstm_params):
    T = T_SEQ
    p0, p1 = lstm_params
    wih0 = _fuse_dir_cols(p0["wih_f"], p0["wih_b"])     # (32, 128)
    wih1 = _fuse_dir_cols(p1["wih_f"], p1["wih_b"])     # (32, 128)
    b0 = _fuse_dir_cols(p0["b_f"], p0["b_b"])           # (1, 128)
    b1 = _fuse_dir_cols(p1["b_f"], p1["b_b"])
    whh0 = _fuse_whh(p0["whh_f"], p0["whh_b"])          # (32, 128)
    whh1 = _fuse_whh(p1["whh_f"], p1["whh_b"])

    # layer 0: time-block-diagonal, duplicated for the esm / pub feature halves
    blk0 = np.zeros((T * NUM_FILTERS, T * GATES), np.float32)
    for t in range(T):
        blk0[t * NUM_FILTERS:(t + 1) * NUM_FILTERS, t * GATES:(t + 1) * GATES] = wih0
    wih0_dup = np.concatenate([blk0, blk0], axis=0)     # (192, 384)

    # layer 1: per-step slabs consuming h_s = [h_f(s) | h_b(T-1-s)] directly
    wih1_slab = np.zeros((T * HH, T * GATES), np.float32)
    for s in range(T):
        wih1_slab[s * HH:s * HH + LSTM_OUTDIM,
                  s * GATES:(s + 1) * GATES] = wih1[0:LSTM_OUTDIM]
        wih1_slab[s * HH + LSTM_OUTDIM:(s + 1) * HH,
                  (T - 1 - s) * GATES:(T - s) * GATES] = wih1[LSTM_OUTDIM:]

    wih_all = np.concatenate([wih0_dup, wih1_slab], axis=0)   # (288, 384)
    whh_all = np.concatenate([whh0, whh1], axis=0)            # (64, 128)
    bias_all = np.zeros((16, T * GATES), np.float32)
    bias_all[0] = np.tile(b0, (1, T))[0]
    bias_all[8] = np.tile(b1, (1, T))[0]
    return wih_all, whh_all, bias_all


def _pack_capsule(cap_w):
    """cap_w (N, C, Din, Do) -> (T*HH, C*NDO): rows consume per-step h directly,
    columns are (class, in-cap, dim)."""
    T, H, Do = T_SEQ, LSTM_OUTDIM, CAP_OUT_DIM
    slab = np.zeros((T * HH, NUM_CLASSES * NDO), np.float32)
    for s in range(T):
        for j in range(NUM_CLASSES):
            base = j * NDO
            # fwd-half features (h_f at time s) -> caps i=s (esm) / i=T+s (pub)
            slab[s * HH:s * HH + H, base + s * Do:base + (s + 1) * Do] = cap_w[s, j, 0:H, :]
            slab[s * HH:s * HH + H, base + (T + s) * Do:base + (T + s + 1) * Do] = cap_w[T + s, j, 0:H, :]
            # bwd-half features (h_b at time T-1-s) -> caps i=T-1-s / 2T-1-s
            slab[s * HH + H:(s + 1) * HH,
                 base + (T - 1 - s) * Do:base + (T - s) * Do] = cap_w[T - 1 - s, j, H:, :]
            slab[s * HH + H:(s + 1) * HH,
                 base + (2 * T - 1 - s) * Do:base + (2 * T - s) * Do] = cap_w[2 * T - 1 - s, j, H:, :]
    return slab


def _pack_fc(fc_w_t, fc_b):
    out = np.zeros((2 * CAP_OUT_DIM + 8, NUM_CLASSES), np.float32)
    out[0:2 * CAP_OUT_DIM] = fc_w_t
    out[2 * CAP_OUT_DIM] = np.reshape(fc_b, (-1,))
    return out


def pack_params(params):
    p = jax.tree_util.tree_map(np.asarray, params)
    conv_w, conv_bm = _pack_conv(p["convs"], p["convs_pub"])
    wih_all, whh_all, bias_all = _pack_lstm(p["lstm"])
    capw = _pack_capsule(p["cap_w"])
    fc_all = _pack_fc(p["fc_w_t"], p["fc_b"])
    return tuple(jnp.asarray(a) for a in
                 (conv_w, conv_bm, wih_all, whh_all, bias_all, capw, fc_all))


# --------------------------------- forward -----------------------------------
@jax.jit
def classifier_forward(packed, esm_hidden, pub_hidden):
    # TODO(synk): ESM / PubMedBERT pretrained transformer backbones are external
    # checkpoints; their last_hidden_state tensors are taken as inputs here.
    esm_x = esm_hidden[:, 1:-1, :]                                   # strip [CLS]/[EOS]
    esm_x = jnp.pad(esm_x, ((0, 0), (0, 0), (0, HPAD - HIDDEN_SIZE)))
    pub_x = pub_hidden[:, 1:-1, :]
    x_conv = jnp.concatenate([esm_x, pub_x], axis=0).reshape(CONV_ROWS, HPAD)

    args = (x_conv,) + tuple(packed)
    bytes_acc = sum(int(np.prod(a.shape)) * 4 for a in args) + BATCH * NUM_CLASSES * 4
    return pl.pallas_call(
        _fused_classifier_kernel,
        grid=(1,),
        in_specs=[_vmem_spec(a.shape) for a in args],
        out_specs=_vmem_spec((BATCH, NUM_CLASSES)),
        out_shape=jax.ShapeDtypeStruct((BATCH, NUM_CLASSES), jnp.float32),
        compiler_params=_COMPILER_PARAMS,
        cost_estimate=pl.CostEstimate(flops=14_000_000, transcendentals=8_000,
                                      bytes_accessed=bytes_acc),
    )(*args)


# ------------------------------ parameter init -------------------------------
def init_params(key):
    keys = iter(jax.random.split(key, 32))

    def nrm(shape, scale=0.1):
        return (scale * jax.random.normal(next(keys), shape)).astype(jnp.float32)

    convs = [(nrm((k, HIDDEN_SIZE, NUM_FILTERS)), nrm((NUM_FILTERS,)))
             for k in FILTER_SIZES]                 # torch (F,1,k,H) -> (k,H,F)
    convs_pub = [(nrm((k, PUB_HIDDEN_SIZE, NUM_FILTERS)), nrm((NUM_FILTERS,)))
                 for k in PUB_FILTER_SIZES]

    lstm = []
    in_size = NUM_FILTERS
    for _ in range(NUM_LAYERS):
        H = LSTM_OUTDIM
        lstm.append({
            "wih_f": nrm((in_size, 4 * H)),   # torch weight_ih_l{l}, transposed
            "whh_f": nrm((H, 4 * H)),
            "b_f": nrm((1, 4 * H)),           # b_ih + b_hh combined
            "wih_b": nrm((in_size, 4 * H)),   # *_reverse
            "whh_b": nrm((H, 4 * H)),
            "b_b": nrm((1, 4 * H)),
        })
        in_size = 2 * H

    cap_w = nrm((N_CAPS, NUM_CLASSES, CAP_IN_DIM, CAP_OUT_DIM), scale=1.0)
    fc_w_t = nrm((NUM_CLASSES * CAP_OUT_DIM, NUM_CLASSES))
    fc_b = nrm((1, NUM_CLASSES))
    return {"convs": convs, "convs_pub": convs_pub, "lstm": lstm,
            "cap_w": cap_w, "fc_w_t": fc_w_t, "fc_b": fc_b}


if __name__ == "__main__":
    key = jax.random.PRNGKey(0)
    k_params, k_esm, k_pub = jax.random.split(key, 3)
    params = init_params(k_params)
    packed = pack_params(params)

    esm_hidden = jax.random.normal(k_esm, (BATCH, ESM_LEN, HIDDEN_SIZE),
                                   dtype=jnp.float32)
    pub_hidden = jax.random.normal(k_pub, (BATCH, PUB_LEN, PUB_HIDDEN_SIZE),
                                   dtype=jnp.float32)

    logits = classifier_forward(packed, esm_hidden, pub_hidden)
    logits = jax.block_until_ready(logits)
    assert logits.shape == (BATCH, NUM_CLASSES)
    assert bool(jnp.all(jnp.isfinite(logits)))
    print("KERNEL_OK")
</pallas_src>

<mosaic_0001>
module attributes {stable_mosaic.version = 11 : i64} {
  func.func @_fused_classifier_kernel(%arg0: i32, %arg1: memref<64x96xf32, #tpu.memory_space<vmem>>, %arg2: memref<480x192xf32, #tpu.memory_space<vmem>>, %arg3: memref<72x192xf32, #tpu.memory_space<vmem>>, %arg4: memref<288x384xf32, #tpu.memory_space<vmem>>, %arg5: memref<64x128xf32, #tpu.memory_space<vmem>>, %arg6: memref<16x384xf32, #tpu.memory_space<vmem>>, %arg7: memref<96x192xf32, #tpu.memory_space<vmem>>, %arg8: memref<40x2xf32, #tpu.memory_space<vmem>>, %arg9: memref<2x2xf32, #tpu.memory_space<vmem>>) attributes {dimension_semantics = [#tpu.dimension_semantics<arbitrary>], iteration_bounds = array<i64: 1>, scalar_prefetch = 0 : i64, scratch_operands = 0 : i64, tpu.core_type = #tpu.core_type<tc>, window_params = [{pipeline_mode = #tpu.pipeline_mode<synchronous>, transform_indices = @transform_0, window_bounds = array<i64: 64, 96>}, {pipeline_mode = #tpu.pipeline_mode<synchronous>, transform_indices = @transform_1, window_bounds = array<i64: 480, 192>}, {pipeline_mode = #tpu.pipeline_mode<synchronous>, transform_indices = @transform_2, window_bounds = array<i64: 72, 192>}, {pipeline_mode = #tpu.pipeline_mode<synchronous>, transform_indices = @transform_3, window_bounds = array<i64: 288, 384>}, {pipeline_mode = #tpu.pipeline_mode<synchronous>, transform_indices = @transform_4, window_bounds = array<i64: 64, 128>}, {pipeline_mode = #tpu.pipeline_mode<synchronous>, transform_indices = @transform_5, window_bounds = array<i64: 16, 384>}, {pipeline_mode = #tpu.pipeline_mode<synchronous>, transform_indices = @transform_6, window_bounds = array<i64: 96, 192>}, {pipeline_mode = #tpu.pipeline_mode<synchronous>, transform_indices = @transform_7, window_bounds = array<i64: 40, 2>}, {pipeline_mode = #tpu.pipeline_mode<synchronous>, transform_indices = @transform_8, window_bounds = array<i64: 2, 2>}]} {
    %c0 = arith.constant 0 : index
    %c0_0 = arith.constant 0 : index
    %0 = vector.load %arg1[%c0, %c0_0] : memref<64x96xf32, #tpu.memory_space<vmem>>, vector<64x96xf32>
    %c0_1 = arith.constant 0 : index
    %c0_2 = arith.constant 0 : index
    %1 = vector.load %arg2[%c0_1, %c0_2] : memref<480x192xf32, #tpu.memory_space<vmem>>, vector<96x192xf32>
    %cst = arith.constant dense<0.000000e+00> : vector<64x192xf32>
    %2 = tpu.matmul %0, %1, %cst {dimension_numbers = #tpu.dot_dimension_numbers<[1], [0], [0], [1], [0, 0, 1, 1], [], []>} : vector<64x96xf32>, vector<96x192xf32>, vector<64x192xf32> -> vector<64x192xf32>
    %c63_i32 = arith.constant 63 : i32
    %3 = tpu.dynamic_rotate %0 by %c63_i32 dim 0 : vector<64x96xf32>, i32 -> vector<64x96xf32>
    %c96 = arith.constant 96 : index
    %c0_3 = arith.constant 0 : index
    %4 = vector.load %arg2[%c96, %c0_3] : memref<480x192xf32, #tpu.memory_space<vmem>>, vector<96x192xf32>
    %cst_4 = arith.constant dense<0.000000e+00> : vector<64x192xf32>
    %5 = tpu.matmul %3, %4, %cst_4 {dimension_numbers = #tpu.dot_dimension_numbers<[1], [0], [0], [1], [0, 0, 1, 1], [], []>} : vector<64x96xf32>, vector<96x192xf32>, vector<64x192xf32> -> vector<64x192xf32>
    %6 = arith.addf %2, %5 : vector<64x192xf32>
    %c62_i32 = arith.constant 62 : i32
    %7 = tpu.dynamic_rotate %0 by %c62_i32 dim 0 : vector<64x96xf32>, i32 -> vector<64x96xf32>
    %c192 = arith.constant 192 : index
    %c0_5 = arith.constant 0 : index
    %8 = vector.load %arg2[%c192, %c0_5] : memref<480x192xf32, #tpu.memory_space<vmem>>, vector<96x192xf32>
    %cst_6 = arith.constant dense<0.000000e+00> : vector<64x192xf32>
    %9 = tpu.matmul %7, %8, %cst_6 {dimension_numbers = #tpu.dot_dimension_numbers<[1], [0], [0], [1], [0, 0, 1, 1], [], []>} : vector<64x96xf32>, vector<96x192xf32>, vector<64x192xf32> -> vector<64x192xf32>
    %10 = arith.addf %6, %9 : vector<64x192xf32>
    %c61_i32 = arith.constant 61 : i32
    %11 = tpu.dynamic_rotate %0 by %c61_i32 dim 0 : vector<64x96xf32>, i32 -> vector<64x96xf32>
    %c288 = arith.constant 288 : index
    %c0_7 = arith.constant 0 : index
    %12 = vector.load %arg2[%c288, %c0_7] : memref<480x192xf32, #tpu.memory_space<vmem>>, vector<96x192xf32>
    %cst_8 = arith.constant dense<0.000000e+00> : vector<64x192xf32>
    %13 = tpu.matmul %11, %12, %cst_8 {dimension_numbers = #tpu.dot_dimension_numbers<[1], [0], [0], [1], [0, 0, 1, 1], [], []>} : vector<64x96xf32>, vector<96x192xf32>, vector<64x192xf32> -> vector<64x192xf32>
    %14 = arith.addf %10, %13 : vector<64x192xf32>
    %c60_i32 = arith.constant 60 : i32
    %15 = tpu.dynamic_rotate %0 by %c60_i32 dim 0 : vector<64x96xf32>, i32 -> vector<64x96xf32>
    %c384 = arith.constant 384 : index
    %c0_9 = arith.constant 0 : index
    %16 = vector.load %arg2[%c384, %c0_9] : memref<480x192xf32, #tpu.memory_space<vmem>>, vector<96x192xf32>
    %cst_10 = arith.constant dense<0.000000e+00> : vector<64x192xf32>
    %17 = tpu.matmul %15, %16, %cst_10 {dimension_numbers = #tpu.dot_dimension_numbers<[1], [0], [0], [1], [0, 0, 1, 1], [], []>} : vector<64x96xf32>, vector<96x192xf32>, vector<64x192xf32> -> vector<64x192xf32>
    %18 = arith.addf %14, %17 : vector<64x192xf32>
    %c0_11 = arith.constant 0 : index
    %c0_12 = arith.constant 0 : index
    %19 = vector.load %arg3[%c0_11, %c0_12] : memref<72x192xf32, #tpu.memory_space<vmem>>, vector<1x192xf32>
    %20 = vector.broadcast %19 : vector<1x192xf32> to vector<64x192xf32>
    %21 = arith.addf %18, %20 : vector<64x192xf32>
    %cst_13 = arith.constant 0.000000e+00 : f32
    %22 = vector.broadcast %cst_13 : f32 to vector<64x192xf32>
    %23 = arith.maximumf %21, %22 : vector<64x192xf32>
    %c8 = arith.constant 8 : index
    %c0_14 = arith.constant 0 : index
    %24 = vector.load %arg3[%c8, %c0_14] : memref<72x192xf32, #tpu.memory_space<vmem>>, vector<64x192xf32>
    %25 = arith.addf %23, %24 : vector<64x192xf32>
    %26 = vector.extract_strided_slice %25 {offsets = [0, 0], sizes = [16, 192], strides = [1, 1]} : vector<64x192xf32> to vector<16x192xf32>
    %cst_15 = arith.constant dense<0xFF800000> : vector<192xf32>
    %27 = vector.multi_reduction <maximumf>, %26, %cst_15 [0] : vector<16x192xf32> to vector<192xf32>
    %28 = vector.shape_cast %27 : vector<192xf32> to vector<1x192xf32>
    %29 = vector.extract_strided_slice %25 {offsets = [16, 0], sizes = [16, 192], strides = [1, 1]} : vector<64x192xf32> to vector<16x192xf32>
    %cst_16 = arith.constant dense<0xFF800000> : vector<192xf32>
    %30 = vector.multi_reduction <maximumf>, %29, %cst_16 [0] : vector<16x192xf32> to vector<192xf32>
    %31 = vector.shape_cast %30 : vector<192xf32> to vector<1x192xf32>
    %32 = vector.extract_strided_slice %25 {offsets = [32, 0], sizes = [16, 192], strides = [1, 1]} : vector<64x192xf32> to vector<16x192xf32>
    %cst_17 = arith.constant dense<0xFF800000> : vector<192xf32>
    %33 = vector.multi_reduction <maximumf>, %32, %cst_17 [0] : vector<16x192xf32> to vector<192xf32>
    %34 = vector.shape_cast %33 : vector<192xf32> to vector<1x192xf32>
    %35 = vector.extract_strided_slice %25 {offsets = [48, 0], sizes = [16, 192], strides = [1, 1]} : vector<64x192xf32> to vector<16x192xf32>
    %cst_18 = arith.constant dense<0xFF800000> : vector<192xf32>
    %36 = vector.multi_reduction <maximumf>, %35, %cst_18 [0] : vector<16x192xf32> to vector<192xf32>
    %37 = vector.shape_cast %36 : vector<192xf32> to vector<1x192xf32>
    %38 = tpu.concatenate %28, %31, %34, %37 in 0 : vector<1x192xf32>, vector<1x192xf32>, vector<1x192xf32>, vector<1x192xf32> -> vector<4x192xf32>
    %39 = tpu.iota {dimensions = array<i32: 0>} : vector<4x192xi32>
    %40 = tpu.iota {dimensions = array<i32: 1>} : vector<4x192xi32>
    %c2_i32 = arith.constant 2 : i32
    %41 = vector.broadcast %c2_i32 : i32 to vector<4x192xi32>
    %42 = arith.cmpi slt, %39, %41 : vector<4x192xi32>
    %c96_i32 = arith.constant 96 : i32
    %43 = vector.broadcast %c96_i32 : i32 to vector<4x192xi32>
    %44 = arith.cmpi slt, %40, %43 : vector<4x192xi32>
    %45 = arith.andi %42, %44 : vector<4x192xi1>
    %cst_19 = arith.constant dense<true> : vector<4x192xi1>
    %46 = arith.xori %42, %cst_19 : vector<4x192xi1>
    %cst_20 = arith.constant dense<true> : vector<4x192xi1>
    %47 = arith.xori %44, %cst_20 : vector<4x192xi1>
    %48 = arith.andi %46, %47 : vector<4x192xi1>
    %49 = arith.ori %45, %48 : vector<4x192xi1>
    %cst_21 = arith.constant 0.000000e+00 : f32
    %50 = vector.broadcast %cst_21 : f32 to vector<4x192xf32>
    %51 = arith.select %49, %38, %50 : vector<4x192xi1>, vector<4x192xf32>
    %52 = tpu.iota {dimensions = array<i32: 1>} : vector<4x128xi32>
    %c4_i32 = arith.constant 4 : i32
    %53 = vector.broadcast %c4_i32 : i32 to vector<4x128xi32>
    %54 = arith.shrsi %52, %53 : vector<4x128xi32>
    %c1_i32 = arith.constant 1 : i32
    %55 = vector.broadcast %c1_i32 : i32 to vector<4x128xi32>
    %56 = arith.andi %54, %55 : vector<4x128xi32>
    %c0_i32 = arith.constant 0 : i32
    %57 = vector.broadcast %c0_i32 : i32 to vector<4x128xi32>
    %58 = arith.cmpi eq, %56, %57 : vector<4x128xi32>
    %c64_i32 = arith.constant 64 : i32
    %59 = vector.broadcast %c64_i32 : i32 to vector<4x128xi32>
    %60 = arith.cmpi sge, %52, %59 : vector<4x128xi32>
    %c96_i32_22 = arith.constant 96 : i32
    %61 = vector.broadcast %c96_i32_22 : i32 to vector<4x128xi32>
    %62 = arith.cmpi slt, %52, %61 : vector<4x128xi32>
    %63 = arith.andi %60, %62 : vector<4x128xi1>
    %c0_23 = arith.constant 0 : index
    %c0_24 = arith.constant 0 : index
    %64 = vector.load %arg4[%c0_23, %c0_24] : memref<288x384xf32, #tpu.memory_space<vmem>>, vector<192x384xf32>
    %cst_25 = arith.constant dense<0.000000e+00> : vector<4x384xf32>
    %65 = tpu.matmul %51, %64, %cst_25 {dimension_numbers = #tpu.dot_dimension_numbers<[1], [0], [0], [1], [0, 0, 1, 1], [], []>} : vector<4x192xf32>, vector<192x384xf32>, vector<4x384xf32> -> vector<4x384xf32>
    %c0_26 = arith.constant 0 : index
    %c0_27 = arith.constant 0 : index
    %66 = vector.load %arg6[%c0_26, %c0_27] : memref<16x384xf32, #tpu.memory_space<vmem>>, vector<1x384xf32>
    %67 = vector.broadcast %66 : vector<1x384xf32> to vector<4x384xf32>
    %68 = arith.addf %65, %67 : vector<4x384xf32>
    %c0_28 = arith.constant 0 : index
    %c0_29 = arith.constant 0 : index
    %69 = vector.load %arg5[%c0_28, %c0_29] : memref<64x128xf32, #tpu.memory_space<vmem>>, vector<32x128xf32>
    %cst_30 = arith.constant 0.000000e+00 : f32
    %70 = vector.broadcast %cst_30 : f32 to vector<4x32xf32>
    %cst_31 = arith.constant 0.000000e+00 : f32
    %71 = vector.broadcast %cst_31 : f32 to vector<4x32xf32>
    %72 = vector.extract_strided_slice %68 {offsets = [0, 0], sizes = [4, 128], strides = [1, 1]} : vector<4x384xf32> to vector<4x128xf32>
    %73 = vector.extract_strided_slice %68 {offsets = [0, 256], sizes = [4, 128], strides = [1, 1]} : vector<4x384xf32> to vector<4x128xf32>
    %cst_32 = arith.constant dense<0.000000e+00> : vector<4x128xf32>
    %74 = tpu.matmul %70, %69, %cst_32 {dimension_numbers = #tpu.dot_dimension_numbers<[1], [0], [0], [1], [0, 0, 1, 1], [], []>} : vector<4x32xf32>, vector<32x128xf32>, vector<4x128xf32> -> vector<4x128xf32>
    %75 = arith.select %58, %72, %73 : vector<4x128xi1>, vector<4x128xf32>
    %76 = arith.addf %74, %75 : vector<4x128xf32>
    %77 = math.tanh %76 : vector<4x128xf32>
    %cst_33 = arith.constant 5.000000e-01 : f32
    %78 = vector.broadcast %cst_33 : f32 to vector<4x128xf32>
    %79 = arith.mulf %78, %77 : vector<4x128xf32>
    %cst_34 = arith.constant 5.000000e-01 : f32
    %80 = vector.broadcast %cst_34 : f32 to vector<4x128xf32>
    %81 = arith.addf %79, %80 : vector<4x128xf32>
    %82 = arith.select %63, %77, %81 : vector<4x128xi1>, vector<4x128xf32>
    %83 = vector.extract_strided_slice %82 {offsets = [0, 0], sizes = [4, 32], strides = [1, 1]} : vector<4x128xf32> to vector<4x32xf32>
    %84 = vector.extract_strided_slice %82 {offsets = [0, 32], sizes = [4, 32], strides = [1, 1]} : vector<4x128xf32> to vector<4x32xf32>
    %85 = vector.extract_strided_slice %82 {offsets = [0, 64], sizes = [4, 32], strides = [1, 1]} : vector<4x128xf32> to vector<4x32xf32>
    %86 = vector.extract_strided_slice %82 {offsets = [0, 96], sizes = [4, 32], strides = [1, 1]} : vector<4x128xf32> to vector<4x32xf32>
    %87 = arith.mulf %84, %71 : vector<4x32xf32>
    %88 = arith.mulf %83, %85 : vector<4x32xf32>
    %89 = arith.addf %87, %88 : vector<4x32xf32>
    %90 = math.tanh %89 : vector<4x32xf32>
    %91 = arith.mulf %86, %90 : vector<4x32xf32>
    %92 = vector.extract_strided_slice %68 {offsets = [0, 128], sizes = [4, 128], strides = [1, 1]} : vector<4x384xf32> to vector<4x128xf32>
    %93 = vector.extract_strided_slice %68 {offsets = [0, 128], sizes = [4, 128], strides = [1, 1]} : vector<4x384xf32> to vector<4x128xf32>
    %cst_35 = arith.constant dense<0.000000e+00> : vector<4x128xf32>
    %94 = tpu.matmul %91, %69, %cst_35 {dimension_numbers = #tpu.dot_dimension_numbers<[1], [0], [0], [1], [0, 0, 1, 1], [], []>} : vector<4x32xf32>, vector<32x128xf32>, vector<4x128xf32> -> vector<4x128xf32>
    %95 = arith.select %58, %92, %93 : vector<4x128xi1>, vector<4x128xf32>
    %96 = arith.addf %94, %95 : vector<4x128xf32>
    %97 = math.tanh %96 : vector<4x128xf32>
    %cst_36 = arith.constant 5.000000e-01 : f32
    %98 = vector.broadcast %cst_36 : f32 to vector<4x128xf32>
    %99 = arith.mulf %98, %97 : vector<4x128xf32>
    %cst_37 = arith.constant 5.000000e-01 : f32
    %100 = vector.broadcast %cst_37 : f32 to vector<4x128xf32>
    %101 = arith.addf %99, %100 : vector<4x128xf32>
    %102 = arith.select %63, %97, %101 : vector<4x128xi1>, vector<4x128xf32>
    %103 = vector.extract_strided_slice %102 {offsets = [0, 0], sizes = [4, 32], strides = [1, 1]} : vector<4x128xf32> to vector<4x32xf32>
    %104 = vector.extract_strided_slice %102 {offsets = [0, 32], sizes = [4, 32], strides = [1, 1]} : vector<4x128xf32> to vector<4x32xf32>
    %105 = vector.extract_strided_slice %102 {offsets = [0, 64], sizes = [4, 32], strides = [1, 1]} : vector<4x128xf32> to vector<4x32xf32>
    %106 = vector.extract_strided_slice %102 {offsets = [0, 96], sizes = [4, 32], strides = [1, 1]} : vector<4x128xf32> to vector<4x32xf32>
    %107 = arith.mulf %104, %89 : vector<4x32xf32>
    %108 = arith.mulf %103, %105 : vector<4x32xf32>
    %109 = arith.addf %107, %108 : vector<4x32xf32>
    %110 = math.tanh %109 : vector<4x32xf32>
    %111 = arith.mulf %106, %110 : vector<4x32xf32>
    %112 = vector.extract_strided_slice %68 {offsets = [0, 256], sizes = [4, 128], strides = [1, 1]} : vector<4x384xf32> to vector<4x128xf32>
    %113 = vector.extract_strided_slice %68 {offsets = [0, 0], sizes = [4, 128], strides = [1, 1]} : vector<4x384xf32> to vector<4x128xf32>
    %cst_38 = arith.constant dense<0.000000e+00> : vector<4x128xf32>
    %114 = tpu.matmul %111, %69, %cst_38 {dimension_numbers = #tpu.dot_dimension_numbers<[1], [0], [0], [1], [0, 0, 1, 1], [], []>} : vector<4x32xf32>, vector<32x128xf32>, vector<4x128xf32> -> vector<4x128xf32>
    %115 = arith.select %58, %112, %113 : vector<4x128xi1>, vector<4x128xf32>
    %116 = arith.addf %114, %115 : vector<4x128xf32>
    %117 = math.tanh %116 : vector<4x128xf32>
    %cst_39 = arith.constant 5.000000e-01 : f32
    %118 = vector.broadcast %cst_39 : f32 to vector<4x128xf32>
    %119 = arith.mulf %118, %117 : vector<4x128xf32>
    %cst_40 = arith.constant 5.000000e-01 : f32
    %120 = vector.broadcast %cst_40 : f32 to vector<4x128xf32>
    %121 = arith.addf %119, %120 : vector<4x128xf32>
    %122 = arith.select %63, %117, %121 : vector<4x128xi1>, vector<4x128xf32>
    %123 = vector.extract_strided_slice %122 {offsets = [0, 0], sizes = [4, 32], strides = [1, 1]} : vector<4x128xf32> to vector<4x32xf32>
    %124 = vector.extract_strided_slice %122 {offsets = [0, 32], sizes = [4, 32], strides = [1, 1]} : vector<4x128xf32> to vector<4x32xf32>
    %125 = vector.extract_strided_slice %122 {offsets = [0, 64], sizes = [4, 32], strides = [1, 1]} : vector<4x128xf32> to vector<4x32xf32>
    %126 = vector.extract_strided_slice %122 {offsets = [0, 96], sizes = [4, 32], strides = [1, 1]} : vector<4x128xf32> to vector<4x32xf32>
    %127 = arith.mulf %124, %109 : vector<4x32xf32>
    %128 = arith.mulf %123, %125 : vector<4x32xf32>
    %129 = arith.addf %127, %128 : vector<4x32xf32>
    %130 = math.tanh %129 : vector<4x32xf32>
    %131 = arith.mulf %126, %130 : vector<4x32xf32>
    %c8_41 = arith.constant 8 : index
    %c0_42 = arith.constant 0 : index
    %132 = vector.load %arg6[%c8_41, %c0_42] : memref<16x384xf32, #tpu.memory_space<vmem>>, vector<1x384xf32>
    %c192_43 = arith.constant 192 : index
    %c0_44 = arith.constant 0 : index
    %133 = vector.load %arg4[%c192_43, %c0_44] : memref<288x384xf32, #tpu.memory_space<vmem>>, vector<32x384xf32>
    %cst_45 = arith.constant dense<0.000000e+00> : vector<4x384xf32>
    %134 = tpu.matmul %91, %133, %cst_45 {dimension_numbers = #tpu.dot_dimension_numbers<[1], [0], [0], [1], [0, 0, 1, 1], [], []>} : vector<4x32xf32>, vector<32x384xf32>, vector<4x384xf32> -> vector<4x384xf32>
    %135 = vector.broadcast %132 : vector<1x384xf32> to vector<4x384xf32>
    %136 = arith.addf %135, %134 : vector<4x384xf32>
    %c224 = arith.constant 224 : index
    %c0_46 = arith.constant 0 : index
    %137 = vector.load %arg4[%c224, %c0_46] : memref<288x384xf32, #tpu.memory_space<vmem>>, vector<32x384xf32>
    %cst_47 = arith.constant dense<0.000000e+00> : vector<4x384xf32>
    %138 = tpu.matmul %111, %137, %cst_47 {dimension_numbers = #tpu.dot_dimension_numbers<[1], [0], [0], [1], [0, 0, 1, 1], [], []>} : vector<4x32xf32>, vector<32x384xf32>, vector<4x384xf32> -> vector<4x384xf32>
    %139 = arith.addf %136, %138 : vector<4x384xf32>
    %c256 = arith.constant 256 : index
    %c0_48 = arith.constant 0 : index
    %140 = vector.load %arg4[%c256, %c0_48] : memref<288x384xf32, #tpu.memory_space<vmem>>, vector<32x384xf32>
    %cst_49 = arith.constant dense<0.000000e+00> : vector<4x384xf32>
    %141 = tpu.matmul %131, %140, %cst_49 {dimension_numbers = #tpu.dot_dimension_numbers<[1], [0], [0], [1], [0, 0, 1, 1], [], []>} : vector<4x32xf32>, vector<32x384xf32>, vector<4x384xf32> -> vector<4x384xf32>
    %142 = arith.addf %139, %141 : vector<4x384xf32>
    %c32 = arith.constant 32 : index
    %c0_50 = arith.constant 0 : index
    %143 = vector.load %arg5[%c32, %c0_50] : memref<64x128xf32, #tpu.memory_space<vmem>>, vector<32x128xf32>
    %cst_51 = arith.constant 0.000000e+00 : f32
    %144 = vector.broadcast %cst_51 : f32 to vector<4x32xf32>
    %cst_52 = arith.constant 0.000000e+00 : f32
    %145 = vector.broadcast %cst_52 : f32 to vector<4x32xf32>
    %146 = vector.extract_strided_slice %142 {offsets = [0, 0], sizes = [4, 128], strides = [1, 1]} : vector<4x384xf32> to vector<4x128xf32>
    %147 = vector.extract_strided_slice %142 {offsets = [0, 256], sizes = [4, 128], strides = [1, 1]} : vector<4x384xf32> to vector<4x128xf32>
    %cst_53 = arith.constant dense<0.000000e+00> : vector<4x128xf32>
    %148 = tpu.matmul %144, %143, %cst_53 {dimension_numbers = #tpu.dot_dimension_numbers<[1], [0], [0], [1], [0, 0, 1, 1], [], []>} : vector<4x32xf32>, vector<32x128xf32>, vector<4x128xf32> -> vector<4x128xf32>
    %149 = arith.select %58, %146, %147 : vector<4x128xi1>, vector<4x128xf32>
    %150 = arith.addf %148, %149 : vector<4x128xf32>
    %151 = math.tanh %150 : vector<4x128xf32>
    %cst_54 = arith.constant 5.000000e-01 : f32
    %152 = vector.broadcast %cst_54 : f32 to vector<4x128xf32>
    %153 = arith.mulf %152, %151 : vector<4x128xf32>
    %cst_55 = arith.constant 5.000000e-01 : f32
    %154 = vector.broadcast %cst_55 : f32 to vector<4x128xf32>
    %155 = arith.addf %153, %154 : vector<4x128xf32>
    %156 = arith.select %63, %151, %155 : vector<4x128xi1>, vector<4x128xf32>
    %157 = vector.extract_strided_slice %156 {offsets = [0, 0], sizes = [4, 32], strides = [1, 1]} : vector<4x128xf32> to vector<4x32xf32>
    %158 = vector.extract_strided_slice %156 {offsets = [0, 32], sizes = [4, 32], strides = [1, 1]} : vector<4x128xf32> to vector<4x32xf32>
    %159 = vector.extract_strided_slice %156 {offsets = [0, 64], sizes = [4, 32], strides = [1, 1]} : vector<4x128xf32> to vector<4x32xf32>
    %160 = vector.extract_strided_slice %156 {offsets = [0, 96], sizes = [4, 32], strides = [1, 1]} : vector<4x128xf32> to vector<4x32xf32>
    %161 = arith.mulf %158, %145 : vector<4x32xf32>
    %162 = arith.mulf %157, %159 : vector<4x32xf32>
    %163 = arith.addf %161, %162 : vector<4x32xf32>
    %164 = math.tanh %163 : vector<4x32xf32>
    %165 = arith.mulf %160, %164 : vector<4x32xf32>
    %166 = vector.extract_strided_slice %142 {offsets = [0, 128], sizes = [4, 128], strides = [1, 1]} : vector<4x384xf32> to vector<4x128xf32>
    %167 = vector.extract_strided_slice %142 {offsets = [0, 128], sizes = [4, 128], strides = [1, 1]} : vector<4x384xf32> to vector<4x128xf32>
    %cst_56 = arith.constant dense<0.000000e+00> : vector<4x128xf32>
    %168 = tpu.matmul %165, %143, %cst_56 {dimension_numbers = #tpu.dot_dimension_numbers<[1], [0], [0], [1], [0, 0, 1, 1], [], []>} : vector<4x32xf32>, vector<32x128xf32>, vector<4x128xf32> -> vector<4x128xf32>
    %169 = arith.select %58, %166, %167 : vector<4x128xi1>, vector<4x128xf32>
    %170 = arith.addf %168, %169 : vector<4x128xf32>
    %171 = math.tanh %170 : vector<4x128xf32>
    %cst_57 = arith.constant 5.000000e-01 : f32
    %172 = vector.broadcast %cst_57 : f32 to vector<4x128xf32>
    %173 = arith.mulf %172, %171 : vector<4x128xf32>
    %cst_58 = arith.constant 5.000000e-01 : f32
    %174 = vector.broadcast %cst_58 : f32 to vector<4x128xf32>
    %175 = arith.addf %173, %174 : vector<4x128xf32>
    %176 = arith.select %63, %171, %175 : vector<4x128xi1>, vector<4x128xf32>
    %177 = vector.extract_strided_slice %176 {offsets = [0, 0], sizes = [4, 32], strides = [1, 1]} : vector<4x128xf32> to vector<4x32xf32>
    %178 = vector.extract_strided_slice %176 {offsets = [0, 32], sizes = [4, 32], strides = [1, 1]} : vector<4x128xf32> to vector<4x32xf32>
    %179 = vector.extract_strided_slice %176 {offsets = [0, 64], sizes = [4, 32], strides = [1, 1]} : vector<4x128xf32> to vector<4x32xf32>
    %180 = vector.extract_strided_slice %176 {offsets = [0, 96], sizes = [4, 32], strides = [1, 1]} : vector<4x128xf32> to vector<4x32xf32>
    %181 = arith.mulf %178, %163 : vector<4x32xf32>
    %182 = arith.mulf %177, %179 : vector<4x32xf32>
    %183 = arith.addf %181, %182 : vector<4x32xf32>
    %184 = math.tanh %183 : vector<4x32xf32>
    %185 = arith.mulf %180, %184 : vector<4x32xf32>
    %186 = vector.extract_strided_slice %142 {offsets = [0, 256], sizes = [4, 128], strides = [1, 1]} : vector<4x384xf32> to vector<4x128xf32>
    %187 = vector.extract_strided_slice %142 {offsets = [0, 0], sizes = [4, 128], strides = [1, 1]} : vector<4x384xf32> to vector<4x128xf32>
    %cst_59 = arith.constant dense<0.000000e+00> : vector<4x128xf32>
    %188 = tpu.matmul %185, %143, %cst_59 {dimension_numbers = #tpu.dot_dimension_numbers<[1], [0], [0], [1], [0, 0, 1, 1], [], []>} : vector<4x32xf32>, vector<32x128xf32>, vector<4x128xf32> -> vector<4x128xf32>
    %189 = arith.select %58, %186, %187 : vector<4x128xi1>, vector<4x128xf32>
    %190 = arith.addf %188, %189 : vector<4x128xf32>
    %191 = math.tanh %190 : vector<4x128xf32>
    %cst_60 = arith.constant 5.000000e-01 : f32
    %192 = vector.broadcast %cst_60 : f32 to vector<4x128xf32>
    %193 = arith.mulf %192, %191 : vector<4x128xf32>
    %cst_61 = arith.constant 5.000000e-01 : f32
    %194 = vector.broadcast %cst_61 : f32 to vector<4x128xf32>
    %195 = arith.addf %193, %194 : vector<4x128xf32>
    %196 = arith.select %63, %191, %195 : vector<4x128xi1>, vector<4x128xf32>
    %197 = vector.extract_strided_slice %196 {offsets = [0, 0], sizes = [4, 32], strides = [1, 1]} : vector<4x128xf32> to vector<4x32xf32>
    %198 = vector.extract_strided_slice %196 {offsets = [0, 32], sizes = [4, 32], strides = [1, 1]} : vector<4x128xf32> to vector<4x32xf32>
    %199 = vector.extract_strided_slice %196 {offsets = [0, 64], sizes = [4, 32], strides = [1, 1]} : vector<4x128xf32> to vector<4x32xf32>
    %200 = vector.extract_strided_slice %196 {offsets = [0, 96], sizes = [4, 32], strides = [1, 1]} : vector<4x128xf32> to vector<4x32xf32>
    %201 = arith.mulf %198, %183 : vector<4x32xf32>
    %202 = arith.mulf %197, %199 : vector<4x32xf32>
    %203 = arith.addf %201, %202 : vector<4x32xf32>
    %204 = math.tanh %203 : vector<4x32xf32>
    %205 = arith.mulf %200, %204 : vector<4x32xf32>
    %cst_62 = arith.constant 0.000000e+00 : f32
    %206 = vector.broadcast %cst_62 : f32 to vector<4x192xf32>
    %c0_63 = arith.constant 0 : index
    %c0_64 = arith.constant 0 : index
    %207 = vector.load %arg7[%c0_63, %c0_64] : memref<96x192xf32, #tpu.memory_space<vmem>>, vector<32x192xf32>
    %cst_65 = arith.constant dense<0.000000e+00> : vector<4x192xf32>
    %208 = tpu.matmul %165, %207, %cst_65 {dimension_numbers = #tpu.dot_dimension_numbers<[1], [0], [0], [1], [0, 0, 1, 1], [], []>} : vector<4x32xf32>, vector<32x192xf32>, vector<4x192xf32> -> vector<4x192xf32>
    %209 = arith.addf %206, %208 : vector<4x192xf32>
    %c32_66 = arith.constant 32 : index
    %c0_67 = arith.constant 0 : index
    %210 = vector.load %arg7[%c32_66, %c0_67] : memref<96x192xf32, #tpu.memory_space<vmem>>, vector<32x192xf32>
    %cst_68 = arith.constant dense<0.000000e+00> : vector<4x192xf32>
    %211 = tpu.matmul %185, %210, %cst_68 {dimension_numbers = #tpu.dot_dimension_numbers<[1], [0], [0], [1], [0, 0, 1, 1], [], []>} : vector<4x32xf32>, vector<32x192xf32>, vector<4x192xf32> -> vector<4x192xf32>
    %212 = arith.addf %209, %211 : vector<4x192xf32>
    %c64 = arith.constant 64 : index
    %c0_69 = arith.constant 0 : index
    %213 = vector.load %arg7[%c64, %c0_69] : memref<96x192xf32, #tpu.memory_space<vmem>>, vector<32x192xf32>
    %cst_70 = arith.constant dense<0.000000e+00> : vector<4x192xf32>
    %214 = tpu.matmul %205, %213, %cst_70 {dimension_numbers = #tpu.dot_dimension_numbers<[1], [0], [0], [1], [0, 0, 1, 1], [], []>} : vector<4x32xf32>, vector<32x192xf32>, vector<4x192xf32> -> vector<4x192xf32>
    %215 = arith.addf %212, %214 : vector<4x192xf32>
    %216 = tpu.iota {dimensions = array<i32: 0>} : vector<4x192xi32>
    %217 = tpu.iota {dimensions = array<i32: 1>} : vector<4x192xi32>
    %c2_i32_71 = arith.constant 2 : i32
    %218 = vector.broadcast %c2_i32_71 : i32 to vector<4x192xi32>
    %219 = arith.cmpi slt, %216, %218 : vector<4x192xi32>
    %c48_i32 = arith.constant 48 : i32
    %220 = vector.broadcast %c48_i32 : i32 to vector<4x192xi32>
    %221 = arith.cmpi slt, %217, %220 : vector<4x192xi32>
    %c96_i32_72 = arith.constant 96 : i32
    %222 = vector.broadcast %c96_i32_72 : i32 to vector<4x192xi32>
    %223 = arith.cmpi sge, %217, %222 : vector<4x192xi32>
    %c144_i32 = arith.constant 144 : i32
    %224 = vector.broadcast %c144_i32 : i32 to vector<4x192xi32>
    %225 = arith.cmpi slt, %217, %224 : vector<4x192xi32>
    %226 = arith.andi %223, %225 : vector<4x192xi1>
    %227 = arith.ori %221, %226 : vector<4x192xi1>
    %228 = arith.andi %219, %227 : vector<4x192xi1>
    %cst_73 = arith.constant dense<true> : vector<4x192xi1>
    %229 = arith.xori %219, %cst_73 : vector<4x192xi1>
    %cst_74 = arith.constant dense<true> : vector<4x192xi1>
    %230 = arith.xori %227, %cst_74 : vector<4x192xi1>
    %231 = arith.andi %229, %230 : vector<4x192xi1>
    %232 = arith.ori %228, %231 : vector<4x192xi1>
    %cst_75 = arith.constant 0.000000e+00 : f32
    %233 = vector.broadcast %cst_75 : f32 to vector<4x192xf32>
    %234 = arith.select %232, %215, %233 : vector<4x192xi1>, vector<4x192xf32>
    %235 = vector.extract_strided_slice %234 {offsets = [0, 0], sizes = [2, 96], strides = [1, 1]} : vector<4x192xf32> to vector<2x96xf32>
    %236 = vector.extract_strided_slice %234 {offsets = [2, 0], sizes = [2, 96], strides = [1, 1]} : vector<4x192xf32> to vector<2x96xf32>
    %237 = arith.addf %235, %236 : vector<2x96xf32>
    %238 = vector.extract_strided_slice %234 {offsets = [0, 96], sizes = [2, 96], strides = [1, 1]} : vector<4x192xf32> to vector<2x96xf32>
    %239 = vector.extract_strided_slice %234 {offsets = [2, 96], sizes = [2, 96], strides = [1, 1]} : vector<4x192xf32> to vector<2x96xf32>
    %240 = arith.addf %238, %239 : vector<2x96xf32>
    %241 = tpu.concatenate %237, %240 in 0 : vector<2x96xf32>, vector<2x96xf32> -> vector<4x96xf32>
    %242 = tpu.iota {dimensions = array<i32: 0>} : vector<96x96xi32>
    %243 = tpu.iota {dimensions = array<i32: 1>} : vector<96x96xi32>
    %c15_i32 = arith.constant 15 : i32
    %244 = vector.broadcast %c15_i32 : i32 to vector<96x96xi32>
    %245 = arith.andi %242, %244 : vector<96x96xi32>
    %c15_i32_76 = arith.constant 15 : i32
    %246 = vector.broadcast %c15_i32_76 : i32 to vector<96x96xi32>
    %247 = arith.andi %243, %246 : vector<96x96xi32>
    %248 = arith.cmpi eq, %245, %247 : vector<96x96xi32>
    %249 = arith.extui %248 : vector<96x96xi1> to vector<96x96xi32>
    %250 = arith.sitofp %249 : vector<96x96xi32> to vector<96x96xf32>
    %c4_i32_77 = arith.constant 4 : i32
    %251 = vector.broadcast %c4_i32_77 : i32 to vector<96x96xi32>
    %252 = arith.shrsi %242, %251 : vector<96x96xi32>
    %c4_i32_78 = arith.constant 4 : i32
    %253 = vector.broadcast %c4_i32_78 : i32 to vector<96x96xi32>
    %254 = arith.shrsi %243, %253 : vector<96x96xi32>
    %255 = arith.cmpi eq, %252, %254 : vector<96x96xi32>
    %256 = arith.extui %255 : vector<96x96xi1> to vector<96x96xi32>
    %257 = arith.sitofp %256 : vector<96x96xi32> to vector<96x96xf32>
    %cst_79 = arith.constant 0.000000e+00 : f32
    %258 = vector.broadcast %cst_79 : f32 to vector<4x96xf32>
    %cst_80 = arith.constant dense<0xFF800000> : vector<4xf32>
    %259 = vector.multi_reduction <maximumf>, %258, %cst_80 [1] : vector<4x96xf32> to vector<4xf32>
    %260 = vector.shape_cast %259 : vector<4xf32> to vector<4x1xf32>
    %261 = vector.broadcast %260 : vector<4x1xf32> to vector<4x96xf32>
    %262 = arith.subf %258, %261 : vector<4x96xf32>
    %263 = math.exp %262 : vector<4x96xf32>
    %cst_81 = arith.constant dense<0.000000e+00> : vector<4xf32>
    %264 = vector.multi_reduction <add>, %263, %cst_81 [1] : vector<4x96xf32> to vector<4xf32>
    %265 = vector.shape_cast %264 : vector<4xf32> to vector<4x1xf32>
    %cst_82 = arith.constant 6.250000e-02 : f32
    %266 = vector.broadcast %cst_82 : f32 to vector<4x1xf32>
    %267 = arith.mulf %265, %266 : vector<4x1xf32>
    %268 = vector.broadcast %267 : vector<4x1xf32> to vector<4x96xf32>
    %269 = arith.divf %263, %268 : vector<4x96xf32>
    %270 = arith.mulf %269, %241 : vector<4x96xf32>
    %cst_83 = arith.constant dense<0.000000e+00> : vector<4x96xf32>
    %271 = tpu.matmul %270, %250, %cst_83 {dimension_numbers = #tpu.dot_dimension_numbers<[1], [0], [0], [1], [0, 0, 1, 1], [], []>} : vector<4x96xf32>, vector<96x96xf32>, vector<4x96xf32> -> vector<4x96xf32>
    %272 = arith.mulf %271, %271 : vector<4x96xf32>
    %cst_84 = arith.constant dense<0.000000e+00> : vector<4xf32>
    %273 = vector.multi_reduction <add>, %272, %cst_84 [1] : vector<4x96xf32> to vector<4xf32>
    %274 = vector.shape_cast %273 : vector<4xf32> to vector<4x1xf32>
    %cst_85 = arith.constant 0.166666672 : f32
    %275 = vector.broadcast %cst_85 : f32 to vector<4x1xf32>
    %276 = arith.mulf %274, %275 : vector<4x1xf32>
    %cst_86 = arith.constant 1.000000e+00 : f32
    %277 = vector.broadcast %cst_86 : f32 to vector<4x1xf32>
    %278 = arith.addf %277, %276 : vector<4x1xf32>
    %279 = arith.divf %276, %278 : vector<4x1xf32>
    %cst_87 = arith.constant 9.99999993E-9 : f32
    %280 = vector.broadcast %cst_87 : f32 to vector<4x1xf32>
    %281 = arith.addf %276, %280 : vector<4x1xf32>
    %282 = math.rsqrt %281 : vector<4x1xf32>
    %283 = vector.broadcast %282 : vector<4x1xf32> to vector<4x96xf32>
    %284 = arith.mulf %271, %283 : vector<4x96xf32>
    %285 = vector.broadcast %279 : vector<4x1xf32> to vector<4x96xf32>
    %286 = arith.mulf %285, %284 : vector<4x96xf32>
    %287 = arith.mulf %286, %241 : vector<4x96xf32>
    %cst_88 = arith.constant dense<0.000000e+00> : vector<4x96xf32>
    %288 = tpu.matmul %287, %257, %cst_88 {dimension_numbers = #tpu.dot_dimension_numbers<[1], [0], [0], [1], [0, 0, 1, 1], [], []>} : vector<4x96xf32>, vector<96x96xf32>, vector<4x96xf32> -> vector<4x96xf32>
    %289 = arith.addf %258, %288 : vector<4x96xf32>
    %cst_89 = arith.constant dense<0xFF800000> : vector<4xf32>
    %290 = vector.multi_reduction <maximumf>, %289, %cst_89 [1] : vector<4x96xf32> to vector<4xf32>
    %291 = vector.shape_cast %290 : vector<4xf32> to vector<4x1xf32>
    %292 = vector.broadcast %291 : vector<4x1xf32> to vector<4x96xf32>
    %293 = arith.subf %289, %292 : vector<4x96xf32>
    %294 = math.exp %293 : vector<4x96xf32>
    %cst_90 = arith.constant dense<0.000000e+00> : vector<4xf32>
    %295 = vector.multi_reduction <add>, %294, %cst_90 [1] : vector<4x96xf32> to vector<4xf32>
    %296 = vector.shape_cast %295 : vector<4xf32> to vector<4x1xf32>
    %cst_91 = arith.constant 6.250000e-02 : f32
    %297 = vector.broadcast %cst_91 : f32 to vector<4x1xf32>
    %298 = arith.mulf %296, %297 : vector<4x1xf32>
    %299 = vector.broadcast %298 : vector<4x1xf32> to vector<4x96xf32>
    %300 = arith.divf %294, %299 : vector<4x96xf32>
    %301 = arith.mulf %300, %241 : vector<4x96xf32>
    %cst_92 = arith.constant dense<0.000000e+00> : vector<4x96xf32>
    %302 = tpu.matmul %301, %250, %cst_92 {dimension_numbers = #tpu.dot_dimension_numbers<[1], [0], [0], [1], [0, 0, 1, 1], [], []>} : vector<4x96xf32>, vector<96x96xf32>, vector<4x96xf32> -> vector<4x96xf32>
    %303 = arith.mulf %302, %302 : vector<4x96xf32>
    %cst_93 = arith.constant dense<0.000000e+00> : vector<4xf32>
    %304 = vector.multi_reduction <add>, %303, %cst_93 [1] : vector<4x96xf32> to vector<4xf32>
    %305 = vector.shape_cast %304 : vector<4xf32> to vector<4x1xf32>
    %cst_94 = arith.constant 0.166666672 : f32
    %306 = vector.broadcast %cst_94 : f32 to vector<4x1xf32>
    %307 = arith.mulf %305, %306 : vector<4x1xf32>
    %cst_95 = arith.constant 1.000000e+00 : f32
    %308 = vector.broadcast %cst_95 : f32 to vector<4x1xf32>
    %309 = arith.addf %308, %307 : vector<4x1xf32>
    %310 = arith.divf %307, %309 : vector<4x1xf32>
    %cst_96 = arith.constant 9.99999993E-9 : f32
    %311 = vector.broadcast %cst_96 : f32 to vector<4x1xf32>
    %312 = arith.addf %307, %311 : vector<4x1xf32>
    %313 = math.rsqrt %312 : vector<4x1xf32>
    %314 = vector.broadcast %313 : vector<4x1xf32> to vector<4x96xf32>
    %315 = arith.mulf %302, %314 : vector<4x96xf32>
    %316 = vector.broadcast %310 : vector<4x1xf32> to vector<4x96xf32>
    %317 = arith.mulf %316, %315 : vector<4x96xf32>
    %318 = arith.mulf %317, %241 : vector<4x96xf32>
    %cst_97 = arith.constant dense<0.000000e+00> : vector<4x96xf32>
    %319 = tpu.matmul %318, %257, %cst_97 {dimension_numbers = #tpu.dot_dimension_numbers<[1], [0], [0], [1], [0, 0, 1, 1], [], []>} : vector<4x96xf32>, vector<96x96xf32>, vector<4x96xf32> -> vector<4x96xf32>
    %320 = arith.addf %289, %319 : vector<4x96xf32>
    %cst_98 = arith.constant dense<0xFF800000> : vector<4xf32>
    %321 = vector.multi_reduction <maximumf>, %320, %cst_98 [1] : vector<4x96xf32> to vector<4xf32>
    %322 = vector.shape_cast %321 : vector<4xf32> to vector<4x1xf32>
    %323 = vector.broadcast %322 : vector<4x1xf32> to vector<4x96xf32>
    %324 = arith.subf %320, %323 : vector<4x96xf32>
    %325 = math.exp %324 : vector<4x96xf32>
    %cst_99 = arith.constant dense<0.000000e+00> : vector<4xf32>
    %326 = vector.multi_reduction <add>, %325, %cst_99 [1] : vector<4x96xf32> to vector<4xf32>
    %327 = vector.shape_cast %326 : vector<4xf32> to vector<4x1xf32>
    %cst_100 = arith.constant 6.250000e-02 : f32
    %328 = vector.broadcast %cst_100 : f32 to vector<4x1xf32>
    %329 = arith.mulf %327, %328 : vector<4x1xf32>
    %330 = vector.broadcast %329 : vector<4x1xf32> to vector<4x96xf32>
    %331 = arith.divf %325, %330 : vector<4x96xf32>
    %332 = arith.mulf %331, %241 : vector<4x96xf32>
    %cst_101 = arith.constant dense<0.000000e+00> : vector<4x96xf32>
    %333 = tpu.matmul %332, %250, %cst_101 {dimension_numbers = #tpu.dot_dimension_numbers<[1], [0], [0], [1], [0, 0, 1, 1], [], []>} : vector<4x96xf32>, vector<96x96xf32>, vector<4x96xf32> -> vector<4x96xf32>
    %334 = arith.mulf %333, %333 : vector<4x96xf32>
    %cst_102 = arith.constant dense<0.000000e+00> : vector<4xf32>
    %335 = vector.multi_reduction <add>, %334, %cst_102 [1] : vector<4x96xf32> to vector<4xf32>
    %336 = vector.shape_cast %335 : vector<4xf32> to vector<4x1xf32>
    %cst_103 = arith.constant 0.166666672 : f32
    %337 = vector.broadcast %cst_103 : f32 to vector<4x1xf32>
    %338 = arith.mulf %336, %337 : vector<4x1xf32>
    %cst_104 = arith.constant 1.000000e+00 : f32
    %339 = vector.broadcast %cst_104 : f32 to vector<4x1xf32>
    %340 = arith.addf %339, %338 : vector<4x1xf32>
    %341 = arith.divf %338, %340 : vector<4x1xf32>
    %cst_105 = arith.constant 9.99999993E-9 : f32
    %342 = vector.broadcast %cst_105 : f32 to vector<4x1xf32>
    %343 = arith.addf %338, %342 : vector<4x1xf32>
    %344 = math.rsqrt %343 : vector<4x1xf32>
    %345 = vector.broadcast %344 : vector<4x1xf32> to vector<4x96xf32>
    %346 = arith.mulf %333, %345 : vector<4x96xf32>
    %347 = vector.broadcast %341 : vector<4x1xf32> to vector<4x96xf32>
    %348 = arith.mulf %347, %346 : vector<4x96xf32>
    %349 = arith.mulf %348, %241 : vector<4x96xf32>
    %cst_106 = arith.constant dense<0.000000e+00> : vector<4x96xf32>
    %350 = tpu.matmul %349, %257, %cst_106 {dimension_numbers = #tpu.dot_dimension_numbers<[1], [0], [0], [1], [0, 0, 1, 1], [], []>} : vector<4x96xf32>, vector<96x96xf32>, vector<4x96xf32> -> vector<4x96xf32>
    %351 = arith.addf %320, %350 : vector<4x96xf32>
    %cst_107 = arith.constant dense<0xFF800000> : vector<4xf32>
    %352 = vector.multi_reduction <maximumf>, %351, %cst_107 [1] : vector<4x96xf32> to vector<4xf32>
    %353 = vector.shape_cast %352 : vector<4xf32> to vector<4x1xf32>
    %354 = vector.broadcast %353 : vector<4x1xf32> to vector<4x96xf32>
    %355 = arith.subf %351, %354 : vector<4x96xf32>
    %356 = math.exp %355 : vector<4x96xf32>
    %cst_108 = arith.constant dense<0.000000e+00> : vector<4xf32>
    %357 = vector.multi_reduction <add>, %356, %cst_108 [1] : vector<4x96xf32> to vector<4xf32>
    %358 = vector.shape_cast %357 : vector<4xf32> to vector<4x1xf32>
    %cst_109 = arith.constant 6.250000e-02 : f32
    %359 = vector.broadcast %cst_109 : f32 to vector<4x1xf32>
    %360 = arith.mulf %358, %359 : vector<4x1xf32>
    %361 = vector.broadcast %360 : vector<4x1xf32> to vector<4x96xf32>
    %362 = arith.divf %356, %361 : vector<4x96xf32>
    %363 = arith.mulf %362, %241 : vector<4x96xf32>
    %cst_110 = arith.constant dense<0.000000e+00> : vector<4x96xf32>
    %364 = tpu.matmul %363, %250, %cst_110 {dimension_numbers = #tpu.dot_dimension_numbers<[1], [0], [0], [1], [0, 0, 1, 1], [], []>} : vector<4x96xf32>, vector<96x96xf32>, vector<4x96xf32> -> vector<4x96xf32>
    %365 = arith.mulf %364, %364 : vector<4x96xf32>
    %cst_111 = arith.constant dense<0.000000e+00> : vector<4xf32>
    %366 = vector.multi_reduction <add>, %365, %cst_111 [1] : vector<4x96xf32> to vector<4xf32>
    %367 = vector.shape_cast %366 : vector<4xf32> to vector<4x1xf32>
    %cst_112 = arith.constant 0.166666672 : f32
    %368 = vector.broadcast %cst_112 : f32 to vector<4x1xf32>
    %369 = arith.mulf %367, %368 : vector<4x1xf32>
    %cst_113 = arith.constant 1.000000e+00 : f32
    %370 = vector.broadcast %cst_113 : f32 to vector<4x1xf32>
    %371 = arith.addf %370, %369 : vector<4x1xf32>
    %372 = arith.divf %369, %371 : vector<4x1xf32>
    %cst_114 = arith.constant 9.99999993E-9 : f32
    %373 = vector.broadcast %cst_114 : f32 to vector<4x1xf32>
    %374 = arith.addf %369, %373 : vector<4x1xf32>
    %375 = math.rsqrt %374 : vector<4x1xf32>
    %376 = vector.broadcast %375 : vector<4x1xf32> to vector<4x96xf32>
    %377 = arith.mulf %364, %376 : vector<4x96xf32>
    %378 = vector.broadcast %372 : vector<4x1xf32> to vector<4x96xf32>
    %379 = arith.mulf %378, %377 : vector<4x96xf32>
    %380 = arith.mulf %379, %241 : vector<4x96xf32>
    %cst_115 = arith.constant dense<0.000000e+00> : vector<4x96xf32>
    %381 = tpu.matmul %380, %257, %cst_115 {dimension_numbers = #tpu.dot_dimension_numbers<[1], [0], [0], [1], [0, 0, 1, 1], [], []>} : vector<4x96xf32>, vector<96x96xf32>, vector<4x96xf32> -> vector<4x96xf32>
    %382 = arith.addf %351, %381 : vector<4x96xf32>
    %cst_116 = arith.constant dense<0xFF800000> : vector<4xf32>
    %383 = vector.multi_reduction <maximumf>, %382, %cst_116 [1] : vector<4x96xf32> to vector<4xf32>
    %384 = vector.shape_cast %383 : vector<4xf32> to vector<4x1xf32>
    %385 = vector.broadcast %384 : vector<4x1xf32> to vector<4x96xf32>
    %386 = arith.subf %382, %385 : vector<4x96xf32>
    %387 = math.exp %386 : vector<4x96xf32>
    %cst_117 = arith.constant dense<0.000000e+00> : vector<4xf32>
    %388 = vector.multi_reduction <add>, %387, %cst_117 [1] : vector<4x96xf32> to vector<4xf32>
    %389 = vector.shape_cast %388 : vector<4xf32> to vector<4x1xf32>
    %cst_118 = arith.constant 6.250000e-02 : f32
    %390 = vector.broadcast %cst_118 : f32 to vector<4x1xf32>
    %391 = arith.mulf %389, %390 : vector<4x1xf32>
    %392 = vector.broadcast %391 : vector<4x1xf32> to vector<4x96xf32>
    %393 = arith.divf %387, %392 : vector<4x96xf32>
    %394 = arith.mulf %393, %241 : vector<4x96xf32>
    %cst_119 = arith.constant dense<0.000000e+00> : vector<4x96xf32>
    %395 = tpu.matmul %394, %250, %cst_119 {dimension_numbers = #tpu.dot_dimension_numbers<[1], [0], [0], [1], [0, 0, 1, 1], [], []>} : vector<4x96xf32>, vector<96x96xf32>, vector<4x96xf32> -> vector<4x96xf32>
    %396 = arith.mulf %395, %395 : vector<4x96xf32>
    %cst_120 = arith.constant dense<0.000000e+00> : vector<4xf32>
    %397 = vector.multi_reduction <add>, %396, %cst_120 [1] : vector<4x96xf32> to vector<4xf32>
    %398 = vector.shape_cast %397 : vector<4xf32> to vector<4x1xf32>
    %cst_121 = arith.constant 0.166666672 : f32
    %399 = vector.broadcast %cst_121 : f32 to vector<4x1xf32>
    %400 = arith.mulf %398, %399 : vector<4x1xf32>
    %cst_122 = arith.constant 1.000000e+00 : f32
    %401 = vector.broadcast %cst_122 : f32 to vector<4x1xf32>
    %402 = arith.addf %401, %400 : vector<4x1xf32>
    %403 = arith.divf %400, %402 : vector<4x1xf32>
    %cst_123 = arith.constant 9.99999993E-9 : f32
    %404 = vector.broadcast %cst_123 : f32 to vector<4x1xf32>
    %405 = arith.addf %400, %404 : vector<4x1xf32>
    %406 = math.rsqrt %405 : vector<4x1xf32>
    %407 = vector.broadcast %406 : vector<4x1xf32> to vector<4x96xf32>
    %408 = arith.mulf %395, %407 : vector<4x96xf32>
    %409 = vector.broadcast %403 : vector<4x1xf32> to vector<4x96xf32>
    %410 = arith.mulf %409, %408 : vector<4x96xf32>
    %411 = vector.extract_strided_slice %410 {offsets = [0, 0], sizes = [4, 16], strides = [1, 1]} : vector<4x96xf32> to vector<4x16xf32>
    %412 = vector.extract_strided_slice %411 {offsets = [0, 0], sizes = [2, 16], strides = [1, 1]} : vector<4x16xf32> to vector<2x16xf32>
    %c0_124 = arith.constant 0 : index
    %c0_125 = arith.constant 0 : index
    %413 = vector.load %arg8[%c0_124, %c0_125] : memref<40x2xf32, #tpu.memory_space<vmem>>, vector<16x2xf32>
    %cst_126 = arith.constant dense<0.000000e+00> : vector<2x2xf32>
    %414 = tpu.matmul %412, %413, %cst_126 {dimension_numbers = #tpu.dot_dimension_numbers<[1], [0], [0], [1], [0, 0, 1, 1], [], []>} : vector<2x16xf32>, vector<16x2xf32>, vector<2x2xf32> -> vector<2x2xf32>
    %415 = vector.extract_strided_slice %411 {offsets = [2, 0], sizes = [2, 16], strides = [1, 1]} : vector<4x16xf32> to vector<2x16xf32>
    %c16 = arith.constant 16 : index
    %c0_127 = arith.constant 0 : index
    %416 = vector.load %arg8[%c16, %c0_127] : memref<40x2xf32, #tpu.memory_space<vmem>>, vector<16x2xf32>
    %cst_128 = arith.constant dense<0.000000e+00> : vector<2x2xf32>
    %417 = tpu.matmul %415, %416, %cst_128 {dimension_numbers = #tpu.dot_dimension_numbers<[1], [0], [0], [1], [0, 0, 1, 1], [], []>} : vector<2x16xf32>, vector<16x2xf32>, vector<2x2xf32> -> vector<2x2xf32>
    %418 = arith.addf %414, %417 : vector<2x2xf32>
    %c32_129 = arith.constant 32 : index
    %c0_130 = arith.constant 0 : index
    %419 = vector.load %arg8[%c32_129, %c0_130] : memref<40x2xf32, #tpu.memory_space<vmem>>, vector<1x2xf32>
    %420 = vector.broadcast %419 : vector<1x2xf32> to vector<2x2xf32>
    %421 = arith.addf %418, %420 : vector<2x2xf32>
    %c0_131 = arith.constant 0 : index
    %c0_132 = arith.constant 0 : index
    %422 = vector.load %arg9[%c0_131, %c0_132] : memref<2x2xf32, #tpu.memory_space<vmem>>, vector<2x2xf32>
    tpu.vector_store %arg9[%c0_131, %c0_132], %421 {strides = array<i32>} : memref<2x2xf32, #tpu.memory_space<vmem>>, vector<2x2xf32>,
    return
  }
  func.func @transform_0(%arg0: i32) -> (i32, i32) {
    %c0_i32 = arith.constant 0 : i32
    %c0_i32_0 = arith.constant 0 : i32
    %c0_i32_1 = arith.constant 0 : i32
    return %c0_i32, %c0_i32_0 : i32, i32
  }
  func.func @transform_1(%arg0: i32) -> (i32, i32) {
    %c0_i32 = arith.constant 0 : i32
    %c0_i32_0 = arith.constant 0 : i32
    %c0_i32_1 = arith.constant 0 : i32
    return %c0_i32, %c0_i32_0 : i32, i32
  }
  func.func @transform_2(%arg0: i32) -> (i32, i32) {
    %c0_i32 = arith.constant 0 : i32
    %c0_i32_0 = arith.constant 0 : i32
    %c0_i32_1 = arith.constant 0 : i32
    return %c0_i32, %c0_i32_0 : i32, i32
  }
  func.func @transform_3(%arg0: i32) -> (i32, i32) {
    %c0_i32 = arith.constant 0 : i32
    %c0_i32_0 = arith.constant 0 : i32
    %c0_i32_1 = arith.constant 0 : i32
    return %c0_i32, %c0_i32_0 : i32, i32
  }
  func.func @transform_4(%arg0: i32) -> (i32, i32) {
    %c0_i32 = arith.constant 0 : i32
    %c0_i32_0 = arith.constant 0 : i32
    %c0_i32_1 = arith.constant 0 : i32
    return %c0_i32, %c0_i32_0 : i32, i32
  }
  func.func @transform_5(%arg0: i32) -> (i32, i32) {
    %c0_i32 = arith.constant 0 : i32
    %c0_i32_0 = arith.constant 0 : i32
    %c0_i32_1 = arith.constant 0 : i32
    return %c0_i32, %c0_i32_0 : i32, i32
  }
  func.func @transform_6(%arg0: i32) -> (i32, i32) {
    %c0_i32 = arith.constant 0 : i32
    %c0_i32_0 = arith.constant 0 : i32
    %c0_i32_1 = arith.constant 0 : i32
    return %c0_i32, %c0_i32_0 : i32, i32
  }
  func.func @transform_7(%arg0: i32) -> (i32, i32) {
    %c0_i32 = arith.constant 0 : i32
    %c0_i32_0 = arith.constant 0 : i32
    %c0_i32_1 = arith.constant 0 : i32
    return %c0_i32, %c0_i32_0 : i32, i32
  }
  func.func @transform_8(%arg0: i32) -> (i32, i32) {
    %c0_i32 = arith.constant 0 : i32
    %c0_i32_0 = arith.constant 0 : i32
    %c0_i32_1 = arith.constant 0 : i32
    return %c0_i32, %c0_i32_0 : i32, i32
  }
}

</mosaic_0001>

<bundles_post_ra>
// kernel: classifier_forward.1
= control target key start
LH: loop header
LB: loop body
LE: loop exit
PB: predicated region body
PF: predicated region fallthrough
CT: control target
= control target key end

     0   :  { %v6930_v30 = vlaneseq  ;;  %vm6935_vm1 = vcmask 785408   ;;  %v6928_v59 = vmov 0.0   ;;  %s6919_s0 = inlined_call_operand.vmem [shape: f32[64,96], index: 0, kind: input, shape index: {}]   ;;  %s6920_s1 = inlined_call_operand.vmem [shape: f32[480,192], index: 1, kind: input, shape index: {}]   ;;  %s6921_s2 = inlined_call_operand.vmem [shape: f32[72,192], index: 2, kind: input, shape index: {}]   ;;  %s6922_s3 = inlined_call_operand.vmem [shape: f32[288,384], index: 3, kind: input, shape index: {}]   ;;  %s6923_s4 = inlined_call_operand.vmem [shape: f32[64,128], index: 4, kind: input, shape index: {}]   ;;  %s6924_s5 = inlined_call_operand.vmem [shape: f32[16,384], index: 5, kind: input, shape index: {}]   ;;  %s6925_s6 = inlined_call_operand.vmem [shape: f32[96,192], index: 6, kind: input, shape index: {}]   ;;  %s6926_s7 = inlined_call_operand.vmem [shape: f32[40,2], index: 7, kind: input, shape index: {}]   ;;  %s6927_s8 = inlined_call_operand.hbm [shape: f32[2,2], index: 8, kind: output, shape index: {}]  }
   0x1   :  { %v104_v0 = vld [vmem:[%s6920_s1 + $0x178] sm:$0xff]  ;;  %v103_v2 = vld [vmem:[%s6920_s1 + $0x170] sm:$0xff]  ;;  %v102_v4 = vld [vmem:[%s6920_s1 + $0x168] sm:$0xff]  ;;  %194 = vmatprep.mubr.f32.mxu0 %v6928_v59  ;;  %331 = vmatprep.mubr.f32.mxu1 %v6928_v59 }
   0x2   :  { %v61_v1 = vld [vmem:[%s6920_s1 + $0xb8] sm:$0xff]  ;;  %138 = vmatprep.subr.mxu0 %v104_v0  ;;  %v60_v3 = vld [vmem:[%s6920_s1 + $0xb0] sm:$0xff]  ;;  %v59_v5 = vld [vmem:[%s6920_s1 + $0xa8] sm:$0xff]  ;;  %v4782_v41 = vshrl.u32 %v6930_v30, 7 }
   0x3   :  { %275 = vmatprep.subr.mxu1 %v61_v1  ;;  %139 = vmatpush1.msra.mxu0 %v103_v2  ;;  %v101_v6 = vld [vmem:[%s6920_s1 + $0x160] sm:$0xff]  ;;  %v100_v8 = vld [vmem:[%s6920_s1 + $0x158] sm:$0xff]  ;;  %v99_v10 = vld [vmem:[%s6920_s1 + $0x150] sm:$0xff] }
   0x4   :  { %276 = vmatpush1.msra.mxu1 %v60_v3  ;;  %v58_v7 = vld [vmem:[%s6920_s1 + $0xa0] sm:$0xff]  ;;  %140 = vmatprep.subr.mxu0 %v102_v4  ;;  %v57_v9 = vld [vmem:[%s6920_s1 + $0x98] sm:$0xff]  ;;  %v56_v11 = vld [vmem:[%s6920_s1 + $0x90] sm:$0xff]  ;;  %6967 = vst [vmem:[#allocation5_spill] sm:$0xff] %v4782_v41  ;;  %vm72_vm0 = vcmp.lt.s32.totalorder %v4782_v41, 7  ;;  %vm776_vm2 = vcmp.lt.s32.totalorder %v4782_v41, 4 }
   0x5   :  { %277 = vmatprep.subr.mxu1 %v59_v5  ;;  %141 = vmatpush1.msra.mxu0 %v101_v6  ;;  %v98_v12 = vld [vmem:[%s6920_s1 + $0x148] sm:$0xff]  ;;  %v97_v14 = vld [vmem:[%s6920_s1 + $0x140] sm:$0xff]  ;;  %v96_v16 = vld [vmem:[%s6920_s1 + $0x138] sm:$0xff] }
   0x6   :  { %278 = vmatpush1.msra.mxu1 %v58_v7  ;;  %v55_v13 = vld [vmem:[%s6920_s1 + $0x88] sm:$0xff]  ;;  %142 = vmatprep.subr.mxu0 %v100_v8  ;;  %v54_v15 = vld [vmem:[%s6920_s1 + $0x80] sm:$0xff]  ;;  %v53_v17 = vld [vmem:[%s6920_s1 + $0x78] sm:$0xff] }
   0x7   :  { %279 = vmatprep.subr.mxu1 %v57_v9  ;;  %143 = vmatpush1.msra.mxu0 %v99_v10  ;;  %v95_v18 = vld [vmem:[%s6920_s1 + $0x130] sm:$0xff]  ;;  %v94_v20 = vld [vmem:[%s6920_s1 + $0x128] sm:$0xff]  ;;  %v93_v22 = vld [vmem:[%s6920_s1 + $0x120] sm:$0xff] }
   0x8   :  { %280 = vmatpush1.msra.mxu1 %v56_v11  ;;  %144 = vmatprep.subr.mxu0 %v98_v12  ;;  %v52_v19 = vld [vmem:[%s6920_s1 + $0x70] sm:$0xff]  ;;  %v51_v21 = vld [vmem:[%s6920_s1 + $0x68] sm:$0xff]  ;;  %v50_v23 = vld [vmem:[%s6920_s1 + $0x60] sm:$0xff] }
   0x9   :  { %281 = vmatprep.subr.mxu1 %v55_v13  ;;  %145 = vmatpush1.msra.mxu0 %v97_v14  ;;  %v92_v24 = vld [vmem:[%s6920_s1 + $0x118] sm:$0xff]  ;;  %v91_v26 = vld [vmem:[%s6920_s1 + $0x110] sm:$0xff]  ;;  %v90_v28 = vld [vmem:[%s6920_s1 + $0x108] sm:$0xff] }
   0xa   :  { %282 = vmatpush1.msra.mxu1 %v54_v15  ;;  %146 = vmatprep.subr.mxu0 %v96_v16  ;;  %v49_v25 = vld [vmem:[%s6920_s1 + $0x58] sm:$0xff]  ;;  %v48_v27 = vld [vmem:[%s6920_s1 + $0x50] sm:$0xff]  ;;  %v47_v29 = vld [vmem:[%s6920_s1 + $0x48] sm:$0xff] }
   0xb   :  { %283 = vmatprep.subr.mxu1 %v53_v17  ;;  %147 = vmatpush1.msra.mxu0 %v95_v18  ;;  %v89_v31 = vld [vmem:[%s6920_s1 + $0x100] sm:$0xff]  ;;  %v88_v33 = vld [vmem:[%s6920_s1 + $0xf8] sm:$0xff]  ;;  %v87_v35 = vld [vmem:[%s6920_s1 + $0xf0] sm:$0xff] }
   0xc   :  { %284 = vmatpush1.msra.mxu1 %v52_v19  ;;  %148 = vmatprep.subr.mxu0 %v94_v20  ;;  %v46_v32 = vld [vmem:[%s6920_s1 + $0x40] sm:$0xff]  ;;  %v45_v34 = vld [vmem:[%s6920_s1 + $0x38] sm:$0xff]  ;;  %v44_v36 = vld [vmem:[%s6920_s1 + $0x30] sm:$0xff] }
   0xd   :  { %285 = vmatprep.subr.mxu1 %v51_v21  ;;  %149 = vmatpush1.msra.mxu0 %v93_v22  ;;  %v86_v37 = vld [vmem:[%s6920_s1 + $0xe8] sm:$0xff]  ;;  %v4774_v39 = vld [vmem:[%s6919_s0] sm:$0xff]  ;;  %v84_v44 = vld [vmem:[%s6920_s1 + $0xd8] sm:$0xff] }
   0xe   :  { %286 = vmatpush1.msra.mxu1 %v50_v23  ;;  %150 = vmatprep.subr.mxu0 %v92_v24  ;;  %v43_v38 = vld [vmem:[%s6920_s1 + $0x28] sm:$0xff]  ;;  %v85_v42 = vld [vmem:[%s6920_s1 + $0xe0] sm:$0xff]  ;;  %v41_v45 = vld [vmem:[%s6920_s1 + $0x18] sm:$0xff]  ;;  %v62_v48 = vrot.slane %v4774_v39, 1  ;;  %v768_v57 = vrot.slane %v4774_v39, 4 }
   0xf   :  { %287 = vmatprep.subr.mxu1 %v49_v25  ;;  %151 = vmatpush1.msra.mxu0 %v91_v26  ;;  %v4779_v40 = vld [vmem:[%s6919_s0 + $0x8] sm:$0xff]  ;;  %v42_v43 = vld [vmem:[%s6920_s1 + $0x20] sm:$0xff]  ;;  %v83_v46 = vld [vmem:[%s6920_s1 + $0xd0] sm:$0xff] }
  0x10   :  { %288 = vmatpush1.msra.mxu1 %v48_v27  ;;  %152 = vmatprep.subr.mxu0 %v90_v28  ;;  %v40_v47 = vld [vmem:[%s6920_s1 + $0x10] sm:$0xff]  ;;  %v63_v49 = vrot.slane %v4779_v40, 1  ;;  %v82_v50 = vld [vmem:[%s6920_s1 + $0xc8] sm:$0xff]  ;;  %v81_v53 = vld [vmem:[%s6920_s1 + $0xc0] sm:$0xff]  ;;  %v769_v58 = vrot.slane %v4779_v40, 4 }
  0x11   :  { %289 = vmatprep.subr.mxu1 %v47_v29  ;;  %153 = vmatpush1.msra.mxu0 %v89_v31  ;;  %v39_v51 = vld [vmem:[%s6920_s1 + $0x8] sm:$0xff]  ;;  %v4814_v52 = vld [vmem:[%s6919_s0 + $0x10] sm:$0xff]  ;;  %v38_v54 = vld [vmem:[%s6920_s1] sm:$0xff] }
  0x12   :  { %290 = vmatpush1.msra.mxu1 %v46_v32  ;;  %154 = vmatprep.subr.mxu0 %v88_v33  ;;  %v79_v55 = vsel %vm72_vm0, %v62_v48, %v63_v49  ;;  %v64_v56 = vrot.slane %v4814_v52, 1  ;;  %v420_v60 = vld [vmem:[%s6920_s1 + $0x238] sm:$0xff]  ;;  %v419_v62 = vld [vmem:[%s6920_s1 + $0x230] sm:$0xff]  ;;  %v4846_v63 = vld [vmem:[%s6919_s0 + $0x20] sm:$0xff]  ;;  %v4850_v0 = vsel %vm776_vm2, %v768_v57, %v769_v58  ;;  %v770_v1 = vrot.slane %v4814_v52, 4 }
  0x13   :  { %291 = vmatprep.subr.mxu1 %v45_v34  ;;  %155 = vmatpush1.msra.mxu0 %v87_v35  ;;  %v4837_v61 = vld [vmem:[%s6919_s0 + $0x18] sm:$0xff]  ;;  %v418_v2 = vld [vmem:[%s6920_s1 + $0x228] sm:$0xff]  ;;  %v772_v5 = vrot.slane %v4846_v63, 4  ;;  %v417_v9 = vld [vmem:[%s6920_s1 + $0x220] sm:$0xff]  ;;  %v66_v22 = vrot.slane %v4846_v63, 1 }
  0x14   :  { %292 = vmatpush1.msra.mxu1 %v44_v36  ;;  %156 = vmatprep.subr.mxu0 %v86_v37  ;;  %v614_v3 = vld [vmem:[%s6920_s1 + $0x2f8] sm:$0xff]  ;;  %v771_v4 = vrot.slane %v4837_v61, 4  ;;  %v78_v6 = vsel %vm72_vm0, %v63_v49, %v64_v56  ;;  %v65_v7 = vrot.slane %v4837_v61, 1  ;;  %v4871_v8 = vld [vmem:[%s6919_s0 + $0x28] sm:$0xff]  ;;  %v4880_v10 = vld [vmem:[%s6919_s0 + $0x30] sm:$0xff]  ;;  %v4884_v11 = vsel %vm776_vm2, %v769_v58, %v770_v1 }
  0x15   :  { %293 = vmatprep.subr.mxu1 %v43_v38  ;;  %157 = vmatpush1.msra.mxu0 %v85_v42  ;;  %v773_v14 = vrot.slane %v4871_v8, 4  ;;  %v416_v15 = vld [vmem:[%s6920_s1 + $0x218] sm:$0xff]  ;;  %v774_v16 = vrot.slane %v4880_v10, 4  ;;  %v415_v17 = vld [vmem:[%s6920_s1 + $0x210] sm:$0xff]  ;;  %v414_v25 = vld [vmem:[%s6920_s1 + $0x208] sm:$0xff]  ;;  %v67_v35 = vrot.slane %v4871_v8, 1 }
  0x16   :  { %294 = vmatpush1.msra.mxu1 %v42_v43  ;;  %158 = vmatprep.subr.mxu0 %v84_v44  ;;  %v4888_v12 = vsel %vm776_vm2, %v770_v1, %v771_v4  ;;  %v4892_v13 = vsel %vm776_vm2, %v771_v4, %v772_v5  ;;  %v613_v18 = vld [vmem:[%s6920_s1 + $0x2f0] sm:$0xff]  ;;  %v4911_v19 = vld [vmem:[%s6919_s0 + $0x38] sm:$0xff]  ;;  %v77_v21 = vsel %vm72_vm0, %v64_v56, %v65_v7  ;;  %v413_v26 = vld [vmem:[%s6920_s1 + $0x200] sm:$0xff] }
  0x17   :  { %295 = vmatprep.subr.mxu1 %v41_v45  ;;  %159 = vmatpush1.msra.mxu0 %v83_v46  ;;  %v4915_v20 = vsel %vm776_vm2, %v772_v5, %v773_v14  ;;  %v4923_v23 = vsel %vm776_vm2, %v773_v14, %v774_v16  ;;  %v775_v24 = vrot.slane %v4911_v19, 4  ;;  %v412_v27 = vld [vmem:[%s6920_s1 + $0x1f8] sm:$0xff]  ;;  %v612_v28 = vld [vmem:[%s6920_s1 + $0x2e8] sm:$0xff]  ;;  %v76_v32 = vsel %vm72_vm0, %v65_v7, %v66_v22  ;;  %v411_v33 = vld [vmem:[%s6920_s1 + $0x1f0] sm:$0xff] }
  0x18   :  { %296 = vmatpush1.msra.mxu1 %v40_v47  ;;  %160 = vmatprep.subr.mxu0 %v82_v50  ;;  %v611_v34 = vld [vmem:[%s6920_s1 + $0x2e0] sm:$0xff]  ;;  %v410_v36 = vld [vmem:[%s6920_s1 + $0x1e8] sm:$0xff]  ;;  %v610_v37 = vld [vmem:[%s6920_s1 + $0x2d8] sm:$0xff]  ;;  %v75_v43 = vsel %vm72_vm0, %v66_v22, %v67_v35  ;;  %v68_v46 = vrot.slane %v4880_v10, 1 }
  0x19   :  { %297 = vmatprep.subr.mxu1 %v39_v51  ;;  %161 = vmatpush1.msra.mxu0 %v81_v53  ;;  %v4944_v29 = vsel %vm776_vm2, %v774_v16, %v775_v24  ;;  %v4948_v31 = vsel %vm776_vm2, %v775_v24, %v768_v57  ;;  %v409_v38 = vld [vmem:[%s6920_s1 + $0x1e0] sm:$0xff]  ;;  %v609_v42 = vld [vmem:[%s6920_s1 + $0x2d0] sm:$0xff]  ;;  %v408_v44 = vld [vmem:[%s6920_s1 + $0x1d8] sm:$0xff] }
  0x1a   :  { %298 = vmatpush1.msra.mxu1 %v38_v54  ;;  %3788 = vmatmul.mubr.msk.f32.vlgmr.msra.gmra.mxu0 %vm6935_vm1, %v79_v55  ;;  %v608_v45 = vld [vmem:[%s6920_s1 + $0x2c8] sm:$0xff]  ;;  %v407_v47 = vld [vmem:[%s6920_s1 + $0x1d0] sm:$0xff]  ;;  %v607_v49 = vld [vmem:[%s6920_s1 + $0x2c0] sm:$0xff] }
  0x1b   :  { %3796 = vmatmul.mubr.msk.f32.vlgmr.msra.gmra.mxu1 %vm6935_vm1, %v4774_v39  ;;  %453 = vmatprep.subr.mxu0 %v420_v60 }
  0x1c   :  { %200 = vmatprep.mubr.f32.mxu0 %v6928_v59  ;;  %454 = vmatpush1.msra.mxu0 %v419_v62 }
  0x1d   :  { %337 = vmatprep.mubr.f32.mxu1 %v6928_v59  ;;  %455 = vmatprep.subr.mxu0 %v418_v2 }
  0x1e   :  { %647 = vmatprep.subr.mxu1 %v614_v3  ;;  %3789 = vmatmul.mubr.msk.f32.gmra.mxu0 %vm6935_vm1, %v78_v6 }
  0x1f   :  { %3797 = vmatmul.mubr.msk.f32.gmra.mxu1 %vm6935_vm1, %v4779_v40  ;;  %456 = vmatpush1.msra.mxu0 %v417_v9 }
  0x20   :  { %206 = vmatprep.mubr.f32.mxu0 %v6928_v59  ;;  %457 = vmatprep.subr.mxu0 %v416_v15 }
  0x21   :  { %343 = vmatprep.mubr.f32.mxu1 %v6928_v59  ;;  %458 = vmatpush1.msra.mxu0 %v415_v17 }
  0x22   :  { %648 = vmatpush1.msra.mxu1 %v613_v18  ;;  %3790 = vmatmul.mubr.msk.f32.gmra.mxu0 %vm6935_vm1, %v77_v21 }
  0x23   :  { %3798 = vmatmul.mubr.msk.f32.gmra.mxu1 %vm6935_vm1, %v4814_v52  ;;  %459 = vmatprep.subr.mxu0 %v414_v25 }
  0x24   :  { %212 = vmatprep.mubr.f32.mxu0 %v6928_v59  ;;  %460 = vmatpush1.msra.mxu0 %v413_v26 }
  0x25   :  { %349 = vmatprep.mubr.f32.mxu1 %v6928_v59  ;;  %461 = vmatprep.subr.mxu0 %v412_v27 }
  0x26   :  { %649 = vmatprep.subr.mxu1 %v612_v28  ;;  %3791 = vmatmul.mubr.msk.f32.gmra.mxu0 %vm6935_vm1, %v76_v32 }
  0x27   :  { %3799 = vmatmul.mubr.msk.f32.gmra.mxu1 %vm6935_vm1, %v4837_v61  ;;  %462 = vmatpush1.msra.mxu0 %v411_v33 }
  0x28   :  { %650 = vmatpush1.msra.mxu1 %v611_v34  ;;  %463 = vmatprep.subr.mxu0 %v410_v36 }
  0x29   :  { %651 = vmatprep.subr.mxu1 %v610_v37  ;;  %218 = vmatprep.mubr.f32.mxu0 %v6928_v59 }
  0x2a   :  { %355 = vmatprep.mubr.f32.mxu1 %v6928_v59  ;;  %464 = vmatpush1.msra.mxu0 %v409_v38 }
  0x2b   :  { %652 = vmatpush1.msra.mxu1 %v609_v42 }
  0x2c   :  { %13 = vsyncpa [#allocation3], 0  ;;  %3792 = vmatmul.mubr.msk.f32.gmra.mxu0 %vm6935_vm1, %v75_v43  ;;  %3800 = vmatmul.mubr.msk.f32.gmra.mxu1 %vm6935_vm1, %v4846_v63  ;;  %v606_v50 = vld [vmem:[%s6920_s1 + $0x2b8] sm:$0xff]  ;;  %v406_v51 = vld [vmem:[%s6920_s1 + $0x1c8] sm:$0xff]  ;;  %v74_v54 = vsel %vm72_vm0, %v67_v35, %v68_v46  ;;  %v69_v58 = vrot.slane %v4911_v19, 1  ;;  %v380_v18 = vrot.slane %v4774_v39, 2 }
  0x2d   :  { %465 = vmatprep.subr.mxu0 %v408_v44  ;;  %653 = vmatprep.subr.mxu1 %v608_v45  ;;  %v605_v53 = vld [vmem:[%s6920_s1 + $0x2b0] sm:$0xff]  ;;  %v405_v55 = vld [vmem:[%s6920_s1 + $0x1c0] sm:$0xff]  ;;  %v604_v56 = vld [vmem:[%s6920_s1 + $0x2a8] sm:$0xff]  ;;  %v381_v21 = vrot.slane %v4779_v40, 2  ;;  %vm388_vm3 = vcmp.lt.s32.totalorder %v4782_v41, 6  ;;  %v574_v27 = vrot.slane %v4774_v39, 3 }
  0x2e   :  { %466 = vmatpush1.msra.mxu0 %v407_v47  ;;  %654 = vmatpush1.msra.mxu1 %v607_v49  ;;  %v404_v57 = vld [vmem:[%s6920_s1 + $0x1b8] sm:$0xff]  ;;  %v603_v60 = vld [vmem:[%s6920_s1 + $0x2a0] sm:$0xff]  ;;  %v403_v1 = vld [vmem:[%s6920_s1 + $0x1b0] sm:$0xff]  ;;  %v73_v3 = vsel %vm72_vm0, %v68_v46, %v69_v58  ;;  %v80_v16 = vsel %vm72_vm0, %v69_v58, %v62_v48  ;;  %v575_v28 = vrot.slane %v4779_v40, 3  ;;  %vm582_vm4 = vcmp.lt.s32.totalorder %v4782_v41, 5  ;;  %s4608_s30 = smov 64  }
  0x2f   :  { %655 = vmatprep.subr.mxu1 %v606_v50  ;;  %224 = vmatprep.mubr.f32.mxu0 %v6928_v59  ;;  %v602_v62 = vld [vmem:[%s6920_s1 + $0x298] sm:$0xff]  ;;  %v601_v2 = vld [vmem:[%s6920_s1 + $0x290] sm:$0xff]  ;;  %v402_v4 = vld [vmem:[%s6920_s1 + $0x1a8] sm:$0xff]  ;;  %v395_v33 = vsel %vm388_vm3, %v380_v18, %v381_v21  ;;  %v382_v35 = vrot.slane %v4814_v52, 2  ;;  %v576_v42 = vrot.slane %v4814_v52, 3  ;;  %v383_v45 = vrot.slane %v4837_v61, 2 }
  0x30   :  { %361 = vmatprep.mubr.f32.mxu1 %v6928_v59  ;;  %467 = vmatprep.subr.mxu0 %v406_v51  ;;  %v600_v5 = vld [vmem:[%s6920_s1 + $0x288] sm:$0xff]  ;;  %v401_v6 = vld [vmem:[%s6920_s1 + $0x1a0] sm:$0xff]  ;;  %v598_v9 = vld [vmem:[%s6920_s1 + $0x278] sm:$0xff]  ;;  %v589_v38 = vsel %vm582_vm4, %v574_v27, %v575_v28  ;;  %v577_v49 = vrot.slane %v4837_v61, 3  ;;  %v384_v61 = vrot.slane %v4846_v63, 2  ;;  %vm1045_vm5 = vcmask 523264  }
  0x31   :  { %656 = vmatpush1.msra.mxu1 %v605_v53  ;;  %3793 = vmatmul.mubr.msk.f32.gmra.mxu0 %vm6935_vm1, %v74_v54  ;;  %v599_v7 = vld [vmem:[%s6920_s1 + $0x280] sm:$0xff]  ;;  %v400_v14 = vld [vmem:[%s6920_s1 + $0x198] sm:$0xff]  ;;  %v597_v15 = vld [vmem:[%s6920_s1 + $0x270] sm:$0xff]  ;;  %v394_v44 = vsel %vm388_vm3, %v381_v21, %v382_v35  ;;  %v588_v46 = vsel %vm582_vm4, %v575_v28, %v576_v42  ;;  %v393_v51 = vsel %vm388_vm3, %v382_v35, %v383_v45  ;;  %vm1103_vm6 = vcmask 1040384   ;;  %s4609_s9 = smov 32   ;;  %s4611_s21 = smov [#allocation2]  }
  0x32   :  { %3801 = vmatmul.mubr.msk.f32.gmra.mxu1 %vm6935_vm1, %v4871_v8  ;;  %468 = vmatpush1.msra.mxu0 %v405_v55  ;;  %v399_v17 = vld [vmem:[%s6920_s1 + $0x190] sm:$0xff]  ;;  %v596_v22 = vld [vmem:[%s6920_s1 + $0x268] sm:$0xff]  ;;  %v595_v24 = vld [vmem:[%s6920_s1 + $0x260] sm:$0xff]  ;;  %v587_v55 = vsel %vm582_vm4, %v576_v42, %v577_v49  ;;  %vm6936_vm7 = vcmask 1041408   ;;  %vm4606_vm10 = vmmov 1   ;;  %vm1109_vm12 = vcmask 1042432  }
  0x33   :  { %657 = vmatprep.subr.mxu1 %v604_v56  ;;  %469 = vmatprep.subr.mxu0 %v404_v57  ;;  %v398_v48 = vld [vmem:[%s6920_s1 + $0x188] sm:$0xff]  ;;  %v397_v25 = vld [vmem:[%s6920_s1 + $0x180] sm:$0xff]  ;;  %v594_v26 = vld [vmem:[%s6920_s1 + $0x258] sm:$0xff]  ;;  %v578_v57 = vrot.slane %v4846_v63, 3  ;;  %vm6933_vm2 = vmmov 0  }
  0x34   :  { %658 = vmatpush1.msra.mxu1 %v603_v60  ;;  %230 = vmatprep.mubr.f32.mxu0 %v6928_v59  ;;  %v593_v32 = vld [vmem:[%s6920_s1 + $0x250] sm:$0xff]  ;;  %v592_v34 = vld [vmem:[%s6920_s1 + $0x248] sm:$0xff]  ;;  %v808_v40 = vld [vmem:[%s6920_s1 + $0x3b8] sm:$0xff]  ;;  %v392_v60 = vsel %vm388_vm3, %v383_v45, %v384_v61 }
  0x35   :  { %659 = vmatprep.subr.mxu1 %v602_v62  ;;  %367 = vmatprep.mubr.f32.mxu1 %v6928_v59  ;;  %v591_v36 = vld [vmem:[%s6920_s1 + $0x240] sm:$0xff]  ;;  %v807_v37 = vld [vmem:[%s6920_s1 + $0x3b0] sm:$0xff]  ;;  %v806_v43 = vld [vmem:[%s6920_s1 + $0x3a8] sm:$0xff] }
  0x36   :  { %470 = vmatpush1.msra.mxu0 %v403_v1  ;;  %660 = vmatpush1.msra.mxu1 %v601_v2  ;;  %v805_v52 = vld [vmem:[%s6920_s1 + $0x3a0] sm:$0xff]  ;;  %v804_v47 = vld [vmem:[%s6920_s1 + $0x398] sm:$0xff]  ;;  %v803_v50 = vld [vmem:[%s6920_s1 + $0x390] sm:$0xff]  ;;  %v385_v1 = vrot.slane %v4871_v8, 2  ;;  %v586_v2 = vsel %vm582_vm4, %v577_v49, %v578_v57 }
  0x37   :  { %3794 = vmatmul.mubr.msk.f32.gmra.mxu0 %vm6935_vm1, %v73_v3  ;;  %3802 = vmatmul.mubr.msk.f32.gmra.mxu1 %vm6935_vm1, %v4880_v10  ;;  %v802_v53 = vld [vmem:[%s6920_s1 + $0x388] sm:$0xff]  ;;  %v801_v54 = vld [vmem:[%s6920_s1 + $0x380] sm:$0xff]  ;;  %v800_v56 = vld [vmem:[%s6920_s1 + $0x378] sm:$0xff] }
  0x38   :  { %471 = vmatprep.subr.mxu0 %v402_v4  ;;  %661 = vmatprep.subr.mxu1 %v600_v5  ;;  %v799_v58 = vld [vmem:[%s6920_s1 + $0x370] sm:$0xff]  ;;  %v798_v62 = vld [vmem:[%s6920_s1 + $0x368] sm:$0xff]  ;;  %v797_v63 = vld [vmem:[%s6920_s1 + $0x360] sm:$0xff]  ;;  %v579_v4 = vrot.slane %v4871_v8, 3 }
  0x39   :  { %472 = vmatpush1.msra.mxu0 %v401_v6  ;;  %662 = vmatpush1.msra.mxu1 %v599_v7  ;;  %v796_v3 = vld [vmem:[%s6920_s1 + $0x358] sm:$0xff]  ;;  %v795_v5 = vld [vmem:[%s6920_s1 + $0x350] sm:$0xff]  ;;  %v391_v6 = vsel %vm388_vm3, %v384_v61, %v385_v1  ;;  %v794_v7 = vld [vmem:[%s6920_s1 + $0x348] sm:$0xff] }
  0x3a   :  { %663 = vmatprep.subr.mxu1 %v598_v9  ;;  %236 = vmatprep.mubr.f32.mxu0 %v6928_v59  ;;  %v386_v9 = vrot.slane %v4880_v10, 2  ;;  %v793_v8 = vld [vmem:[%s6920_s1 + $0x340] sm:$0xff]  ;;  %v787_v28 = vld [vmem:[%s6920_s1 + $0x310] sm:$0xff]  ;;  %v1165_v42 = vld [vmem:[%s6922_s3 + $0xf8] sm:$0xff] }
  0x3b   :  { %373 = vmatprep.mubr.f32.mxu1 %v6928_v59  ;;  %473 = vmatprep.subr.mxu0 %v400_v14  ;;  %v585_v14 = vsel %vm582_vm4, %v578_v57, %v579_v4  ;;  %v1180_v39 = vld [vmem:[%s6922_s3 + $0x170] sm:$0xff]  ;;  %v1162_v45 = vld [vmem:[%s6922_s3 + $0xe0] sm:$0xff]  ;;  %v1163_v49 = vld [vmem:[%s6922_s3 + $0xe8] sm:$0xff] }
  0x3c   :  { %664 = vmatpush1.msra.mxu1 %v597_v15  ;;  %3795 = vmatmul.mubr.msk.f32.gmra.mxu0 %vm6935_vm1, %v80_v16  ;;  %v580_v15 = vrot.slane %v4880_v10, 3  ;;  %v792_v16 = vld [vmem:[%s6920_s1 + $0x338] sm:$0xff]  ;;  %v390_v21 = vsel %vm388_vm3, %v385_v1, %v386_v9  ;;  %v790_v10 = vld [vmem:[%s6920_s1 + $0x328] sm:$0xff]  ;;  %v1150_v57 = vld [vmem:[%s6922_s3 + $0x80] sm:$0xff] }
  0x3d   :  { %3803 = vmatmul.mubr.msk.f32.gmra.mxu1 %vm6935_vm1, %v4911_v19  ;;  %474 = vmatpush1.msra.mxu0 %v399_v17  ;;  %v791_v17 = vld [vmem:[%s6920_s1 + $0x330] sm:$0xff]  ;;  %v1155_v61 = vld [vmem:[%s6922_s3 + $0xa8] sm:$0xff] }
  0x3e   :  { %665 = vmatprep.subr.mxu1 %v596_v22  ;;  %475 = vmatprep.subr.mxu0 %v398_v48  ;;  %v387_v22 = vrot.slane %v4911_v19, 2  ;;  %v789_v48 = vld [vmem:[%s6920_s1 + $0x320] sm:$0xff]  ;;  %v1151_v1 = vld [vmem:[%s6922_s3 + $0x88] sm:$0xff] }
  0x3f   :  { %666 = vmatpush1.msra.mxu1 %v595_v24  ;;  %476 = vmatpush1.msra.mxu0 %v397_v25  ;;  %v584_v24 = vsel %vm582_vm4, %v579_v4, %v580_v15  ;;  %v581_v25 = vrot.slane %v4911_v19, 3  ;;  %v786_v19 = vld [vmem:[%s6920_s1 + $0x308] sm:$0xff] }
  0x40   :  { %667 = vmatprep.subr.mxu1 %v594_v26  ;;  %509 = vmatprep.mubr.f32.mxu0 %v6928_v59  ;;  %v788_v26 = vld [vmem:[%s6920_s1 + $0x318] sm:$0xff]  ;;  %v1143_v4 = vld [vmem:[%s6922_s3 + $0x48] sm:$0xff] }
  0x41   :  { %668 = vmatpush1.msra.mxu1 %v593_v32  ;;  %3804 = vmatmul.mubr.msk.f32.vlgmr.msra.gmra.mxu0 %vm6935_vm1, %v395_v33  ;;  %v389_v32 = vsel %vm388_vm3, %v386_v9, %v387_v22  ;;  %v785_v33 = vld [vmem:[%s6920_s1 + $0x300] sm:$0xff]  ;;  %v590_v35 = vsel %vm582_vm4, %v581_v25, %v574_v27 }
  0x42   :  { %669 = vmatprep.subr.mxu1 %v592_v34  ;;  %841 = vmatprep.subr.mxu0 %v808_v40  ;;  %v583_v34 = vsel %vm582_vm4, %v580_v15, %v581_v25  ;;  %v396_v40 = vsel %vm388_vm3, %v387_v22, %v380_v18  ;;  %v1175_v18 = vld [vmem:[%s6922_s3 + $0x148] sm:$0xff]  ;;  %v1170_v27 = vld [vmem:[%s6922_s3 + $0x120] sm:$0xff]  ;;  %v1136_v22 = vld [vmem:[%s6922_s3 + $0x10] sm:$0xff] }
  0x43   :  { %670 = vmatpush1.msra.mxu1 %v591_v36  ;;  %703 = vmatprep.mubr.f32.mxu1 %v6928_v59  ;;  %v1168_v36 = vld [vmem:[%s6922_s3 + $0x110] sm:$0xff]  ;;  %v1138_v9 = vld [vmem:[%s6922_s3 + $0x20] sm:$0xff]  ;;  %v1135_v15 = vld [vmem:[%s6922_s3 + $0x8] sm:$0xff] }
  0x44   :  { %842 = vmatpush1.msra.mxu0 %v807_v37  ;;  %3812 = vmatmul.mubr.msk.f32.vlgmr.msra.gmra.mxu1 %vm6935_vm1, %v589_v38  ;;  %v1172_v37 = vld [vmem:[%s6922_s3 + $0x130] sm:$0xff]  ;;  %v1167_v38 = vld [vmem:[%s6922_s3 + $0x108] sm:$0xff] }
  0x45   :  { %515 = vmatprep.mubr.f32.mxu0 %v6928_v59  ;;  %843 = vmatprep.subr.mxu0 %v806_v43  ;;  %v1169_v43 = vld [vmem:[%s6922_s3 + $0x118] sm:$0xff]  ;;  %v1200_v25 = vld [vmem:[%s6922_s3 + $0x210] sm:$0xff] }
  0x46   :  { %3805 = vmatmul.mubr.msk.f32.gmra.mxu0 %vm6935_vm1, %v394_v44  ;;  %709 = vmatprep.mubr.f32.mxu1 %v6928_v59  ;;  %v1164_v44 = vld [vmem:[%s6922_s3 + $0xf0] sm:$0xff] }
  0x47   :  { %844 = vmatpush1.msra.mxu0 %v805_v52  ;;  %521 = vmatprep.mubr.f32.mxu0 %v6928_v59  ;;  %v1166_v52 = vld [vmem:[%s6922_s3 + $0x100] sm:$0xff] }
  0x48   :  { %3813 = vmatmul.mubr.msk.f32.gmra.mxu1 %vm6935_vm1, %v588_v46  ;;  %845 = vmatprep.subr.mxu0 %v804_v47  ;;  %v1161_v46 = vld [vmem:[%s6922_s3 + $0xd8] sm:$0xff]  ;;  %v1159_v47 = vld [vmem:[%s6922_s3 + $0xc8] sm:$0xff] }
  0x49   :  { %846 = vmatpush1.msra.mxu0 %v803_v50  ;;  %715 = vmatprep.mubr.f32.mxu1 %v6928_v59  ;;  %v1158_v50 = vld [vmem:[%s6922_s3 + $0xc0] sm:$0xff] }
  0x4a   :  { %3806 = vmatmul.mubr.msk.f32.gmra.mxu0 %vm6935_vm1, %v393_v51  ;;  %847 = vmatprep.subr.mxu0 %v802_v53  ;;  %v1156_v51 = vld [vmem:[%s6922_s3 + $0xb0] sm:$0xff] }
  0x4b   :  { %848 = vmatpush1.msra.mxu0 %v801_v54  ;;  %527 = vmatprep.mubr.f32.mxu0 %v6928_v59  ;;  %v1160_v53 = vld [vmem:[%s6922_s3 + $0xd0] sm:$0xff]  ;;  %v1153_v54 = vld [vmem:[%s6922_s3 + $0x98] sm:$0xff] }
  0x4c   :  { %3814 = vmatmul.mubr.msk.f32.gmra.mxu1 %vm6935_vm1, %v587_v55  ;;  %849 = vmatprep.subr.mxu0 %v800_v56  ;;  %v1157_v55 = vld [vmem:[%s6922_s3 + $0xb8] sm:$0xff]  ;;  %v1152_v56 = vld [vmem:[%s6922_s3 + $0x90] sm:$0xff] }
  0x4d   :  { %850 = vmatpush1.msra.mxu0 %v799_v58  ;;  %721 = vmatprep.mubr.f32.mxu1 %v6928_v59  ;;  %v1154_v58 = vld [vmem:[%s6922_s3 + $0xa0] sm:$0xff] }
  0x4e   :  { %3807 = vmatmul.mubr.msk.f32.gmra.mxu0 %vm6935_vm1, %v392_v60  ;;  %851 = vmatprep.subr.mxu0 %v798_v62  ;;  %v1149_v60 = vld [vmem:[%s6922_s3 + $0x78] sm:$0xff]  ;;  %v1147_v62 = vld [vmem:[%s6922_s3 + $0x68] sm:$0xff] }
  0x4f   :  { %533 = vmatprep.mubr.f32.mxu0 %v6928_v59  ;;  %852 = vmatpush1.msra.mxu0 %v797_v63  ;;  %v1146_v63 = vld [vmem:[%s6922_s3 + $0x60] sm:$0xff] }
  0x50   :  { %3815 = vmatmul.mubr.msk.f32.gmra.mxu1 %vm6935_vm1, %v586_v2  ;;  %853 = vmatprep.subr.mxu0 %v796_v3  ;;  %v1144_v2 = vld [vmem:[%s6922_s3 + $0x50] sm:$0xff] }
  0x51   :  { %727 = vmatprep.mubr.f32.mxu1 %v6928_v59  ;;  %854 = vmatpush1.msra.mxu0 %v795_v5  ;;  %v1148_v3 = vld [vmem:[%s6922_s3 + $0x70] sm:$0xff]  ;;  %v1141_v5 = vld [vmem:[%s6922_s3 + $0x38] sm:$0xff] }
  0x52   :  { %3808 = vmatmul.mubr.msk.f32.gmra.mxu0 %vm6935_vm1, %v391_v6  ;;  %855 = vmatprep.subr.mxu0 %v794_v7  ;;  %v1145_v6 = vld [vmem:[%s6922_s3 + $0x58] sm:$0xff]  ;;  %v1140_v7 = vld [vmem:[%s6922_s3 + $0x30] sm:$0xff] }
  0x53   :  { %539 = vmatprep.mubr.f32.mxu0 %v6928_v59  ;;  %856 = vmatpush1.msra.mxu0 %v793_v8  ;;  %v1142_v8 = vld [vmem:[%s6922_s3 + $0x40] sm:$0xff] }
  0x54   :  { %3816 = vmatmul.mubr.msk.f32.gmra.mxu1 %vm6935_vm1, %v585_v14  ;;  %857 = vmatprep.subr.mxu0 %v792_v16  ;;  %v1137_v14 = vld [vmem:[%s6922_s3 + $0x18] sm:$0xff]  ;;  %v1139_v16 = vld [vmem:[%s6922_s3 + $0x28] sm:$0xff] }
  0x55   :  { %733 = vmatprep.mubr.f32.mxu1 %v6928_v59  ;;  %858 = vmatpush1.msra.mxu0 %v791_v17  ;;  %v1134_v17 = vld [vmem:[%s6922_s3] sm:$0xff] }
  0x56   :  { %3809 = vmatmul.mubr.msk.f32.gmra.mxu0 %vm6935_vm1, %v390_v21  ;;  %859 = vmatprep.subr.mxu0 %v790_v10  ;;  %v1204_v21 = vld [vmem:[%s6922_s3 + $0x230] sm:$0xff]  ;;  %v1203_v10 = vld [vmem:[%s6922_s3 + $0x228] sm:$0xff] }
  0x57   :  { %545 = vmatprep.mubr.f32.mxu0 %v6928_v59  ;;  %860 = vmatpush1.msra.mxu0 %v789_v48  ;;  %v1201_v48 = vld [vmem:[%s6922_s3 + $0x218] sm:$0xff] }
  0x58   :  { %3817 = vmatmul.mubr.msk.f32.gmra.mxu1 %vm6935_vm1, %v584_v24  ;;  %861 = vmatprep.subr.mxu0 %v788_v26  ;;  %v1205_v24 = vld [vmem:[%s6922_s3 + $0x238] sm:$0xff]  ;;  %v1198_v26 = vld [vmem:[%s6922_s3 + $0x200] sm:$0xff] }
  0x59   :  { %739 = vmatprep.mubr.f32.mxu1 %v6928_v59  ;;  %862 = vmatpush1.msra.mxu0 %v787_v28  ;;  %v1202_v28 = vld [vmem:[%s6922_s3 + $0x220] sm:$0xff] }
  0x5a   :  { %3810 = vmatmul.mubr.msk.f32.gmra.mxu0 %vm6935_vm1, %v389_v32  ;;  %863 = vmatprep.subr.mxu0 %v786_v19  ;;  %v1197_v32 = vld [vmem:[%s6922_s3 + $0x1f8] sm:$0xff]  ;;  %v1195_v19 = vld [vmem:[%s6922_s3 + $0x1e8] sm:$0xff] }
  0x5b   :  { %551 = vmatprep.mubr.f32.mxu0 %v6928_v59  ;;  %864 = vmatpush1.msra.mxu0 %v785_v33  ;;  %v1199_v33 = vld [vmem:[%s6922_s3 + $0x208] sm:$0xff] }
  0x5c   :  { %3818 = vmatmul.mubr.msk.f32.gmra.mxu1 %vm6935_vm1, %v583_v34  ;;  %1297 = vmatprep.subr.mxu0 %v6928_v59  ;;  %v1194_v34 = vld [vmem:[%s6922_s3 + $0x1e0] sm:$0xff] }
  0x5d   :  { %745 = vmatprep.mubr.f32.mxu1 %v6928_v59  ;;  %1226 = vmatprep.subr.mxu1 %v1180_v39  ;;  %v1191_v39 = vld [vmem:[%s6922_s3 + $0x1c8] sm:$0xff] }
  0x5e   :  { %3811 = vmatmul.mubr.msk.f32.gmra.mxu0 %vm6935_vm1, %v396_v40  ;;  %v1192_v40 = vld [vmem:[%s6922_s3 + $0x1d0] sm:$0xff] }
  0x5f   :  { %897 = vmatprep.mubr.f32.mxu0 %v6928_v59 }
  0x60   :  { %3819 = vmatmul.mubr.msk.f32.gmra.mxu1 %vm6935_vm1, %v590_v35  ;;  %v1196_v35 = vld [vmem:[%s6922_s3 + $0x1f0] sm:$0xff] }
  0x62   :  { %3820 = vmatmul.mubr.msk.f32.vlgmr.msra.gmra.mxu0 %vm6935_vm1, %v4850_v0  ;;  %v1179_v0 = vld [vmem:[%s6922_s3 + $0x168] sm:$0xff] }
  0x63   :  { %903 = vmatprep.mubr.f32.mxu0 %v6928_v59  ;;  %1227 = vmatpush1.msra.mxu1 %v1179_v0  ;;  %v1189_v0 = vld [vmem:[%s6922_s3 + $0x1b8] sm:$0xff] }
  0x66   :  { %3821 = vmatmul.mubr.msk.f32.gmra.mxu0 %vm6935_vm1, %v4884_v11  ;;  %v1177_v11 = vld [vmem:[%s6922_s3 + $0x158] sm:$0xff] }
  0x67   :  { %909 = vmatprep.mubr.f32.mxu0 %v6928_v59  ;;  %1228 = vmatprep.subr.mxu1 %v1177_v11  ;;  %v1193_v11 = vld [vmem:[%s6922_s3 + $0x1d8] sm:$0xff] }
  0x6a   :  { %3822 = vmatmul.mubr.msk.f32.gmra.mxu0 %vm6935_vm1, %v4888_v12  ;;  %v1181_v12 = vld [vmem:[%s6922_s3 + $0x178] sm:$0xff] }
  0x6b   :  { %915 = vmatprep.mubr.f32.mxu0 %v6928_v59  ;;  %1298 = vmatpush1.msra.mxu0 %v1181_v12  ;;  %v1188_v12 = vld [vmem:[%s6922_s3 + $0x1b0] sm:$0xff] }
  0x6c   :  { %1299 = vmatprep.subr.mxu0 %v6928_v59 }
  0x6e   :  { %3823 = vmatmul.mubr.msk.f32.gmra.mxu0 %vm6935_vm1, %v4892_v13  ;;  %v1176_v13 = vld [vmem:[%s6922_s3 + $0x150] sm:$0xff] }
  0x6f   :  { %921 = vmatprep.mubr.f32.mxu0 %v6928_v59  ;;  %1229 = vmatpush1.msra.mxu1 %v1176_v13  ;;  %v1186_v13 = vld [vmem:[%s6922_s3 + $0x1a0] sm:$0xff] }
  0x72   :  { %3824 = vmatmul.mubr.msk.f32.gmra.mxu0 %vm6935_vm1, %v4915_v20  ;;  %v1174_v20 = vld [vmem:[%s6922_s3 + $0x140] sm:$0xff] }
  0x73   :  { %927 = vmatprep.mubr.f32.mxu0 %v6928_v59  ;;  %1230 = vmatprep.subr.mxu1 %v1174_v20  ;;  %v1190_v20 = vld [vmem:[%s6922_s3 + $0x1c0] sm:$0xff] }
  0x76   :  { %3825 = vmatmul.mubr.msk.f32.gmra.mxu0 %vm6935_vm1, %v4923_v23  ;;  %v1178_v23 = vld [vmem:[%s6922_s3 + $0x160] sm:$0xff] }
  0x77   :  { %933 = vmatprep.mubr.f32.mxu0 %v6928_v59  ;;  %1300 = vmatpush1.msra.mxu0 %v1178_v23  ;;  %v1185_v23 = vld [vmem:[%s6922_s3 + $0x198] sm:$0xff] }
  0x78   :  { %1301 = vmatprep.subr.mxu0 %v6928_v59 }
  0x79   :  { %1302 = vmatpush1.msra.mxu0 %v1175_v18  ;;  %v1182_v18 = vld [vmem:[%s6922_s3 + $0x180] sm:$0xff] }
  0x7a   :  { %3826 = vmatmul.mubr.msk.f32.gmra.mxu0 %vm6935_vm1, %v4944_v29  ;;  %v1173_v29 = vld [vmem:[%s6922_s3 + $0x138] sm:$0xff]  ;;  %1303 = vmatprep.subr.mxu0 %v6928_v59 }
  0x7b   :  { %939 = vmatprep.mubr.f32.mxu0 %v6928_v59  ;;  %1231 = vmatpush1.msra.mxu1 %v1173_v29  ;;  %v1183_v29 = vld [vmem:[%s6922_s3 + $0x188] sm:$0xff] }
  0x7c   :  { %1304 = vmatpush1.msra.mxu0 %v1172_v37 }
  0x7d   :  { %1305 = vmatprep.subr.mxu0 %v6928_v59 }
  0x7e   :  { %3827 = vmatmul.mubr.msk.f32.gmra.mxu0 %vm6935_vm1, %v4948_v31  ;;  %v1171_v31 = vld [vmem:[%s6922_s3 + $0x128] sm:$0xff] }
  0x7f   :  { %1232 = vmatprep.subr.mxu1 %v1171_v31  ;;  %1306 = vmatpush1.msra.mxu0 %v1169_v43  ;;  %v1187_v31 = vld [vmem:[%s6922_s3 + $0x1a8] sm:$0xff] }
  0x80   :  { %1233 = vmatpush1.msra.mxu1 %v1170_v27  ;;  %1307 = vmatprep.subr.mxu0 %v6928_v59  ;;  %v1184_v27 = vld [vmem:[%s6922_s3 + $0x190] sm:$0xff] }
  0x81   :  { %1234 = vmatprep.subr.mxu1 %v1168_v36  ;;  %1308 = vmatpush1.msra.mxu0 %v1166_v52 }
  0x82   :  { %1235 = vmatpush1.msra.mxu1 %v1167_v38  ;;  %1309 = vmatprep.subr.mxu0 %v6928_v59 }
  0x83   :  { %1236 = vmatprep.subr.mxu1 %v1165_v42  ;;  %1310 = vmatpush1.msra.mxu0 %v1163_v49 }
  0x84   :  { %1237 = vmatpush1.msra.mxu1 %v1164_v44  ;;  %1311 = vmatprep.subr.mxu0 %v6928_v59 }
  0x85   :  { %1238 = vmatprep.subr.mxu1 %v1162_v45  ;;  %1312 = vmatpush1.msra.mxu0 %v1160_v53 }
  0x86   :  { %1239 = vmatpush1.msra.mxu1 %v1161_v46  ;;  %1313 = vmatprep.subr.mxu0 %v6928_v59 }
  0x87   :  { %1240 = vmatprep.subr.mxu1 %v1159_v47  ;;  %1314 = vmatpush1.msra.mxu0 %v1157_v55 }
  0x88   :  { %1241 = vmatpush1.msra.mxu1 %v1158_v50  ;;  %1315 = vmatprep.subr.mxu0 %v6928_v59 }
  0x89   :  { %1242 = vmatprep.subr.mxu1 %v1156_v51  ;;  %1316 = vmatpush1.msra.mxu0 %v1154_v58 }
  0x8a   :  { %1243 = vmatpush1.msra.mxu1 %v1155_v61  ;;  %1317 = vmatprep.subr.mxu0 %v6928_v59 }
  0x8b   :  { %1244 = vmatprep.subr.mxu1 %v1153_v54  ;;  %1318 = vmatpush1.msra.mxu0 %v1151_v1 }
  0x8c   :  { %1245 = vmatpush1.msra.mxu1 %v1152_v56  ;;  %1319 = vmatprep.subr.mxu0 %v6928_v59 }
  0x8d   :  { %1246 = vmatprep.subr.mxu1 %v1150_v57  ;;  %1320 = vmatpush1.msra.mxu0 %v1148_v3 }
  0x8e   :  { %1247 = vmatpush1.msra.mxu1 %v1149_v60  ;;  %1321 = vmatprep.subr.mxu0 %v6928_v59 }
  0x8f   :  { %1248 = vmatprep.subr.mxu1 %v1147_v62  ;;  %1322 = vmatpush1.msra.mxu0 %v1145_v6 }
  0x90   :  { %1249 = vmatpush1.msra.mxu1 %v1146_v63  ;;  %1323 = vmatprep.subr.mxu0 %v6928_v59 }
  0x91   :  { %1250 = vmatprep.subr.mxu1 %v1144_v2  ;;  %1324 = vmatpush1.msra.mxu0 %v1142_v8 }
  0x92   :  { %1251 = vmatpush1.msra.mxu1 %v1143_v4  ;;  %1325 = vmatprep.subr.mxu0 %v6928_v59 }
  0x93   :  { %1252 = vmatprep.subr.mxu1 %v1141_v5  ;;  %1326 = vmatpush1.msra.mxu0 %v1139_v16 }
  0x94   :  { %1253 = vmatpush1.msra.mxu1 %v1140_v7  ;;  %1327 = vmatprep.subr.mxu0 %v6928_v59 }
  0x95   :  { %1254 = vmatprep.subr.mxu1 %v1138_v9  ;;  %1328 = vmatpush1.msra.mxu0 %v1136_v22 }
  0x96   :  { %1255 = vmatpush1.msra.mxu1 %v1137_v14  ;;  %1345 = vmatprep.subr.mxu0 %v6928_v59 }
  0x97   :  { %1256 = vmatprep.subr.mxu1 %v1135_v15  ;;  %1346 = vmatpush2.msra.mxu0 %v1205_v24 }
  0x98   :  { %1257 = vmatpush1.msra.mxu1 %v1134_v17  ;;  %1347 = vmatprep.subr.mxu0 %v6928_v59 }
  0x99   :  { %1274 = vmatprep.subr.mxu1 %v1204_v21  ;;  %1348 = vmatpush2.msra.mxu0 %v1202_v28 }
  0x9a   :  { %1275 = vmatpush2.msra.mxu1 %v1203_v10  ;;  %1349 = vmatprep.subr.mxu0 %v6928_v59 }
  0x9b   :  { %1276 = vmatprep.subr.mxu1 %v1201_v48  ;;  %1350 = vmatpush2.msra.mxu0 %v1199_v33 }
  0x9c   :  { %1277 = vmatpush2.msra.mxu1 %v1200_v25  ;;  %1351 = vmatprep.subr.mxu0 %v6928_v59 }
  0x9d   :  { %1278 = vmatprep.subr.mxu1 %v1198_v26  ;;  %1352 = vmatpush2.msra.mxu0 %v1196_v35 }
  0x9e   :  { %1279 = vmatpush2.msra.mxu1 %v1197_v32  ;;  %1353 = vmatprep.subr.mxu0 %v6928_v59 }
  0x9f   :  { %1280 = vmatprep.subr.mxu1 %v1195_v19  ;;  %1354 = vmatpush2.msra.mxu0 %v1193_v11 }
  0xa0   :  { %1281 = vmatpush2.msra.mxu1 %v1194_v34  ;;  %1355 = vmatprep.subr.mxu0 %v6928_v59 }
  0xa1   :  { %1282 = vmatprep.subr.mxu1 %v1192_v40  ;;  %1356 = vmatpush2.msra.mxu0 %v1190_v20 }
  0xa2   :  { %1283 = vmatpush2.msra.mxu1 %v1191_v39  ;;  %1357 = vmatprep.subr.mxu0 %v6928_v59 }
  0xa3   :  { %1284 = vmatprep.subr.mxu1 %v1189_v0  ;;  %1358 = vmatpush2.msra.mxu0 %v1187_v31  ;;  %v5591_v31 = vsub.s32 0, %v4782_v41 }
  0xa4   :  { %1285 = vmatpush2.msra.mxu1 %v1188_v12  ;;  %1359 = vmatprep.subr.mxu0 %v6928_v59 }
  0xa5   :  { %1286 = vmatprep.subr.mxu1 %v1186_v13  ;;  %1360 = vmatpush2.msra.mxu0 %v1184_v27  ;;  %v962_v27 = vld [vmem:[%s6921_s2] ss:$8 sm:$0x3] }
  0xa6   :  { %1287 = vmatpush2.msra.mxu1 %v1185_v23  ;;  %4191 = vmatprep.subr.mxu0 %v6928_v59 }
  0xa7   :  { %1288 = vmatprep.subr.mxu1 %v1183_v29 }
  0xa8   :  { %1289 = vmatpush2.msra.mxu1 %v1182_v18 }
  0xa9   :  { %4158 = vmatprep.subr.mxu1 %v6928_v59  ;;  %v5599_v59 = vsub.s32 1, %v4782_v41 }
  0xda   :  { %v196_v36 = vpop.f32.mrf.mxu0 }
  0xdb   :  { %v333_v37 = vpop.f32.mrf.mxu1 }
  0xdc   :  { %v198_v38 = vpop.f32.mrf.mxu0  ;;  %v334_v12 = vadd.f32 %v333_v37, %v196_v36 }
  0xdd   :  { %v335_v42 = vpop.f32.mrf.mxu1 }
  0xde   :  { %v202_v43 = vpop.f32.mrf.mxu0  ;;  %v336_v23 = vadd.f32 %v335_v42, %v198_v38 }
  0xdf   :  { %v339_v44 = vpop.f32.mrf.mxu1 }
  0xe0   :  { %v204_v45 = vpop.f32.mrf.mxu0  ;;  %v340_v30 = vadd.f32 %v339_v44, %v202_v43 }
  0xe1   :  { %v341_v52 = vpop.f32.mrf.mxu1 }
  0xe2   :  { %v5526_v46 = vpop.f32.mrf.mxu0  ;;  %v342_v38 = vadd.f32 %v341_v52, %v204_v45 }
  0xe3   :  { %v5528_v47 = vpop.f32.mrf.mxu1 }
  0xe4   :  { %v5530_v49 = vpop.f32.mrf.mxu0  ;;  %v346_v41 = vadd.f32 %v5528_v47, %v5526_v46 }
  0xe5   :  { %v5532_v50 = vpop.f32.mrf.mxu1 }
  0xe6   :  { %v5534_v51 = vpop.f32.mrf.mxu0 }
  0xe7   :  { %v5536_v53 = vpop.f32.mrf.mxu1 }
  0xe8   :  { %v5538_v61 = vpop.f32.mrf.mxu0  ;;  %v352_v45 = vadd.f32 %v5536_v53, %v5534_v51 }
  0xe9   :  { %v5540_v54 = vpop.f32.mrf.mxu1 }
  0xec   :  { %v5542_v55 = vpop.f32.mrf.mxu0  ;;  %v5544_v56 = vpop.f32.mrf.mxu1 }
  0xed   :  { %v358_v46 = vadd.f32 %v5544_v56, %v5542_v55 }
  0xee   :  { %v5546_v57 = vpop.f32.mrf.mxu0  ;;  %v5548_v58 = vpop.f32.mrf.mxu1 }
  0xef   :  { %v360_v47 = vadd.f32 %v5548_v58, %v5546_v57 }
  0xf1   :  { %v5550_v60 = vpop.f32.mrf.mxu0 }
  0xf2   :  { %v5552_v62 = vpop.f32.mrf.mxu1 }
  0xf3   :  { %v5554_v1 = vpop.f32.mrf.mxu0 }
  0xf4   :  { %v5556_v63 = vpop.f32.mrf.mxu1 }
  0xf7   :  { %v5558_v2 = vpop.f32.mrf.mxu0  ;;  %v5560_v3 = vpop.f32.mrf.mxu1 }
  0xf9   :  { %v5562_v4 = vpop.f32.mrf.mxu0  ;;  %v5564_v5 = vpop.f32.mrf.mxu1 }
  0xfa   :  { %v372_v55 = vadd.f32 %v5564_v5, %v5562_v4 }
  0xfc   :  { %v5566_v6 = vpop.f32.mrf.mxu0 }
  0xfd   :  { %v5568_v7 = vpop.f32.mrf.mxu1 }
  0xfe   :  { %v5570_v9 = vpop.f32.mrf.mxu0 }
  0xff   :  { %v5572_v14 = vpop.f32.mrf.mxu1 }
 0x101   :  { %v511_v8 = vpop.f32.mrf.mxu0 }
 0x102   :  { %v558_v29 = vadd.f32 %v511_v8, %v334_v12  ;;  %v5606_v12 = vrot.slane %v962_v27, %v5591_v31 }
 0x103   :  { %v513_v15 = vpop.f32.mrf.mxu0 }
 0x104   :  { %v705_v16 = vpop.f32.mrf.mxu1  ;;  %v559_v36 = vadd.f32 %v513_v15, %v336_v23  ;;  %v348_v15 = vadd.f32 %v5532_v50, %v5530_v49  ;;  %v364_v49 = vadd.f32 %v5552_v62, %v5550_v60  ;;  %v366_v50 = vadd.f32 %v5556_v63, %v5554_v1  ;;  %v1006_v1 = vld [vmem:[%s6921_s2 + $0x10] sm:$0xff] }
 0x105   :  { %v752_v42 = vadd.f32 %v705_v16, %v558_v29 }
 0x106   :  { %v517_v17 = vpop.f32.mrf.mxu0  ;;  %v707_v21 = vpop.f32.mrf.mxu1 }
 0x107   :  { %v560_v8 = vadd.f32 %v517_v17, %v340_v30  ;;  %v354_v30 = vadd.f32 %v5540_v54, %v5538_v61 }
 0x108   :  { %v519_v22 = vpop.f32.mrf.mxu0  ;;  %v711_v10 = vpop.f32.mrf.mxu1 }
 0x109   :  { %v561_v43 = vadd.f32 %v519_v22, %v342_v38  ;;  %v754_v17 = vadd.f32 %v711_v10, %v560_v8  ;;  %v376_v22 = vadd.f32 %v5568_v7, %v5566_v6 }
 0x10a   :  { %v523_v48 = vpop.f32.mrf.mxu0  ;;  %v713_v24 = vpop.f32.mrf.mxu1 }
 0x10b   :  { %v562_v23 = vadd.f32 %v523_v48, %v346_v41  ;;  %v370_v41 = vadd.f32 %v5560_v3, %v5558_v2  ;;  %v755_v53 = vadd.f32 %v713_v24, %v561_v43  ;;  %v1007_v48 = vld [vmem:[%s6921_s2 + $0x18] sm:$0xff]  ;;  %v1008_v24 = vld [vmem:[%s6921_s2 + $0x20] sm:$0xff] }
 0x10c   :  { %v525_v25 = vpop.f32.mrf.mxu0  ;;  %v717_v26 = vpop.f32.mrf.mxu1 }
 0x10d   :  { %v563_v56 = vadd.f32 %v525_v25, %v348_v15 }
 0x10e   :  { %v529_v28 = vpop.f32.mrf.mxu0  ;;  %v5574_v32 = vpop.f32.mrf.mxu1 }
 0x10f   :  { %v564_v57 = vadd.f32 %v529_v28, %v352_v45  ;;  %v757_v6 = vadd.f32 %v5574_v32, %v563_v56 }
 0x110   :  { %v531_v19 = vpop.f32.mrf.mxu0  ;;  %v5576_v34 = vpop.f32.mrf.mxu1 }
 0x111   :  { %v565_v10 = vadd.f32 %v531_v19, %v354_v30  ;;  %v758_v7 = vadd.f32 %v5576_v34, %v564_v57  ;;  %v1012_v57 = vld [vmem:[%s6921_s2 + $0x40] sm:$0xff] }
 0x112   :  { %v535_v33 = vpop.f32.mrf.mxu0  ;;  %v5580_v39 = vpop.f32.mrf.mxu1 }
 0x113   :  { %v566_v4 = vadd.f32 %v535_v33, %v358_v46  ;;  %v759_v43 = vadd.f32 %v5580_v39, %v565_v10 }
 0x114   :  { %v537_v40 = vpop.f32.mrf.mxu0  ;;  %v5586_v13 = vpop.f32.mrf.mxu1 }
 0x115   :  { %v567_v5 = vadd.f32 %v537_v40, %v360_v47  ;;  %v760_v32 = vadd.f32 %v5586_v13, %v566_v4 }
 0x116   :  { %v5578_v35 = vpop.f32.mrf.mxu0  ;;  %v5601_v37 = vpop.f32.mrf.mxu1 }
 0x117   :  { %v568_v19 = vadd.f32 %v5578_v35, %v364_v49  ;;  %v761_v34 = vadd.f32 %v5601_v37, %v567_v5 }
 0x118   :  { %v5582_v0 = vpop.f32.mrf.mxu0  ;;  %v735_v52 = vpop.f32.mrf.mxu1 }
 0x119   :  { %6968 = vst [vmem:[#allocation6_spill] sm:$0xff] %v5582_v0  ;;  %v753_v0 = vadd.f32 %v707_v21, %v559_v36  ;;  %v756_v21 = vadd.f32 %v717_v26, %v562_v23  ;;  %v378_v26 = vadd.f32 %v5572_v14, %v5570_v9  ;;  %v1009_v36 = vld [vmem:[%s6921_s2 + $0x28] sm:$0xff]  ;;  %v762_v23 = vadd.f32 %v735_v52, %v568_v19  ;;  %v1011_v52 = vld [vmem:[%s6921_s2 + $0x38] sm:$0xff] }
 0x11a   :  { %v5584_v11 = vpop.f32.mrf.mxu0  ;;  %v5633_v58 = vpop.f32.mrf.mxu1 }
 0x11b   :  { %6969 = vst [vmem:[#allocation7_spill] sm:$0xff] %v5584_v11 }
 0x11c   :  { %v5588_v20 = vpop.f32.mrf.mxu0  ;;  %v741_v33 = vpop.f32.mrf.mxu1 }
 0x11d   :  { %6970 = vst [vmem:[#allocation8_spill] sm:$0xff] %v5588_v20  ;;  %v5609_v20 = vrot.slane %v962_v27, %v5599_v59 }
 0x11e   :  { %v5593_v18 = vpop.f32.mrf.mxu0  ;;  %v743_v46 = vpop.f32.mrf.mxu1 }
 0x11f   :  { %6971 = vst [vmem:[#allocation9_spill] sm:$0xff] %v5593_v18 }
 0x120   :  { %v5603_v11 = vpop.f32.mrf.mxu0  ;;  %v6972_v15 = vld [vmem:[#allocation6_spill] sm:$0xff]  ;;  %v747_v10 = vpop.f32.mrf.mxu1 }
 0x121   :  { %v569_v45 = vadd.f32 %v6972_v15, %v366_v50  ;;  %v1010_v50 = vld [vmem:[%s6921_s2 + $0x30] sm:$0xff] }
 0x122   :  { %v899_v18 = vpop.f32.mrf.mxu0 }
 0x123   :  { %v946_v44 = vadd.f32 %v899_v18, %v752_v42 }
 0x124   :  { %v901_v16 = vpop.f32.mrf.mxu0 }
 0x125   :  { %v974_v29 = vadd.f32 %v5606_v12, %v946_v44  ;;  %v947_v27 = vadd.f32 %v901_v16, %v753_v0 }
 0x126   :  { %v905_v51 = vpop.f32.mrf.mxu0 }
 0x127   :  { %v975_v61 = vadd.f32 %v5609_v20, %v947_v27  ;;  %v948_v54 = vadd.f32 %v905_v51, %v754_v17  ;;  %v990_v60 = vmax.f32 %v974_v29, 0.0  ;;  %v6973_v29 = vld [vmem:[#allocation7_spill] sm:$0xff] }
 0x128   :  { %v907_v62 = vpop.f32.mrf.mxu0  ;;  %v570_v27 = vadd.f32 %v6973_v29, %v370_v41 }
 0x129   :  { %v991_v63 = vmax.f32 %v975_v61, 0.0  ;;  %v976_v2 = vadd.f32 %v5606_v12, %v948_v54  ;;  %v949_v3 = vadd.f32 %v907_v62, %v755_v53  ;;  %v1022_v40 = vadd.f32 %v1006_v1, %v990_v60  ;;  %v6974_v53 = vld [vmem:[#allocation8_spill] sm:$0xff] }
 0x12a   :  { %v911_v25 = vpop.f32.mrf.mxu0  ;;  %v571_v61 = vadd.f32 %v6974_v53, %v372_v55 }
 0x12b   :  { %v992_v28 = vmax.f32 %v976_v2, 0.0  ;;  %v977_v0 = vadd.f32 %v5609_v20, %v949_v3  ;;  %v950_v18 = vadd.f32 %v911_v25, %v756_v21  ;;  %v1023_v42 = vadd.f32 %v1007_v48, %v991_v63  ;;  %v6975_v21 = vld [vmem:[#allocation9_spill] sm:$0xff] }
 0x12c   :  { %v913_v38 = vpop.f32.mrf.mxu0  ;;  %v572_v1 = vadd.f32 %v6975_v21, %v376_v22  ;;  %v763_v22 = vadd.f32 %v5633_v58, %v569_v45  ;;  %v1015_v45 = vld [vmem:[%s6921_s2 + $0x58] sm:$0xff] }
 0x12d   :  { %v1024_v8 = vadd.f32 %v1008_v24, %v992_v28  ;;  %v993_v9 = vmax.f32 %v977_v0, 0.0  ;;  %v978_v14 = vadd.f32 %v5606_v12, %v950_v18  ;;  %v951_v44 = vadd.f32 %v913_v38, %v757_v6  ;;  %v1013_v0 = vld [vmem:[%s6921_s2 + $0x48] sm:$0xff] }
 0x12e   :  { %v917_v35 = vpop.f32.mrf.mxu0  ;;  %v1046_v39 = vsel %vm1045_vm5, %v1023_v42, -inf  ;;  %v573_v38 = vadd.f32 %v5603_v11, %v378_v26 }
 0x12f   :  { %v1038_v30 = vmax.f32 %v1022_v40, %v1024_v8  ;;  %v1025_v16 = vadd.f32 %v1009_v36, %v993_v9  ;;  %v952_v17 = vadd.f32 %v917_v35, %v758_v7  ;;  %v994_v47 = vmax.f32 %v978_v14, 0.0 }
 0x130   :  { %v979_v49 = vadd.f32 %v5609_v20, %v951_v44  ;;  %v919_v51 = vpop.f32.mrf.mxu0  ;;  %v764_v7 = vadd.f32 %v741_v33, %v570_v27  ;;  %v765_v14 = vadd.f32 %v743_v46, %v571_v61 }
 0x131   :  { %v1039_v13 = vrot.slane %v1038_v30, 4  ;;  %v1047_v37 = vsel %vm1045_vm5, %v1025_v16, -inf  ;;  %v980_v41 = vadd.f32 %v5606_v12, %v952_v17  ;;  %v953_v60 = vadd.f32 %v919_v51, %v759_v43  ;;  %v1014_v16 = vld [vmem:[%s6921_s2 + $0x50] sm:$0xff]  ;;  %v1016_v51 = vld [vmem:[%s6921_s2 + $0x60] sm:$0xff] }
 0x132   :  { %v1048_v54 = vmax.f32 %v1046_v39, %v1047_v37  ;;  %v995_v56 = vmax.f32 %v979_v49, 0.0  ;;  %v923_v62 = vpop.f32.mrf.mxu0  ;;  %v1026_v5 = vadd.f32 %v1010_v50, %v994_v47  ;;  %v766_v43 = vadd.f32 %v747_v10, %v572_v1 }
 0x133   :  { %v1040_v63 = vmax.f32 %v1038_v30, %v1039_v13  ;;  %v996_v2 = vmax.f32 %v980_v41, 0.0  ;;  %v954_v3 = vadd.f32 %v923_v62, %v760_v32  ;;  %v981_v24 = vadd.f32 %v5609_v20, %v953_v60  ;;  %v749_v32 = vpop.f32.mrf.mxu1 }
 0x134   :  { %v1049_v4 = vrot.slane %v1048_v54, 4  ;;  %v1027_v48 = vadd.f32 %v1011_v52, %v995_v56  ;;  %v925_v55 = vpop.f32.mrf.mxu0  ;;  %v767_v27 = vadd.f32 %v749_v32, %v573_v38 }
 0x135   :  { %v1041_v25 = vrot.slane %v1040_v63, 2  ;;  %v1028_v28 = vadd.f32 %v1012_v57, %v996_v2  ;;  %v982_v18 = vadd.f32 %v5606_v12, %v954_v3  ;;  %v955_v6 = vadd.f32 %v925_v55, %v761_v34 }
 0x136   :  { %v1050_v19 = vmax.f32 %v1048_v54, %v1049_v4  ;;  %v997_v40 = vmax.f32 %v981_v24, 0.0  ;;  %v929_v36 = vpop.f32.mrf.mxu0  ;;  %v1062_v34 = vsel %vm1045_vm5, %v1027_v48, -inf  ;;  %v1017_v54 = vld [vmem:[%s6921_s2 + $0x68] sm:$0xff] }
 0x137   :  { %v1042_v42 = vmax.f32 %v1040_v63, %v1041_v25  ;;  %v1055_v8 = vmax.f32 %v1026_v5, %v1028_v28  ;;  %v983_v9 = vadd.f32 %v5609_v20, %v955_v6  ;;  %v956_v35 = vadd.f32 %v929_v36, %v762_v23 }
 0x138   :  { %v1029_v44 = vadd.f32 %v1013_v0, %v997_v40  ;;  %v931_v15 = vpop.f32.mrf.mxu0  ;;  %v998_v58 = vmax.f32 %v982_v18, 0.0  ;;  %v1051_v11 = vrot.slane %v1050_v19, 2 }
 0x139   :  { %v1056_v30 = vrot.slane %v1055_v8, 4  ;;  %v999_v33 = vmax.f32 %v983_v9, 0.0  ;;  %v984_v17 = vadd.f32 %v5606_v12, %v956_v35  ;;  %v957_v23 = vadd.f32 %v931_v15, %v763_v22  ;;  %v1019_v9 = vld [vmem:[%s6921_s2 + $0x78] sm:$0xff] }
 0x13a   :  { %v1063_v26 = vsel %vm1045_vm5, %v1029_v44, -inf  ;;  %v935_v29 = vpop.f32.mrf.mxu0  ;;  %v1043_v46 = vrot.slane %v1042_v42, 1  ;;  %v1030_v61 = vadd.f32 %v1014_v16, %v998_v58  ;;  %v1052_v57 = vmax.f32 %v1050_v19, %v1051_v11 }
 0x13b   :  { %v1057_v47 = vmax.f32 %v1055_v8, %v1056_v30  ;;  %v1064_v49 = vmax.f32 %v1062_v34, %v1063_v26  ;;  %v1031_v39 = vadd.f32 %v1015_v45, %v999_v33  ;;  %v1000_v13 = vmax.f32 %v984_v17, 0.0  ;;  %v1021_v34 = vld [vmem:[%s6921_s2 + $0x88] sm:$0xff] }
 0x13c   :  { %v985_v37 = vadd.f32 %v5609_v20, %v957_v23  ;;  %v958_v50 = vadd.f32 %v935_v29, %v764_v7  ;;  %v937_v52 = vpop.f32.mrf.mxu0  ;;  %v1044_v4 = vmax.f32 %v1042_v42, %v1043_v46  ;;  %v1018_v7 = vld [vmem:[%s6921_s2 + $0x70] sm:$0xff]  ;;  %v1053_v36 = vrot.slane %v1052_v57, 1 }
 0x13d   :  { %v1058_v41 = vrot.slane %v1057_v47, 2  ;;  %v1065_v53 = vrot.slane %v1064_v49, 4  ;;  %v959_v56 = vadd.f32 %v937_v52, %v765_v14  ;;  %v1032_v60 = vadd.f32 %v1016_v51, %v1000_v13 }
 0x13e   :  { %v1001_v62 = vmax.f32 %v985_v37, 0.0  ;;  %v986_v21 = vadd.f32 %v5606_v12, %v958_v50  ;;  %v941_v1 = vpop.f32.mrf.mxu0  ;;  %v1078_v5 = vsel %vm1045_vm5, %v1031_v39, -inf  ;;  %v1054_v16 = vmax.f32 %v1052_v57, %v1053_v36  ;;  %v5800_v36 = vld [vmem:[%s6924_s5] ss:$8 sm:$0x7] }
 0x13f   :  { %v1059_v63 = vmax.f32 %v1057_v47, %v1058_v41  ;;  %v1066_v2 = vmax.f32 %v1064_v49, %v1065_v53  ;;  %v987_v3 = vadd.f32 %v5609_v20, %v959_v56  ;;  %v960_v10 = vadd.f32 %v941_v1, %v766_v43 }
 0x140   :  { %v1071_v48 = vmax.f32 %v1030_v61, %v1032_v60  ;;  %v1033_v24 = vadd.f32 %v1017_v54, %v1001_v62  ;;  %v943_v55 = vpop.f32.mrf.mxu0  ;;  %v1002_v0 = vmax.f32 %v986_v21, 0.0  ;;  %v6976_v41 = vlaneseq  ;;  %v6977_v21 = vld [vmem:[#allocation5_spill] sm:$0xff] }
 0x141   :  { %v1060_v25 = vrot.slane %v1059_v63, 1  ;;  %v1067_v28 = vrot.slane %v1066_v2, 2  ;;  %v988_v18 = vadd.f32 %v5606_v12, %v960_v10  ;;  %v1003_v19 = vmax.f32 %v987_v3, 0.0  ;;  %v1020_v12 = vld [vmem:[%s6921_s2 + $0x80] sm:$0xff]  ;;  %s3780_s2 = sshll.u32 %s4611_s21, 4  ;;  %s3781_s2 = int_to_ptr.vmem [resolvable:$true] %s3780_s2 }
 0x142   :  { %v1072_v6 = vrot.slane %v1071_v48, 4  ;;  %v1079_v22 = vsel %vm1045_vm5, %v1033_v24, -inf  ;;  %v961_v40 = vadd.f32 %v943_v55, %v767_v27  ;;  %v1034_v15 = vadd.f32 %v1018_v7, %v1002_v0  ;;  %v5751_v0 = vld [vmem:[%s6923_s4 + $0x18] sm:$0xff]  ;;  %v5776_v7 = vld [vmem:[%s6923_s4] sm:$0xff]  ;;  %s4583_s22 = scalar_lea.vmem %s3781_s2, 32  ;;  %p4588_p1 = scmp.lt.s32.totalorder %s3781_s2, %s3781_s2 }
 0x143   :  { %v1061_v38 = vmax.f32 %v1059_v63, %v1060_v25  ;;  %v1068_v42 = vmax.f32 %v1066_v2, %v1067_v28  ;;  %v1080_v8 = vmax.f32 %v1078_v5, %v1079_v22  ;;  %v1004_v43 = vmax.f32 %v988_v18, 0.0  ;;  %v5758_v18 = vld [vmem:[%s6923_s4 + $0x10] sm:$0xff]  ;;  %v5767_v22 = vld [vmem:[%s6923_s4 + $0x8] sm:$0xff]  ;;  %p4584_p0 = scmp.ne.s32.totalorder %s3781_s2, %s4583_s22  ;;  %p4589_p2 = scmp.lt.s32.totalorder %s4583_s22, %s4583_s22 }
 0x144   :  { %v1073_v14 = vmax.f32 %v1071_v48, %v1072_v6  ;;  %v989_v32 = vadd.f32 %v5609_v20, %v961_v40  ;;  %v1035_v33 = vadd.f32 %v1019_v9, %v1003_v19  ;;  %v5724_v53 = vand.u32 127, %v6976_v41 }
 0x145   :  { %v1069_v44 = vrot.slane %v1068_v42, 1  ;;  %v1081_v35 = vrot.slane %v1080_v8, 4  ;;  %v1104_v30 = vsel %vm1103_vm6, %v1044_v4, %v1061_v38  ;;  %v1036_v45 = vadd.f32 %v1020_v12, %v1004_v43  ;;  %p4590_p3 = por %p4589_p2, %p4588_p1 }
 0x146   :  { %v1074_v58 = vrot.slane %v1073_v14, 2  ;;  %v1005_v11 = vmax.f32 %v989_v32, 0.0  ;;  %v1094_v49 = vsel %vm1045_vm5, %v1035_v33, -inf  ;;  %vm1115_vm8 = vcmp.lt.s32.totalorder %v6977_v21, 2 }
 0x147   :  { %v1082_v26 = vmax.f32 %v1080_v8, %v1081_v35  ;;  %v1070_v17 = vmax.f32 %v1068_v42, %v1069_v44  ;;  %v1087_v29 = vmax.f32 %v1034_v15, %v1036_v45  ;;  %vm1116_vm9 = vcmp.lt.s32.totalorder %v5724_v53, 96  ;;  %vm5733_vm11 = vmxor %vm1115_vm8, %vm4606_vm10  ;;  %p4591_p4 = pnand %p4590_p3, %p4584_p0 }
 0x148   :  { %v1075_v23 = vmax.f32 %v1073_v14, %v1074_v58  ;;  %v1037_v27 = vadd.f32 %v1021_v34, %v1005_v11  ;;  %vm1121_vm13 = vmxor %vm1116_vm9, %vm4606_vm10  ;;  %v6980_v6 = vmov 0.0   ;;  %v5794_v19 = vshra.s32 %v5724_v53, 4 }
 0x149   :  { %v1083_v20 = vrot.slane %v1082_v26, 2  ;;  %v1105_v46 = vsel %vm1103_vm6, %v1054_v16, %v1070_v17  ;;  %v1088_v51 = vrot.slane %v1087_v29, 4  ;;  %vm1118_vm14 = vmand %vm1115_vm8, %vm1116_vm9  ;;  %v1218_v40 = vsub.s32 2, %v6977_v21 }
 0x14a   :  { %v1076_v47 = vrot.slane %v1075_v23, 1  ;;  %v1095_v39 = vsel %vm1045_vm5, %v1037_v27, -inf  ;;  %vm1123_vm15 = vmand %vm5733_vm11, %vm1121_vm13  ;;  %v1130_v38 = vand.u32 1, %v5794_v19  ;;  %v1211_v42 = vrot.slane %v5800_v36, %v5591_v31 }
 0x14b   :  { %v1084_v13 = vmax.f32 %v1082_v26, %v1083_v20  ;;  %v1096_v37 = vmax.f32 %v1094_v49, %v1095_v39  ;;  %v1089_v52 = vmax.f32 %v1087_v29, %v1088_v51  ;;  %vm1125_vm0 = vmor %vm1118_vm14, %vm1123_vm15  ;;  %v1219_v8 = vrot.slane %v5800_v36, %v1218_v40  ;;  %v1670_v49 = vld [vmem:[%s6922_s3 + $0x280] sm:$0xff]  ;;  %v1667_v51 = vld [vmem:[%s6922_s3 + $0x268] sm:$0xff] }
 0x14c   :  { %v1077_v50 = vmax.f32 %v1075_v23, %v1076_v47  ;;  %vm5808_vm3 = vcmp.eq.s32.totalorder %v1130_v38, 0  ;;  %vm1132_vm4 = vcmp.ge.s32.totalorder %v5724_v53, 64  ;;  %v1673_v47 = vld [vmem:[%s6922_s3 + $0x298] sm:$0xff]  ;;  %v1664_v39 = vld [vmem:[%s6922_s3 + $0x250] sm:$0xff]  ;;  %vm6937_vm6 = vcmask 261120   ;;  %v2603_v26 = vld [vmem:[%s6925_s6 + $0xa8] sm:$0xff] }
 0x14d   :  { %v1097_v61 = vrot.slane %v1096_v37, 4  ;;  %v1085_v54 = vrot.slane %v1084_v13, 1  ;;  %v1090_v56 = vrot.slane %v1089_v52, 2  ;;  %v1215_v41 = vrot.slane %v5800_v36, %v5599_v59 }
 0x14e   :  { %v1107_v57 = vsel %vm6936_vm7, %v1104_v30, %v1077_v50 }
 0x14f   :  { %v1098_v60 = vmax.f32 %v1096_v37, %v1097_v61  ;;  %v1086_v62 = vmax.f32 %v1084_v13, %v1085_v54  ;;  %v1091_v1 = vmax.f32 %v1089_v52, %v1090_v56 }
 0x151   :  { %v1099_v63 = vrot.slane %v1098_v60, 2  ;;  %v1108_v2 = vsel %vm6936_vm7, %v1105_v46, %v1086_v62  ;;  %v1092_v3 = vrot.slane %v1091_v1, 1 }
 0x153   :  { %v1100_v4 = vmax.f32 %v1098_v60, %v1099_v63  ;;  %v1093_v5 = vmax.f32 %v1091_v1, %v1092_v3 }
 0x155   :  { %v1101_v48 = vrot.slane %v1100_v4, 1  ;;  %v1110_v24 = vsel %vm1109_vm12, %v1107_v57, %v1093_v5 }
 0x157   :  { %v1102_v55 = vmax.f32 %v1100_v4, %v1101_v48 }
 0x159   :  { %v1111_v25 = vsel %vm1109_vm12, %v1108_v2, %v1102_v55 }
 0x15a   :  { %v1128_v28 = vsel %vm5733_vm11, %v1111_v25, 0.0  ;;  %v1845_v25 = vld [vmem:[%s6922_s3 + $0x2f8] sm:$0xff] }
 0x15b   :  { %3828 = vmatprep.mubr.msk.f32.mxu1 %vm1045_vm5, %v1128_v28  ;;  %3830 = vmatprep.mubr.msk.f32.mxu0 %vm1045_vm5, %v1128_v28  ;;  %vm5827_vm5 = vmand %vm1132_vm4, %vm1116_vm9  ;;  %v1842_v28 = vld [vmem:[%s6922_s3 + $0x2e0] sm:$0xff] }
 0x15c   :  { %3829 = vmatmul.mubr.msk.f32.vlgmr.msra.gmra.mxu1 %vm1125_vm0, %v1110_v24  ;;  %3831 = vmatmul.mubr.msk.f32.vlgmr.msra.gmra.mxu0 %vm1125_vm0, %v1110_v24 }
 0x15d   :  { %4159 = vmatpush3.msra.mxu1 %v5751_v0  ;;  %4166 = vmatprep.mubr.msk.f32.mxu1 %vm6933_vm2, %v6980_v6 }
 0x15e   :  { %4160 = vmatprep.subr.mxu1 %v6980_v6  ;;  %4199 = vmatprep.mubr.msk.f32.mxu0 %vm6933_vm2, %v6980_v6 }
 0x15f   :  { %4161 = vmatpush3.msra.mxu1 %v5758_v18  ;;  %4192 = vmatpush3.msra.mxu0 %v1673_v47 }
 0x160   :  { %4162 = vmatprep.subr.mxu1 %v6980_v6  ;;  %4193 = vmatprep.subr.mxu0 %v6980_v6 }
 0x161   :  { %4163 = vmatpush3.msra.mxu1 %v5767_v22  ;;  %4194 = vmatpush3.msra.mxu0 %v1670_v49 }
 0x162   :  { %4164 = vmatprep.subr.mxu1 %v6980_v6  ;;  %4195 = vmatprep.subr.mxu0 %v6980_v6 }
 0x163   :  { %4165 = vmatpush3.msra.mxu1 %v5776_v7  ;;  %4196 = vmatpush3.msra.mxu0 %v1667_v51 }
 0x164   :  { %4167 = vmatmul.mubr.f32.vlgmr.msra.gmra.mxu1 %v6980_v6  ;;  %4169 = vmatprep.subr.mxu1 %v6980_v6 }
 0x165   :  { %4170 = vmatpush3.msra.mxu1 %v5751_v0  ;;  %4177 = vmatprep.mubr.msk.f32.mxu1 %vm6933_vm2, %v6980_v6 }
 0x166   :  { %4171 = vmatprep.subr.mxu1 %v6980_v6  ;;  %4197 = vmatprep.subr.mxu0 %v6980_v6 }
 0x167   :  { %4172 = vmatpush3.msra.mxu1 %v5758_v18  ;;  %4198 = vmatpush3.msra.mxu0 %v1664_v39 }
 0x168   :  { %4173 = vmatprep.subr.mxu1 %v6980_v6  ;;  %4202 = vmatprep.subr.mxu0 %v6980_v6 }
 0x169   :  { %4174 = vmatpush3.msra.mxu1 %v5767_v22 }
 0x16a   :  { %4175 = vmatprep.subr.mxu1 %v6980_v6 }
 0x16b   :  { %4176 = vmatpush3.msra.mxu1 %v5776_v7 }
 0x16c   :  { %4180 = vmatprep.subr.mxu1 %v6980_v6 }
 0x21c   :  { %v1292_v9 = vpop.f32.mrf.mxu1  ;;  %v1363_v12 = vpop.f32.mrf.mxu0 }
 0x21d   :  { %v5812_v43 = vadd.f32 %v1292_v9, %v1211_v42  ;;  %v5814_v32 = vadd.f32 %v1363_v12, %v1219_v8  ;;  %v1671_v42 = vld [vmem:[%s6922_s3 + $0x288] sm:$0xff]  ;;  %v1669_v9 = vld [vmem:[%s6922_s3 + $0x278] sm:$0xff]  ;;  %v1668_v12 = vld [vmem:[%s6922_s3 + $0x270] sm:$0xff] }
 0x21e   :  { %v1365_v44 = vpop.f32.mrf.mxu0  ;;  %v1294_v15 = vpop.f32.mrf.mxu1 }
 0x21f   :  { %v1563_v35 = vsel %vm5808_vm3, %v5814_v32, %v5812_v43  ;;  %v1371_v34 = vsel %vm5808_vm3, %v5812_v43, %v5814_v32  ;;  %v1295_v61 = vadd.f32 %v1294_v15, %v1215_v41  ;;  %v1666_v44 = vld [vmem:[%s6922_s3 + $0x260] sm:$0xff]  ;;  %v1665_v15 = vld [vmem:[%s6922_s3 + $0x258] sm:$0xff] }
 0x224   :  { %v1442_v30 = vpop.f32.mrf.mxu1 }
 0x225   :  { %v1443_v58 = vadd.f32 %v1442_v30, %v1371_v34  ;;  %v1663_v34 = vld [vmem:[%s6922_s3 + $0x248] sm:$0xff]  ;;  %v1662_v30 = vld [vmem:[%s6922_s3 + $0x240] sm:$0xff] }
 0x226   :  { %v4168_v33 = vpop.f32.mrf.mxu1 }
 0x227   :  { %4521 = vtanh.f32 %v1443_v58  ;;  %v1844_v58 = vld [vmem:[%s6922_s3 + $0x2f0] sm:$0xff]  ;;  %v1843_v33 = vld [vmem:[%s6922_s3 + $0x2e8] sm:$0xff] }
 0x234   :  { %v4522_v45 = vpop.eup %4521 }
 0x235   :  { %v1447_v11 = vmul.f32 0.5, %v4522_v45 }
 0x237   :  { %v1448_v16 = vadd.f32 0.5, %v1447_v11  ;;  %v1840_v11 = vld [vmem:[%s6922_s3 + $0x2d0] sm:$0xff] }
 0x239   :  { %v1449_v17 = vsel %vm5827_vm5, %v4522_v45, %v1448_v16  ;;  %v1841_v45 = vld [vmem:[%s6922_s3 + $0x2d8] sm:$0xff]  ;;  %v1838_v16 = vld [vmem:[%s6922_s3 + $0x2c0] sm:$0xff] }
 0x23a   :  { %1452 = vrot.lane.b32.xlu0 %v1449_v17, %s4608_s30  ;;  %v1450_v27 = vmul.f32 0.0, %v1449_v17 }
 0x2ac   :  { %v1453_v23 = vpop.permute.xlu0 %1452 }
 0x2ad   :  { %v1455_v29 = vmul.f32 %v1453_v23, %v1449_v17  ;;  %v1835_v23 = vld [vmem:[%s6922_s3 + $0x2a8] sm:$0xff] }
 0x2af   :  { %1457 = vrot.lane.b32.xlu0 %v1455_v29, %s4609_s9  ;;  %v1834_v29 = vld [vmem:[%s6922_s3 + $0x2a0] sm:$0xff] }
 0x321   :  { %v1458_v20 = vpop.permute.xlu0 %1457 }
 0x322   :  { %v1460_v46 = vadd.f32 %v1458_v20, %v1450_v27  ;;  %v5960_v27 = vld [vmem:[%s6924_s5 + $0x18] ss:$8 sm:$0x7] }
 0x323   :  { %v1827_v20 = vrot.slane %v5960_v27, %v1218_v40 }
 0x324   :  { %4523 = vtanh.f32 %v1460_v46 }
 0x331   :  { %v4524_v13 = vpop.eup %4523 }
 0x332   :  { %1463 = vrot.lane.b32.xlu1 %v4524_v13, %s4608_s30 }
 0x3a4   :  { %v1464_v37 = vpop.permute.xlu1 %1463 }
 0x3a5   :  { %v1466_v50 = vmul.f32 %v1464_v37, %v1449_v17  ;;  %v1837_v17 = vld [vmem:[%s6922_s3 + $0x2b8] sm:$0xff] }
 0x3a7   :  { %1468 = vrot.lane.b32.xlu1 %v1466_v50, %s4609_s9 }
 0x419   :  { %v5853_v52 = vpop.permute.xlu1 %1468 }
 0x41a   :  { %4178 = vmatmul.mubr.msk.f32.vlgmr.msra.gmra.mxu1 %vm6937_vm6, %v5853_v52  ;;  %4200 = vmatmul.mubr.msk.f32.vlgmr.msra.gmra.mxu0 %vm6937_vm6, %v5853_v52 }
 0x41b   :  { %4181 = vmatpush3.msra.mxu1 %v5751_v0  ;;  %4188 = vmatprep.mubr.msk.f32.mxu1 %vm6933_vm2, %v6980_v6  ;;  %v1672_v0 = vld [vmem:[%s6922_s3 + $0x290] sm:$0xff] }
 0x41c   :  { %4182 = vmatprep.subr.mxu1 %v6980_v6  ;;  %4210 = vmatprep.mubr.msk.f32.mxu0 %vm6933_vm2, %v6980_v6 }
 0x41d   :  { %4183 = vmatpush3.msra.mxu1 %v5758_v18  ;;  %4203 = vmatpush3.msra.mxu0 %v1845_v25  ;;  %v1839_v18 = vld [vmem:[%s6922_s3 + $0x2c8] sm:$0xff] }
 0x41e   :  { %4184 = vmatprep.subr.mxu1 %v6980_v6  ;;  %4204 = vmatprep.subr.mxu0 %v6980_v6 }
 0x41f   :  { %4185 = vmatpush3.msra.mxu1 %v5767_v22  ;;  %4205 = vmatpush3.msra.mxu0 %v1842_v28  ;;  %v1836_v22 = vld [vmem:[%s6922_s3 + $0x2b0] sm:$0xff] }
 0x420   :  { %4186 = vmatprep.subr.mxu1 %v6980_v6  ;;  %4206 = vmatprep.subr.mxu0 %v6980_v6 }
 0x421   :  { %4187 = vmatpush3.msra.mxu1 %v5776_v7  ;;  %4207 = vmatpush3.msra.mxu0 %v1839_v18 }
 0x422   :  { %1698 = vmatprep.subr.mxu1 %v1672_v0  ;;  %4208 = vmatprep.subr.mxu0 %v6980_v6  ;;  %v2154_v0 = vld [vmem:[%s6923_s4 + $0x38] sm:$0xff] }
 0x423   :  { %4209 = vmatpush3.msra.mxu0 %v1836_v22  ;;  %v2153_v22 = vld [vmem:[%s6923_s4 + $0x30] sm:$0xff] }
 0x424   :  { %4213 = vmatprep.subr.mxu0 %v6980_v6 }
 0x4da   :  { %v1538_v54 = vpop.f32.mrf.mxu1  ;;  %v5872_v56 = vpop.f32.mrf.mxu0 }
 0x4db   :  { %v1539_v57 = vadd.f32 %v1538_v54, %v1295_v61 }
 0x4dc   :  { %v4179_v60 = vpop.f32.mrf.mxu1  ;;  %v4201_v62 = vpop.f32.mrf.mxu0 }
 0x4dd   :  { %4525 = vtanh.f32 %v1539_v57  ;;  %v1999_v57 = vld [vmem:[%s6922_s3 + $0x348] sm:$0xff]  ;;  %v1997_v60 = vld [vmem:[%s6922_s3 + $0x338] sm:$0xff] }
 0x4de   :  { %v2001_v62 = vld [vmem:[%s6922_s3 + $0x358] sm:$0xff] }
 0x4ea   :  { %v4526_v1 = vpop.eup %4525 }
 0x4eb   :  { %v1543_v63 = vmul.f32 0.5, %v4526_v1 }
 0x4ed   :  { %v1544_v2 = vadd.f32 0.5, %v1543_v63  ;;  %v1994_v63 = vld [vmem:[%s6922_s3 + $0x320] sm:$0xff] }
 0x4ef   :  { %v1545_v3 = vsel %vm5827_vm5, %v4526_v1, %v1544_v2  ;;  %v1996_v1 = vld [vmem:[%s6922_s3 + $0x330] sm:$0xff]  ;;  %v1998_v2 = vld [vmem:[%s6922_s3 + $0x340] sm:$0xff] }
 0x4f0   :  { %1548 = vrot.lane.b32.xlu0 %v1545_v3, %s4608_s30  ;;  %v1546_v48 = vmul.f32 %v1545_v3, %v1460_v46  ;;  %v1833_v46 = vadd.f32 %v1827_v20, %v5872_v56  ;;  %v2000_v56 = vld [vmem:[%s6922_s3 + $0x350] sm:$0xff] }
 0x562   :  { %v1549_v4 = vpop.permute.xlu0 %1548 }
 0x563   :  { %v1551_v5 = vmul.f32 %v1549_v4, %v1545_v3  ;;  %v1995_v4 = vld [vmem:[%s6922_s3 + $0x328] sm:$0xff] }
 0x565   :  { %1553 = vrot.lane.b32.xlu1 %v1551_v5, %s4609_s9  ;;  %v1991_v5 = vld [vmem:[%s6922_s3 + $0x308] sm:$0xff] }
 0x5d7   :  { %v1554_v24 = vpop.permute.xlu1 %1553 }
 0x5d8   :  { %v5878_v55 = vadd.f32 %v1554_v24, %v1546_v48  ;;  %v1990_v48 = vld [vmem:[%s6922_s3 + $0x300] sm:$0xff]  ;;  %v1992_v24 = vld [vmem:[%s6922_s3 + $0x310] sm:$0xff] }
 0x5da   :  { %4527 = vtanh.f32 %v5878_v55 }
 0x5e7   :  { %v4528_v7 = vpop.eup %4527 }
 0x5e8   :  { %1559 = vrot.lane.b32.xlu0 %v4528_v7, %s4608_s30  ;;  %v2152_v7 = vld [vmem:[%s6923_s4 + $0x28] sm:$0xff] }
 0x65a   :  { %v1560_v36 = vpop.permute.xlu0 %1559 }
 0x65b   :  { %v1562_v38 = vmul.f32 %v1560_v36, %v1545_v3  ;;  %v1993_v3 = vld [vmem:[%s6922_s3 + $0x318] sm:$0xff]  ;;  %v2151_v36 = vld [vmem:[%s6923_s4 + $0x20] sm:$0xff] }
 0x65d   :  { %1565 = vrot.lane.b32.xlu1 %v1562_v38, %s4609_s9 }
 0x6cf   :  { %v1566_v8 = vpop.permute.xlu1 %1565 }
 0x6d0   :  { %4189 = vmatmul.mubr.msk.f32.vlgmr.msra.gmra.mxu1 %vm6937_vm6, %v1566_v8  ;;  %4211 = vmatmul.mubr.msk.f32.vlgmr.msra.gmra.mxu0 %vm6937_vm6, %v1566_v8 }
 0x6d1   :  { %1699 = vmatpush1.msra.mxu1 %v1671_v42  ;;  %1738 = vmatprep.mubr.f32.mxu1 %v6980_v6 }
 0x6d2   :  { %1700 = vmatprep.subr.mxu1 %v1669_v9  ;;  %4221 = vmatprep.mubr.msk.f32.mxu0 %vm6933_vm2, %v6980_v6 }
 0x6d3   :  { %1701 = vmatpush1.msra.mxu1 %v1668_v12  ;;  %4214 = vmatpush3.msra.mxu0 %v2001_v62  ;;  %v1823_v12 = vrot.slane %v5960_v27, %v5599_v59 }
 0x6d4   :  { %1702 = vmatprep.subr.mxu1 %v1666_v44  ;;  %4215 = vmatprep.subr.mxu0 %v6980_v6 }
 0x6d5   :  { %1703 = vmatpush1.msra.mxu1 %v1665_v15  ;;  %4216 = vmatpush3.msra.mxu0 %v1998_v2 }
 0x6d6   :  { %1704 = vmatprep.subr.mxu1 %v1663_v34  ;;  %4217 = vmatprep.subr.mxu0 %v6980_v6 }
 0x6d7   :  { %1705 = vmatpush1.msra.mxu1 %v1662_v30  ;;  %4218 = vmatpush3.msra.mxu0 %v1995_v4 }
 0x6d8   :  { %3835 = vmatmul.mubr.msk.f32.vlgmr.msra.gmra.mxu1 %vm6937_vm6, %v5853_v52  ;;  %1870 = vmatprep.subr.mxu1 %v1844_v58 }
 0x6d9   :  { %1871 = vmatpush1.msra.mxu1 %v1843_v33  ;;  %1910 = vmatprep.mubr.f32.mxu1 %v6980_v6 }
 0x6da   :  { %1872 = vmatprep.subr.mxu1 %v1841_v45  ;;  %4219 = vmatprep.subr.mxu0 %v6980_v6 }
 0x6db   :  { %1873 = vmatpush1.msra.mxu1 %v1840_v11  ;;  %4220 = vmatpush3.msra.mxu0 %v1992_v24  ;;  %v2454_v24 = vld [vmem:[%s6925_s6 + $0x70] sm:$0xff] }
 0x6dc   :  { %1874 = vmatprep.subr.mxu1 %v1838_v16  ;;  %4235 = vmatprep.subr.mxu0 %v6980_v6 }
 0x6dd   :  { %1875 = vmatpush1.msra.mxu1 %v1837_v17 }
 0x6de   :  { %1876 = vmatprep.subr.mxu1 %v1835_v23 }
 0x6df   :  { %1877 = vmatpush1.msra.mxu1 %v1834_v29 }
 0x6e0   :  { %3837 = vmatmul.mubr.msk.f32.vlgmr.msra.gmra.mxu1 %vm6937_vm6, %v1566_v8  ;;  %2031 = vmatprep.subr.mxu1 %v2000_v56  ;;  %v1819_v8 = vrot.slane %v5960_v27, %v5591_v31 }
 0x6e1   :  { %2071 = vmatprep.mubr.f32.mxu1 %v6980_v6  ;;  %2032 = vmatpush1.msra.mxu1 %v1999_v57 }
 0x6e2   :  { %2033 = vmatprep.subr.mxu1 %v1997_v60 }
 0x6e3   :  { %2034 = vmatpush1.msra.mxu1 %v1996_v1 }
 0x6e4   :  { %2035 = vmatprep.subr.mxu1 %v1994_v63 }
 0x6e5   :  { %2036 = vmatpush1.msra.mxu1 %v1993_v3 }
 0x6e6   :  { %2037 = vmatprep.subr.mxu1 %v1991_v5 }
 0x6e7   :  { %2038 = vmatpush1.msra.mxu1 %v1990_v48  ;;  %v2455_v48 = vld [vmem:[%s6925_s6 + $0x78] sm:$0xff] }
 0x6e8   :  { %4224 = vmatprep.subr.mxu1 %v6980_v6 }
 0x790   :  { %v1635_v47 = vpop.f32.mrf.mxu1  ;;  %v1983_v49 = vpop.f32.mrf.mxu0 }
 0x791   :  { %v1636_v51 = vadd.f32 %v1635_v47, %v1563_v35  ;;  %v5971_v39 = vadd.f32 %v1983_v49, %v1833_v46 }
 0x792   :  { %v4190_v13 = vpop.f32.mrf.mxu1  ;;  %v4212_v37 = vpop.f32.mrf.mxu0 }
 0x793   :  { %4529 = vtanh.f32 %v1636_v51 }
 0x798   :  { %v1740_v38 = vpop.f32.mrf.mxu1 }
 0x799   :  { %v1831_v44 = vadd.f32 %v1819_v8, %v1740_v38  ;;  %v2446_v8 = vld [vmem:[%s6925_s6 + $0x30] sm:$0xff] }
 0x79a   :  { %v1742_v42 = vpop.f32.mrf.mxu1 }
 0x79b   :  { %v1832_v34 = vadd.f32 %v1823_v12, %v1742_v42  ;;  %v2445_v12 = vld [vmem:[%s6925_s6 + $0x28] sm:$0xff] }
 0x7a0   :  { %v4530_v50 = vpop.eup %4529  ;;  %v1912_v9 = vpop.f32.mrf.mxu1 }
 0x7a1   :  { %v1640_v52 = vmul.f32 0.5, %v4530_v50  ;;  %v1987_v30 = vadd.f32 %v1912_v9, %v1831_v44  ;;  %v2444_v44 = vld [vmem:[%s6925_s6 + $0x20] sm:$0xff] }
 0x7a2   :  { %v1914_v15 = vpop.f32.mrf.mxu1 }
 0x7a3   :  { %v1641_v41 = vadd.f32 0.5, %v1640_v52  ;;  %v1988_v45 = vadd.f32 %v1914_v15, %v1832_v34  ;;  %v2443_v15 = vld [vmem:[%s6925_s6 + $0x18] sm:$0xff]  ;;  %v2442_v34 = vld [vmem:[%s6925_s6 + $0x10] sm:$0xff] }
 0x7a5   :  { %v1642_v40 = vsel %vm5827_vm5, %v4530_v50, %v1641_v41 }
 0x7a6   :  { %1645 = vrot.lane.b32.xlu0 %v1642_v40, %s4608_s30  ;;  %v1643_v43 = vmul.f32 %v1642_v40, %v5878_v55 }
 0x818   :  { %v1646_v61 = vpop.permute.xlu0 %1645 }
 0x819   :  { %v1648_v54 = vmul.f32 %v1646_v61, %v1642_v40 }
 0x81b   :  { %1650 = vrot.lane.b32.xlu1 %v1648_v54, %s4609_s9 }
 0x88d   :  { %v1651_v32 = vpop.permute.xlu1 %1650 }
 0x88e   :  { %v1653_v35 = vadd.f32 %v1651_v32, %v1643_v43 }
 0x890   :  { %4531 = vtanh.f32 %v1653_v35 }
 0x89d   :  { %v4532_v55 = vpop.eup %4531 }
 0x89e   :  { %1656 = vrot.lane.b32.xlu0 %v4532_v55, %s4608_s30  ;;  %v2453_v55 = vld [vmem:[%s6925_s6 + $0x68] sm:$0xff] }
 0x910   :  { %v1657_v25 = vpop.permute.xlu0 %1656 }
 0x911   :  { %v1659_v28 = vmul.f32 %v1657_v25, %v1642_v40  ;;  %v2452_v25 = vld [vmem:[%s6925_s6 + $0x60] sm:$0xff] }
 0x913   :  { %2003 = vrot.lane.b32.xlu1 %v1659_v28, %s4609_s9  ;;  %v2451_v28 = vld [vmem:[%s6925_s6 + $0x58] sm:$0xff] }
 0x985   :  { %v2004_v18 = vpop.permute.xlu1 %2003 }
 0x986   :  { %3839 = vmatmul.mubr.msk.f32.vlgmr.msra.gmra.mxu1 %vm6937_vm6, %v2004_v18  ;;  %4222 = vmatmul.mubr.msk.f32.vlgmr.msra.gmra.mxu0 %vm6937_vm6, %v2004_v18  ;;  %v2450_v18 = vld [vmem:[%s6925_s6 + $0x50] sm:$0xff] }
 0x987   :  { %4225 = vmatpush3.msra.mxu1 %v2154_v0  ;;  %4232 = vmatprep.mubr.msk.f32.mxu1 %vm6933_vm2, %v6980_v6 }
 0x988   :  { %4226 = vmatprep.subr.mxu1 %v6980_v6  ;;  %4236 = vmatpush3.msra.mxu0 %v2154_v0 }
 0x989   :  { %4227 = vmatpush3.msra.mxu1 %v2153_v22  ;;  %4237 = vmatprep.subr.mxu0 %v6980_v6 }
 0x98a   :  { %4228 = vmatprep.subr.mxu1 %v6980_v6  ;;  %4238 = vmatpush3.msra.mxu0 %v2153_v22 }
 0x98b   :  { %4229 = vmatpush3.msra.mxu1 %v2152_v7  ;;  %4239 = vmatprep.subr.mxu0 %v6980_v6 }
 0x98c   :  { %4230 = vmatprep.subr.mxu1 %v6980_v6  ;;  %4240 = vmatpush3.msra.mxu0 %v2152_v7 }
 0x98d   :  { %4231 = vmatpush3.msra.mxu1 %v2151_v36  ;;  %4241 = vmatprep.subr.mxu0 %v6980_v6 }
 0x98e   :  { %4233 = vmatmul.mubr.f32.vlgmr.msra.gmra.mxu1 %v6980_v6  ;;  %4242 = vmatpush3.msra.mxu0 %v2151_v36 }
 0x98f   :  { %4243 = vmatprep.mubr.msk.f32.mxu0 %vm6933_vm2, %v6980_v6  ;;  %4246 = vmatprep.subr.mxu1 %v6980_v6 }
 0x990   :  { %4247 = vmatpush3.msra.mxu1 %v2154_v0  ;;  %4254 = vmatprep.mubr.msk.f32.mxu1 %vm6933_vm2, %v6980_v6  ;;  %v2447_v0 = vld [vmem:[%s6925_s6 + $0x38] sm:$0xff] }
 0x991   :  { %4248 = vmatprep.subr.mxu1 %v6980_v6  ;;  %2480 = vmatprep.subr.mxu0 %v2455_v48  ;;  %v6989_v48 = vmov 0 }
 0x992   :  { %4249 = vmatpush3.msra.mxu1 %v2153_v22  ;;  %v2449_v22 = vld [vmem:[%s6925_s6 + $0x48] sm:$0xff] }
 0x993   :  { %4250 = vmatprep.subr.mxu1 %v6980_v6 }
 0x994   :  { %4251 = vmatpush3.msra.mxu1 %v2152_v7  ;;  %v2448_v7 = vld [vmem:[%s6925_s6 + $0x40] sm:$0xff] }
 0x995   :  { %4252 = vmatprep.subr.mxu1 %v6980_v6 }
 0x996   :  { %4253 = vmatpush3.msra.mxu1 %v2151_v36 }
 0x997   :  { %2551 = vmatprep.subr.mxu1 %v2447_v0  ;;  %v6239_v0 = vadd.s32 32, %v6977_v21 }
 0xa46   :  { %v2073_v58 = vpop.f32.mrf.mxu1  ;;  %v2144_v33 = vpop.f32.mrf.mxu0 }
 0xa47   :  { %v6056_v11 = vadd.f32 %v2073_v58, %v1987_v30  ;;  %v6059_v16 = vadd.f32 %v2144_v33, %v5971_v39  ;;  %v2441_v30 = vld [vmem:[%s6925_s6 + $0x8] sm:$0xff]  ;;  %v2440_v58 = vld [vmem:[%s6925_s6] sm:$0xff] }
 0xa48   :  { %v2075_v17 = vpop.f32.mrf.mxu1  ;;  %v4223_v23 = vpop.f32.mrf.mxu0 }
 0xa49   :  { %v2149_v29 = vadd.f32 %v2075_v17, %v1988_v45  ;;  %v2343_v59 = vsel %vm5808_vm3, %v6059_v16, %v6056_v11  ;;  %v2155_v31 = vsel %vm5808_vm3, %v6056_v11, %v6059_v16  ;;  %v2605_v11 = vld [vmem:[%s6925_s6 + $0xb8] sm:$0xff]  ;;  %v2604_v16 = vld [vmem:[%s6925_s6 + $0xb0] sm:$0xff] }
 0xa4e   :  { %v2222_v27 = vpop.f32.mrf.mxu1 }
 0xa4f   :  { %v2223_v20 = vadd.f32 %v2222_v27, %v2155_v31 }
 0xa50   :  { %v4234_v46 = vpop.f32.mrf.mxu1 }
 0xa51   :  { %4533 = vtanh.f32 %v2223_v20 }
 0xa5e   :  { %v4534_v47 = vpop.eup %4533 }
 0xa5f   :  { %v2227_v49 = vmul.f32 0.5, %v4534_v47 }
 0xa61   :  { %v2228_v51 = vadd.f32 0.5, %v2227_v49 }
 0xa63   :  { %v2229_v39 = vsel %vm5827_vm5, %v4534_v47, %v2228_v51  ;;  %v2601_v51 = vld [vmem:[%s6925_s6 + $0x98] sm:$0xff] }
 0xa64   :  { %2232 = vrot.lane.b32.xlu0 %v2229_v39, %s4608_s30  ;;  %v2230_v50 = vmul.f32 0.0, %v2229_v39 }
 0xad6   :  { %v2233_v13 = vpop.permute.xlu0 %2232 }
 0xad7   :  { %v2235_v37 = vmul.f32 %v2233_v13, %v2229_v39  ;;  %v2599_v13 = vld [vmem:[%s6925_s6 + $0x88] sm:$0xff] }
 0xad9   :  { %2237 = vrot.lane.b32.xlu1 %v2235_v37, %s4609_s9 }
 0xb4b   :  { %v2238_v52 = vpop.permute.xlu1 %2237 }
 0xb4c   :  { %v2240_v41 = vadd.f32 %v2238_v52, %v2230_v50  ;;  %v2598_v50 = vld [vmem:[%s6925_s6 + $0x80] sm:$0xff]  ;;  %v2831_v52 = vsel %vm6935_vm1, 1.0, %v6980_v6 }
 0xb4e   :  { %4535 = vtanh.f32 %v2240_v41 }
 0xb5b   :  { %v4536_v40 = vpop.eup %4535 }
 0xb5c   :  { %2243 = vrot.lane.b32.xlu0 %v4536_v40, %s4608_s30 }
 0xbce   :  { %v2244_v61 = vpop.permute.xlu0 %2243 }
 0xbcf   :  { %v2246_v54 = vmul.f32 %v2244_v61, %v2229_v39  ;;  %v2600_v39 = vld [vmem:[%s6925_s6 + $0x90] sm:$0xff] }
 0xbd1   :  { %2248 = vrot.lane.b32.xlu1 %v2246_v54, %s4609_s9  ;;  %v6181_v54 = vand.u32 15, %v5724_v53 }
 0xc43   :  { %v2249_v43 = vpop.permute.xlu1 %2248 }
 0xc44   :  { %4244 = vmatmul.mubr.msk.f32.vlgmr.msra.gmra.mxu0 %vm6937_vm6, %v2249_v43 }
 0xc45   :  { %2520 = vmatprep.mubr.f32.mxu0 %v6980_v6  ;;  %2481 = vmatpush1.msra.mxu0 %v2454_v24 }
 0xc46   :  { %2482 = vmatprep.subr.mxu0 %v2453_v55  ;;  %v6226_v55 = vadd.s32 40, %v6977_v21 }
 0xc47   :  { %2483 = vmatpush1.msra.mxu0 %v2452_v25  ;;  %v6991_v25 = vmov 0 }
 0xc48   :  { %2484 = vmatprep.subr.mxu0 %v2451_v28 }
 0xc49   :  { %2485 = vmatpush1.msra.mxu0 %v2450_v18  ;;  %v6993_v18 = vmov 0 }
 0xc4a   :  { %2486 = vmatprep.subr.mxu0 %v2449_v22  ;;  %v2739_v22 = vand.u32 15, %v6226_v55 }
 0xc4b   :  { %2487 = vmatpush1.msra.mxu0 %v2448_v7  ;;  %v6995_v7 = vmov 0 }
 0xc4c   :  { %2635 = vmatprep.subr.mxu0 %v2605_v11  ;;  %vm6266_vm3 = vcmp.eq.s32.totalorder %v2739_v22, %v6181_v54  ;;  %v7013_v11 = vmov 0 }
 0xd04   :  { %v2318_v32 = vpop.f32.mrf.mxu0 }
 0xd05   :  { %v2319_v35 = vadd.f32 %v2318_v32, %v2149_v29  ;;  %v6187_v32 = vadd.s32 80, %v6977_v21 }
 0xd06   :  { %v4245_v56 = vpop.f32.mrf.mxu0 }
 0xd07   :  { %4537 = vtanh.f32 %v2319_v35  ;;  %v6190_v35 = vadd.s32 72, %v6977_v21  ;;  %v6193_v56 = vadd.s32 64, %v6977_v21 }
 0xd14   :  { %v4538_v57 = vpop.eup %4537 }
 0xd15   :  { %v2323_v60 = vmul.f32 0.5, %v4538_v57 }
 0xd17   :  { %v2324_v62 = vadd.f32 0.5, %v2323_v60  ;;  %v2744_v60 = vand.u32 15, %v6187_v32 }
 0xd19   :  { %v2325_v1 = vsel %vm5827_vm5, %v4538_v57, %v2324_v62  ;;  %v2743_v62 = vand.u32 15, %v6190_v35  ;;  %vm6207_vm12 = vcmp.eq.s32.totalorder %v2744_v60, %v6181_v54 }
 0xd1a   :  { %2328 = vrot.lane.b32.xlu0 %v2325_v1, %s4608_s30  ;;  %v2326_v3 = vmul.f32 %v2325_v1, %v2240_v41 }
 0xd1b   :  { %vm6220_vm13 = vcmp.eq.s32.totalorder %v2743_v62, %v6181_v54 }
 0xd1c   :  { %v6990_v48 = vsel %vm6220_vm13, 4294967295, %v6989_v48 }
 0xd8c   :  { %v2329_v63 = vpop.permute.xlu0 %2328 }
 0xd8d   :  { %v2331_v2 = vmul.f32 %v2329_v63, %v2325_v1  ;;  %v6985_v63 = vmov 0 }
 0xd8f   :  { %2333 = vrot.lane.b32.xlu1 %v2331_v2, %s4609_s9  ;;  %v6987_v2 = vmov 0 }
 0xd90   :  { %v6988_v2 = vsel %vm6207_vm12, 4294967295, %v6987_v2 }
 0xe01   :  { %v2334_v4 = vpop.permute.xlu1 %2333 }
 0xe02   :  { %v2336_v5 = vadd.f32 %v2334_v4, %v2326_v3  ;;  %v2742_v3 = vand.u32 15, %v6193_v56  ;;  %v6213_v4 = vadd.s32 48, %v6977_v21 }
 0xe04   :  { %4539 = vtanh.f32 %v2336_v5  ;;  %vm6233_vm14 = vcmp.eq.s32.totalorder %v2742_v3, %v6181_v54  ;;  %v2740_v28 = vand.u32 15, %v6213_v4 }
 0xe05   :  { %v6992_v25 = vsel %vm6233_vm14, 4294967295, %v6991_v25 }
 0xe06   :  { %vm6256_vm0 = vcmp.eq.s32.totalorder %v2740_v28, %v6181_v54 }
 0xe07   :  { %v6996_v7 = vsel %vm6256_vm0, 4294967295, %v6995_v7 }
 0xe11   :  { %v4540_v36 = vpop.eup %4539 }
 0xe12   :  { %2339 = vrot.lane.b32.xlu0 %v4540_v36, %s4608_s30  ;;  %v2738_v36 = vand.u32 15, %v6239_v0 }
 0xe14   :  { %vm6275_vm4 = vcmp.eq.s32.totalorder %v2738_v36, %v6181_v54 }
 0xe84   :  { %v2340_v38 = vpop.permute.xlu0 %2339 }
 0xe85   :  { %v2342_v42 = vmul.f32 %v2340_v38, %v2325_v1  ;;  %v6199_v1 = vadd.s32 56, %v6977_v21  ;;  %v6997_v38 = vmov 0 }
 0xe86   :  { %v6998_v38 = vsel %vm6266_vm3, 4294967295, %v6997_v38 }
 0xe87   :  { %2345 = vrot.lane.b32.xlu1 %v2342_v42, %s4609_s9  ;;  %v2741_v24 = vand.u32 15, %v6199_v1  ;;  %v6999_v42 = vmov 0 }
 0xe88   :  { %v7000_v42 = vsel %vm6275_vm4, 4294967295, %v6999_v42 }
 0xe89   :  { %vm6246_vm15 = vcmp.eq.s32.totalorder %v2741_v24, %v6181_v54 }
 0xe8a   :  { %v6994_v18 = vsel %vm6246_vm15, 4294967295, %v6993_v18 }
 0xef9   :  { %v2346_v9 = vpop.permute.xlu1 %2345 }
 0xefa   :  { %4255 = vmatmul.mubr.msk.f32.vlgmr.msra.gmra.mxu1 %vm6937_vm6, %v2346_v9  ;;  %3843 = vmatmul.mubr.msk.f32.vlgmr.msra.gmra.mxu0 %vm6937_vm6, %v2346_v9 }
 0xefb   :  { %2552 = vmatpush1.msra.mxu1 %v2446_v8  ;;  %2591 = vmatprep.mubr.f32.mxu1 %v6980_v6  ;;  %v1114_v8 = vadd.s32 128, %v5724_v53 }
 0xefc   :  { %2553 = vmatprep.subr.mxu1 %v2445_v12  ;;  %2675 = vmatprep.mubr.f32.mxu0 %v6980_v6 }
 0xefd   :  { %2554 = vmatpush1.msra.mxu1 %v2444_v44  ;;  %2636 = vmatpush1.msra.mxu0 %v2604_v16  ;;  %vm2689_vm7 = vcmp.lt.s32.totalorder %v1114_v8, 144  ;;  %v2734_v16 = vand.u32 15, %v6977_v21 }
 0xefe   :  { %2555 = vmatprep.subr.mxu1 %v2443_v15  ;;  %2637 = vmatprep.subr.mxu0 %v2603_v26  ;;  %v6296_v15 = vadd.s32 24, %v6977_v21 }
 0xeff   :  { %2556 = vmatpush1.msra.mxu1 %v2442_v34  ;;  %v2793_v34 = vshra.s32 %v6187_v32, 4 }
 0xf00   :  { %2557 = vmatprep.subr.mxu1 %v2441_v30  ;;  %v2737_v30 = vand.u32 15, %v6296_v15 }
 0xf01   :  { %2558 = vmatpush1.msra.mxu1 %v2440_v58  ;;  %v6311_v58 = vadd.s32 16, %v6977_v21 }
 0xf02   :  { %3844 = vmatmul.mubr.msk.f32.vlgmr.msra.gmra.mxu1 %vm6937_vm6, %v2249_v43  ;;  %4257 = vmatprep.subr.mxu1 %v6980_v6  ;;  %v6184_v43 = vadd.s32 88, %v6977_v21 }
 0xf03   :  { %4281 = vmatprep.mubr.msk.f32.mxu1 %vm6933_vm2, %v6980_v6 }
 0xf04   :  { %v2745_v57 = vand.u32 15, %v6184_v43 }
 0xf06   :  { %vm6202_vm9 = vcmp.eq.s32.totalorder %v2745_v57, %v6181_v54 }
 0xf07   :  { %v6986_v63 = vsel %vm6202_vm9, 4294967295, %v6985_v63 }
 0xfba   :  { %v2415_v33 = vpop.f32.mrf.mxu1  ;;  %v2522_v9 = vpop.f32.mrf.mxu0 }
 0xfbb   :  { %v2416_v45 = vadd.f32 %v2415_v33, %v2343_v59  ;;  %v2602_v59 = vld [vmem:[%s6925_s6 + $0xa0] sm:$0xff] }
 0xfbc   :  { %v4256_v17 = vpop.f32.mrf.mxu1  ;;  %2638 = vmatpush1.msra.mxu0 %v2602_v59  ;;  %v2524_v33 = vpop.f32.mrf.mxu0 }
 0xfbd   :  { %4541 = vtanh.f32 %v2416_v45  ;;  %2639 = vmatprep.subr.mxu0 %v2601_v51  ;;  %v2788_v17 = vshra.s32 %v6226_v55, 4 }
 0xfbe   :  { %2640 = vmatpush1.msra.mxu0 %v2600_v39  ;;  %v7015_v39 = vmov 0 }
 0xfbf   :  { %2641 = vmatprep.subr.mxu0 %v2599_v13 }
 0xfc0   :  { %2642 = vmatpush1.msra.mxu0 %v2598_v50 }
 0xfc1   :  { %4284 = vmatprep.subr.mxu0 %v6980_v6 }
 0xfc2   :  { %v2593_v12 = vpop.f32.mrf.mxu1 }
 0xfc4   :  { %v2595_v45 = vpop.f32.mrf.mxu1 }
 0xfca   :  { %v4542_v23 = vpop.eup %4541 }
 0xfcb   :  { %v2420_v29 = vmul.f32 0.5, %v4542_v23 }
 0xfcd   :  { %v2421_v31 = vadd.f32 0.5, %v2420_v29  ;;  %v2736_v29 = vand.u32 15, %v6311_v58 }
 0xfcf   :  { %v2422_v27 = vsel %vm5827_vm5, %v4542_v23, %v2421_v31  ;;  %vm2684_vm5 = vcmp.lt.s32.totalorder %v5724_v53, 48  ;;  %v7009_v23 = vmov 0  ;;  %v6330_v31 = vadd.s32 8, %v6977_v21 }
 0xfd0   :  { %2425 = vrot.lane.b32.xlu0 %v2422_v27, %s4608_s30  ;;  %v2423_v47 = vmul.f32 %v2422_v27, %v2336_v5  ;;  %v4610_v5 = vmov 1.0  }
 0xfd1   :  { %4258 = vmatpush3.msk.msra.mxu1 %vm6202_vm9, %v4610_v5 }
 0xfd2   :  { %4259 = vmatprep.subr.mxu1 %v6980_v6 }
 0xfd3   :  { %4260 = vmatpush3.msk.msra.mxu1 %vm6207_vm12, %v4610_v5 }
 0xfd4   :  { %4261 = vmatprep.subr.mxu1 %v6980_v6 }
 0xfd5   :  { %4262 = vmatpush3.msk.msra.mxu1 %vm6220_vm13, %v4610_v5 }
 0xfd6   :  { %4263 = vmatprep.subr.mxu1 %v6980_v6 }
 0xfd7   :  { %4264 = vmatpush3.msk.msra.mxu1 %vm6233_vm14, %v4610_v5 }
 0xfd8   :  { %4265 = vmatprep.subr.mxu1 %v6980_v6 }
 0xfd9   :  { %4266 = vmatpush3.msk.msra.mxu1 %vm6246_vm15, %v4610_v5 }
 0xfda   :  { %4267 = vmatprep.subr.mxu1 %v6980_v6 }
 0xfdb   :  { %4268 = vmatpush3.msk.msra.mxu1 %vm6256_vm0, %v4610_v5 }
 0xfdc   :  { %4269 = vmatprep.subr.mxu1 %v6980_v6 }
 0xfdd   :  { %4270 = vmatpush3.msk.msra.mxu1 %vm6266_vm3, %v4610_v5  ;;  %vm6305_vm3 = vmxor %vm2689_vm7, %vm4606_vm10 }
 0xfde   :  { %4271 = vmatprep.subr.mxu1 %v6980_v6 }
 0xfdf   :  { %4272 = vmatpush3.msk.msra.mxu1 %vm6275_vm4, %v4610_v5 }
 0xfe0   :  { %4273 = vmatprep.subr.mxu1 %v6980_v6 }
0x1042   :  { %v2426_v20 = vpop.permute.xlu0 %2425 }
0x1043   :  { %v2428_v46 = vmul.f32 %v2426_v20, %v2422_v27 }
0x1045   :  { %2430 = vrot.lane.b32.xlu1 %v2428_v46, %s4609_s9  ;;  %v7011_v46 = vmov 0 }
0x10b7   :  { %v2431_v14 = vpop.permute.xlu1 %2430 }
0x10b8   :  { %v2433_v49 = vadd.f32 %v2431_v14, %v2423_v47  ;;  %v2735_v47 = vand.u32 15, %v6330_v31  ;;  %v2596_v14 = vadd.f32 %v2595_v45, %v2524_v33  ;;  %v2790_v33 = vshra.s32 %v6199_v1, 4 }
0x10b9   :  { %v2789_v45 = vshra.s32 %v6213_v4, 4 }
0x10ba   :  { %4543 = vtanh.f32 %v2433_v49 }
0x10c7   :  { %v4544_v37 = vpop.eup %4543 }
0x10c8   :  { %2436 = vrot.lane.b32.xlu0 %v4544_v37, %s4608_s30 }
0x10e7   :  { %2832 = vadd.xlane.f32.xlu0 %v2831_v52 }
0x113a   :  { %v2437_v41 = vpop.permute.xlu0 %2436 }
0x113b   :  { %v2439_v40 = vmul.f32 %v2437_v41, %v2422_v27  ;;  %v2594_v27 = vadd.f32 %v2593_v12, %v2522_v9  ;;  %v2794_v12 = vshra.s32 %v6184_v43, 4  ;;  %v2792_v43 = vshra.s32 %v6190_v35, 4 }
0x113d   :  { %2607 = vrot.lane.b32.xlu1 %v2439_v40, %s4609_s9 }
0x11af   :  { %v2608_v61 = vpop.permute.xlu1 %2607 }
0x11b0   :  { %3845 = vmatmul.mubr.msk.f32.vlgmr.msra.gmra.mxu0 %vm6937_vm6, %v2608_v61  ;;  %v2833_v61 = vpop.xlane.xlu0 %2832 }
0x11b1   :  { %4308 = vmatprep.mubr.msk.f32.mxu0 %vm6933_vm2, %v6980_v6  ;;  %vm2686_vm2 = vcmp.ge.s32.totalorder %v5724_v53, 96 }
0x11b2   :  { %vm2692_vm1 = vmor %vm2684_vm5, %vm2686_vm2  ;;  %vm7017_vm5 = vcmask 261120  }
0x11b3   :  { %vm6291_vm6 = vmxor %vm2692_vm1, %vm4606_vm10  ;;  %vm6324_vm10 = vcmp.eq.s32.totalorder %v2737_v30, %v6181_v54  ;;  %v2791_v30 = vshra.s32 %v6193_v56, 4 }
0x11b4   :  { %vm6300_vm4 = vmand %vm1115_vm8, %vm2692_vm1  ;;  %v7010_v23 = vsel %vm6324_vm10, 4294967295, %v7009_v23  ;;  %4274 = vmatpush3.msk.msra.mxu1 %vm6324_vm10, %v4610_v5 }
0x11b5   :  { %vm2698_vm2 = vmand %vm5733_vm11, %vm6291_vm6  ;;  %4275 = vmatprep.subr.mxu1 %v6980_v6 }
0x11b6   :  { %vm6319_vm1 = vmand %vm1115_vm8, %vm2689_vm7  ;;  %vm6343_vm8 = vcmp.eq.s32.totalorder %v2736_v29, %v6181_v54  ;;  %v2787_v29 = vshra.s32 %v6239_v0, 4 }
0x11b7   :  { %vm2699_vm6 = vmand %vm5733_vm11, %vm6305_vm3  ;;  %v7012_v46 = vsel %vm6343_vm8, 4294967295, %v7011_v46  ;;  %4276 = vmatpush3.msk.msra.mxu1 %vm6343_vm8, %v4610_v5  ;;  %vm6355_vm3 = vcmp.eq.s32.totalorder %v2735_v47, %v6181_v54  ;;  %v2784_v47 = vshra.s32 %v6330_v31, 4  ;;  %v7045_v31 = vmov 0 }
0x11b8   :  { %vm2700_vm7 = vmor %vm6300_vm4, %vm2698_vm2  ;;  %4277 = vmatprep.subr.mxu1 %v6980_v6  ;;  %v7014_v11 = vsel %vm6355_vm3, 4294967295, %v7013_v11  ;;  %vm6365_vm4 = vcmp.eq.s32.totalorder %v2734_v16, %v6181_v54  ;;  %v2834_v54 = vmul.f32 0.0625, %v2833_v61  ;;  %vm7018_vm2 = vcmask 1041408  }
0x11b9   :  { %vm2701_vm11 = vmor %vm6319_vm1, %vm2699_vm6  ;;  %4278 = vmatpush3.msk.msra.mxu1 %vm6355_vm3, %v4610_v5  ;;  %v7016_v39 = vsel %vm6365_vm4, 4294967295, %v7015_v39  ;;  %vm7019_vm1 = vcmask 785408   ;;  %vm7020_vm6 = vmmov 0  }
0x11ba   :  { %4279 = vmatprep.subr.mxu1 %v6980_v6  ;;  %4545 = vrcp.f32 %v2834_v54 }
0x11bb   :  { %4280 = vmatpush3.msk.msra.mxu1 %vm6365_vm4, %v4610_v5 }
0x11bc   :  { %4311 = vmatprep.subr.mxu1 %v6980_v6 }
0x11c7   :  { %v4546_v60 = vpop.eup %4545 }
0x1270   :  { %v2677_v20 = vpop.f32.mrf.mxu0 }
0x1271   :  { %v2682_v10 = vadd.f32 %v2677_v20, %v2594_v27  ;;  %v2786_v27 = vshra.s32 %v6296_v15, 4  ;;  %v2785_v20 = vshra.s32 %v6311_v58, 4  ;;  %v7041_v15 = vmov 0 }
0x1272   :  { %v2679_v49 = vpop.f32.mrf.mxu0  ;;  %v7043_v58 = vmov 0 }
0x1273   :  { %v2702_v26 = vsel %vm2700_vm7, %v2682_v10, 0.0  ;;  %v2683_v59 = vadd.f32 %v2679_v49, %v2596_v14  ;;  %vm7021_vm7 = vnez %v6998_v38  ;;  %v2783_v14 = vshra.s32 %v6977_v21, 4 }
0x1274   :  { %v2705_v51 = vrot.slane %v2702_v26, 2 }
0x1275   :  { %v2703_v13 = vsel %vm2701_vm11, %v2683_v59, 0.0  ;;  %vm7022_vm11 = vnez %v7000_v42 }
0x1276   :  { %v2707_v37 = vadd.f32 %v2705_v51, %v2702_v26  ;;  %v2709_v50 = vrot.slane %v2703_v13, 2 }
0x1278   :  { %v2711_v52 = vadd.f32 %v2709_v50, %v2703_v13  ;;  %v2714_v41 = vrot.slane %v2707_v37, 6 }
0x127a   :  { %2716 = vrot.lane.b32.xlu1 %v2714_v41, %s4609_s9  ;;  %v2715_v40 = vrot.slane %v2711_v52, 6 }
0x127e   :  { %2718 = vrot.lane.b32.xlu1 %v2715_v40, %s4609_s9 }
0x12ec   :  { %v2717_v57 = vpop.permute.xlu1 %2716 }
0x12f0   :  { %v2719_v62 = vpop.permute.xlu1 %2718 }
0x12f1   :  { %v2720_v3 = vsel %vm7017_vm5, %v2717_v57, %v2719_v62  ;;  %vm6942_vm5 = vcmask 781312  }
0x12f2   :  { %v6377_v24 = vsel %vm7018_vm2, %v2707_v37, %v2720_v3  ;;  %vm6438_vm2 = vcmp.eq.s32.totalorder %v2794_v12, %v5794_v19 }
0x12f3   :  { %v2837_v28 = vmul.f32 %v4546_v60, %v6377_v24  ;;  %4285 = vmatpush3.msk.msra.mxu0 %vm6438_vm2, %v4610_v5 }
0x12f4   :  { %4286 = vmatprep.subr.mxu0 %v6980_v6 }
0x12f5   :  { %4282 = vmatmul.mubr.msk.f32.vlgmr.msra.gmra.mxu1 %vm7019_vm1, %v2837_v28  ;;  %vm6448_vm1 = vcmp.eq.s32.totalorder %v2793_v34, %v5794_v19 }
0x12f6   :  { %4312 = vmatpush3.msk.msra.mxu1 %vm6202_vm9, %v4610_v5  ;;  %4335 = vmatprep.mubr.msk.f32.mxu1 %vm7020_vm6, %v6980_v6 }
0x12f7   :  { %4313 = vmatprep.subr.mxu1 %v6980_v6  ;;  %4287 = vmatpush3.msk.msra.mxu0 %vm6448_vm1, %v4610_v5 }
0x12f8   :  { %4314 = vmatpush3.msk.msra.mxu1 %vm6207_vm12, %v4610_v5  ;;  %4288 = vmatprep.subr.mxu0 %v6980_v6 }
0x12f9   :  { %4315 = vmatprep.subr.mxu1 %v6980_v6 }
0x12fa   :  { %4316 = vmatpush3.msk.msra.mxu1 %vm6220_vm13, %v4610_v5  ;;  %vm7047_vm13 = vcmask 785408  }
0x12fb   :  { %4317 = vmatprep.subr.mxu1 %v6980_v6 }
0x12fc   :  { %4318 = vmatpush3.msk.msra.mxu1 %vm6233_vm14, %v4610_v5  ;;  %vm6548_vm14 = vcmp.eq.s32.totalorder %v2783_v14, %v5794_v19 }
0x12fd   :  { %4319 = vmatprep.subr.mxu1 %v6980_v6  ;;  %v7046_v31 = vsel %vm6548_vm14, 4294967295, %v7045_v31 }
0x12fe   :  { %4320 = vmatpush3.msk.msra.mxu1 %vm6246_vm15, %v4610_v5  ;;  %vm6538_vm15 = vcmp.eq.s32.totalorder %v2784_v47, %v5794_v19 }
0x12ff   :  { %4321 = vmatprep.subr.mxu1 %v6980_v6  ;;  %v7044_v58 = vsel %vm6538_vm15, 4294967295, %v7043_v58 }
0x1300   :  { %4322 = vmatpush3.msk.msra.mxu1 %vm6256_vm0, %v4610_v5  ;;  %vm6528_vm0 = vcmp.eq.s32.totalorder %v2785_v20, %v5794_v19 }
0x1301   :  { %4323 = vmatprep.subr.mxu1 %v6980_v6  ;;  %v7042_v15 = vsel %vm6528_vm0, 4294967295, %v7041_v15 }
0x1302   :  { %4324 = vmatpush3.msk.msra.mxu1 %vm7021_vm7, %v4610_v5  ;;  %vm6518_vm7 = vcmp.eq.s32.totalorder %v2786_v27, %v5794_v19 }
0x1303   :  { %4325 = vmatprep.subr.mxu1 %v6980_v6 }
0x1304   :  { %4326 = vmatpush3.msk.msra.mxu1 %vm7022_vm11, %v4610_v5  ;;  %vm6508_vm11 = vcmp.eq.s32.totalorder %v2787_v29, %v5794_v19 }
0x1305   :  { %4327 = vmatprep.subr.mxu1 %v6980_v6 }
0x1306   :  { %4328 = vmatpush3.msk.msra.mxu1 %vm6324_vm10, %v4610_v5  ;;  %vm6498_vm10 = vcmp.eq.s32.totalorder %v2788_v17, %v5794_v19 }
0x1307   :  { %4329 = vmatprep.subr.mxu1 %v6980_v6 }
0x1308   :  { %4330 = vmatpush3.msk.msra.mxu1 %vm6343_vm8, %v4610_v5  ;;  %vm6488_vm8 = vcmp.eq.s32.totalorder %v2789_v45, %v5794_v19 }
0x1309   :  { %4331 = vmatprep.subr.mxu1 %v6980_v6 }
0x130a   :  { %4332 = vmatpush3.msk.msra.mxu1 %vm6355_vm3, %v4610_v5  ;;  %vm6478_vm3 = vcmp.eq.s32.totalorder %v2790_v33, %v5794_v19 }
0x130b   :  { %4333 = vmatprep.subr.mxu1 %v6980_v6 }
0x130c   :  { %4334 = vmatpush3.msk.msra.mxu1 %vm6365_vm4, %v4610_v5  ;;  %vm6468_vm4 = vcmp.eq.s32.totalorder %v2791_v30, %v5794_v19 }
0x130d   :  { %4365 = vmatprep.subr.mxu1 %v6980_v6 }
0x13b5   :  { %v6431_v22 = vpop.f32.mrf.mxu1 }
0x13b6   :  { %v2911_v36 = vmul.f32 %v6431_v22, %v6431_v22 }
0x13b7   :  { %v4283_v8 = vpop.f32.mrf.mxu1 }
0x13b8   :  { %v2913_v9 = vsel %vm6942_vm5, %v2911_v36, 0.0  ;;  %vm6458_vm5 = vcmp.eq.s32.totalorder %v2792_v43, %v5794_v19 }
0x13b9   :  { %2914 = vadd.xlane.f32.xlu1 %v2913_v9  ;;  %4289 = vmatpush3.msk.msra.mxu0 %vm6458_vm5, %v4610_v5 }
0x13ba   :  { %4290 = vmatprep.subr.mxu0 %v6980_v6 }
0x13bb   :  { %4291 = vmatpush3.msk.msra.mxu0 %vm6468_vm4, %v4610_v5 }
0x13bc   :  { %4292 = vmatprep.subr.mxu0 %v6980_v6 }
0x13bd   :  { %4293 = vmatpush3.msk.msra.mxu0 %vm6478_vm3, %v4610_v5 }
0x13be   :  { %4294 = vmatprep.subr.mxu0 %v6980_v6 }
0x13bf   :  { %4295 = vmatpush3.msk.msra.mxu0 %vm6488_vm8, %v4610_v5 }
0x13c0   :  { %4296 = vmatprep.subr.mxu0 %v6980_v6 }
0x13c1   :  { %4297 = vmatpush3.msk.msra.mxu0 %vm6498_vm10, %v4610_v5 }
0x13c2   :  { %4298 = vmatprep.subr.mxu0 %v6980_v6 }
0x13c3   :  { %4299 = vmatpush3.msk.msra.mxu0 %vm6508_vm11, %v4610_v5 }
0x13c4   :  { %4300 = vmatprep.subr.mxu0 %v6980_v6 }
0x13c5   :  { %4301 = vmatpush3.msk.msra.mxu0 %vm6518_vm7, %v4610_v5 }
0x13c6   :  { %4302 = vmatprep.subr.mxu0 %v6980_v6 }
0x13c7   :  { %4303 = vmatpush3.msk.msra.mxu0 %vm6528_vm0, %v4610_v5 }
0x13c8   :  { %4304 = vmatprep.subr.mxu0 %v6980_v6 }
0x13c9   :  { %4305 = vmatpush3.msk.msra.mxu0 %vm6538_vm15, %v4610_v5 }
0x13ca   :  { %4306 = vmatprep.subr.mxu0 %v6980_v6 }
0x13cb   :  { %4307 = vmatpush3.msk.msra.mxu0 %vm6548_vm14, %v4610_v5 }
0x13cc   :  { %4338 = vmatprep.subr.mxu0 %v6980_v6 }
0x1442   :  { %v2915_v10 = vpop.xlane.xlu1 %2914 }
0x1443   :  { %v2916_v49 = vmul.f32 0.16666667, %v2915_v10 }
0x1445   :  { %v2917_v21 = vadd.f32 1.0, %v2916_v49  ;;  %v2920_v16 = vadd.f32 1e-08, %v2916_v49 }
0x1447   :  { %4547 = vrcp.f32 %v2917_v21 }
0x1448   :  { %4549 = vrsqrt.f32 %v2920_v16 }
0x1454   :  { %v4548_v26 = vpop.eup %4547 }
0x1455   :  { %v4550_v59 = vpop.eup %4549  ;;  %v2919_v51 = vmul.f32 %v4548_v26, %v2916_v49 }
0x1456   :  { %v2922_v19 = vmul.f32 %v4550_v59, %v6431_v22 }
0x1458   :  { %v2923_v13 = vmul.f32 %v2922_v19, %v2919_v51 }
0x145a   :  { %v2924_v37 = vmul.f32 %v2923_v13, %v6377_v24 }
0x145c   :  { %4309 = vmatmul.mubr.msk.f32.vlgmr.msra.gmra.mxu0 %vm7047_vm13, %v2924_v37  ;;  %vm7048_vm13 = vcmask 781312  }
0x145d   :  { %4339 = vmatpush3.msk.msra.mxu0 %vm6438_vm2, %v4610_v5  ;;  %4362 = vmatprep.mubr.msk.f32.mxu0 %vm7020_vm6, %v6980_v6 }
0x145e   :  { %4340 = vmatprep.subr.mxu0 %v6980_v6 }
0x145f   :  { %4341 = vmatpush3.msk.msra.mxu0 %vm6448_vm1, %v4610_v5 }
0x1460   :  { %4342 = vmatprep.subr.mxu0 %v6980_v6 }
0x1461   :  { %4343 = vmatpush3.msk.msra.mxu0 %vm6458_vm5, %v4610_v5 }
0x1462   :  { %4344 = vmatprep.subr.mxu0 %v6980_v6 }
0x1463   :  { %4345 = vmatpush3.msk.msra.mxu0 %vm6468_vm4, %v4610_v5 }
0x1464   :  { %4346 = vmatprep.subr.mxu0 %v6980_v6 }
0x1465   :  { %4347 = vmatpush3.msk.msra.mxu0 %vm6478_vm3, %v4610_v5 }
0x1466   :  { %4348 = vmatprep.subr.mxu0 %v6980_v6 }
0x1467   :  { %4349 = vmatpush3.msk.msra.mxu0 %vm6488_vm8, %v4610_v5 }
0x1468   :  { %4350 = vmatprep.subr.mxu0 %v6980_v6 }
0x1469   :  { %4351 = vmatpush3.msk.msra.mxu0 %vm6498_vm10, %v4610_v5 }
0x146a   :  { %4352 = vmatprep.subr.mxu0 %v6980_v6 }
0x146b   :  { %4353 = vmatpush3.msk.msra.mxu0 %vm6508_vm11, %v4610_v5 }
0x146c   :  { %4354 = vmatprep.subr.mxu0 %v6980_v6 }
0x146d   :  { %4355 = vmatpush3.msk.msra.mxu0 %vm6518_vm7, %v4610_v5 }
0x146e   :  { %4356 = vmatprep.subr.mxu0 %v6980_v6 }
0x146f   :  { %4357 = vmatpush3.msk.msra.mxu0 %vm6528_vm0, %v4610_v5 }
0x1470   :  { %4358 = vmatprep.subr.mxu0 %v6980_v6 }
0x1471   :  { %4359 = vmatpush3.msk.msra.mxu0 %vm6538_vm15, %v4610_v5  ;;  %vm7049_vm15 = vmmov %vm7048_vm13 }
0x1472   :  { %4360 = vmatprep.subr.mxu0 %v6980_v6 }
0x1473   :  { %4361 = vmatpush3.msk.msra.mxu0 %vm6548_vm14, %v4610_v5  ;;  %vm7050_vm14 = vcmask 785408  }
0x1474   :  { %4392 = vmatprep.subr.mxu0 %v6980_v6 }
0x151c   :  { %v6609_v50 = vpop.f32.mrf.mxu0 }
0x151d   :  { %v2998_v52 = vsel %vm7048_vm13, %v6609_v50, -inf  ;;  %vm7053_vm13 = vnez %v6994_v18 }
0x151e   :  { %2999 = vmax.xlane.f32.xlu0 %v2998_v52  ;;  %v4310_v41 = vpop.f32.mrf.mxu0 }
0x15a7   :  { %v3000_v40 = vpop.xlane.xlu0 %2999 }
0x15a8   :  { %v3001_v61 = vsub.f32 %v6609_v50, %v3000_v40 }
0x15aa   :  { %v3002_v54 = vmul.f32 1.442695, %v3001_v61 }
0x15ac   :  { %4551 = vpow2.f32 %v3002_v54 }
0x15b9   :  { %v4552_v57 = vpop.eup %4551 }
0x15ba   :  { %v3004_v60 = vsel %vm7049_vm15, %v4552_v57, 0.0  ;;  %vm7051_vm15 = vnez %v6990_v48 }
0x15bb   :  { %3005 = vadd.xlane.f32.xlu0 %v3004_v60 }
0x1644   :  { %v3006_v62 = vpop.xlane.xlu0 %3005 }
0x1645   :  { %v3007_v3 = vmul.f32 0.0625, %v3006_v62 }
0x1647   :  { %4553 = vrcp.f32 %v3007_v3 }
0x1654   :  { %v4554_v28 = vpop.eup %4553 }
0x1655   :  { %v3009_v22 = vmul.f32 %v4554_v28, %v4552_v57 }
0x1657   :  { %v3010_v36 = vmul.f32 %v3009_v22, %v6377_v24 }
0x1659   :  { %4336 = vmatmul.mubr.msk.f32.vlgmr.msra.gmra.mxu1 %vm7050_vm14, %v3010_v36  ;;  %vm7052_vm14 = vnez %v6992_v25 }
0x165a   :  { %4366 = vmatpush3.msk.msra.mxu1 %vm6202_vm9, %v4610_v5  ;;  %4389 = vmatprep.mubr.msk.f32.mxu1 %vm7020_vm6, %v6980_v6 }
0x165b   :  { %4367 = vmatprep.subr.mxu1 %v6980_v6 }
0x165c   :  { %4368 = vmatpush3.msk.msra.mxu1 %vm6207_vm12, %v4610_v5  ;;  %vm7054_vm12 = vnez %v6996_v7 }
0x165d   :  { %4369 = vmatprep.subr.mxu1 %v6980_v6 }
0x165e   :  { %4370 = vmatpush3.msk.msra.mxu1 %vm7051_vm15, %v4610_v5  ;;  %vm7055_vm15 = vnez %v6998_v38 }
0x165f   :  { %4371 = vmatprep.subr.mxu1 %v6980_v6 }
0x1660   :  { %4372 = vmatpush3.msk.msra.mxu1 %vm7052_vm14, %v4610_v5  ;;  %vm7056_vm14 = vnez %v7000_v42 }
0x1661   :  { %4373 = vmatprep.subr.mxu1 %v6980_v6 }
0x1662   :  { %4374 = vmatpush3.msk.msra.mxu1 %vm7053_vm13, %v4610_v5  ;;  %vm7057_vm13 = vnez %v7010_v23 }
0x1663   :  { %4375 = vmatprep.subr.mxu1 %v6980_v6 }
0x1664   :  { %4376 = vmatpush3.msk.msra.mxu1 %vm7054_vm12, %v4610_v5  ;;  %vm7058_vm12 = vnez %v7012_v46 }
0x1665   :  { %4377 = vmatprep.subr.mxu1 %v6980_v6 }
0x1666   :  { %4378 = vmatpush3.msk.msra.mxu1 %vm7055_vm15, %v4610_v5  ;;  %vm7059_vm15 = vnez %v7014_v11 }
0x1667   :  { %4379 = vmatprep.subr.mxu1 %v6980_v6 }
0x1668   :  { %4380 = vmatpush3.msk.msra.mxu1 %vm7056_vm14, %v4610_v5  ;;  %vm7060_vm14 = vnez %v7016_v39 }
0x1669   :  { %4381 = vmatprep.subr.mxu1 %v6980_v6 }
0x166a   :  { %4382 = vmatpush3.msk.msra.mxu1 %vm7057_vm13, %v4610_v5  ;;  %vm7061_vm13 = vcmask 781312  }
0x166b   :  { %4383 = vmatprep.subr.mxu1 %v6980_v6 }
0x166c   :  { %4384 = vmatpush3.msk.msra.mxu1 %vm7058_vm12, %v4610_v5 }
0x166d   :  { %4385 = vmatprep.subr.mxu1 %v6980_v6 }
0x166e   :  { %4386 = vmatpush3.msk.msra.mxu1 %vm7059_vm15, %v4610_v5 }
0x166f   :  { %4387 = vmatprep.subr.mxu1 %v6980_v6 }
0x1670   :  { %4388 = vmatpush3.msk.msra.mxu1 %vm7060_vm14, %v4610_v5  ;;  %vm7062_vm14 = vcmask 785408  }
0x1671   :  { %4419 = vmatprep.subr.mxu1 %v6980_v6 }
0x1719   :  { %v3080_v8 = vpop.f32.mrf.mxu1 }
0x171a   :  { %v3084_v9 = vmul.f32 %v3080_v8, %v3080_v8 }
0x171b   :  { %v4337_v12 = vpop.f32.mrf.mxu1 }
0x171c   :  { %v3085_v34 = vsel %vm7061_vm13, %v3084_v9, 0.0  ;;  %vm7064_vm13 = vnez %v7046_v31 }
0x171d   :  { %3086 = vadd.xlane.f32.xlu0 %v3085_v34 }
0x17a6   :  { %v3087_v43 = vpop.xlane.xlu0 %3086 }
0x17a7   :  { %v3088_v30 = vmul.f32 0.16666667, %v3087_v43 }
0x17a9   :  { %v3089_v33 = vadd.f32 1.0, %v3088_v30  ;;  %v3092_v45 = vadd.f32 1e-08, %v3088_v30 }
0x17ab   :  { %4555 = vrcp.f32 %v3089_v33 }
0x17ac   :  { %4557 = vrsqrt.f32 %v3092_v45 }
0x17b8   :  { %v4556_v17 = vpop.eup %4555 }
0x17b9   :  { %v4558_v29 = vpop.eup %4557  ;;  %v3091_v27 = vmul.f32 %v4556_v17, %v3088_v30 }
0x17ba   :  { %v3094_v20 = vmul.f32 %v4558_v29, %v3080_v8 }
0x17bc   :  { %v3095_v47 = vmul.f32 %v3094_v20, %v3091_v27 }
0x17be   :  { %v3096_v14 = vmul.f32 %v3095_v47, %v6377_v24 }
0x17c0   :  { %4363 = vmatmul.mubr.msk.f32.vlgmr.msra.gmra.mxu0 %vm7062_vm14, %v3096_v14  ;;  %vm7063_vm14 = vnez %v7044_v58 }
0x17c1   :  { %4393 = vmatpush3.msk.msra.mxu0 %vm6438_vm2, %v4610_v5  ;;  %4416 = vmatprep.mubr.msk.f32.mxu0 %vm7020_vm6, %v6980_v6 }
0x17c2   :  { %4394 = vmatprep.subr.mxu0 %v6980_v6 }
0x17c3   :  { %4395 = vmatpush3.msk.msra.mxu0 %vm6448_vm1, %v4610_v5 }
0x17c4   :  { %4396 = vmatprep.subr.mxu0 %v6980_v6 }
0x17c5   :  { %4397 = vmatpush3.msk.msra.mxu0 %vm6458_vm5, %v4610_v5 }
0x17c6   :  { %4398 = vmatprep.subr.mxu0 %v6980_v6 }
0x17c7   :  { %4399 = vmatpush3.msk.msra.mxu0 %vm6468_vm4, %v4610_v5 }
0x17c8   :  { %4400 = vmatprep.subr.mxu0 %v6980_v6 }
0x17c9   :  { %4401 = vmatpush3.msk.msra.mxu0 %vm6478_vm3, %v4610_v5 }
0x17ca   :  { %4402 = vmatprep.subr.mxu0 %v6980_v6 }
0x17cb   :  { %4403 = vmatpush3.msk.msra.mxu0 %vm6488_vm8, %v4610_v5 }
0x17cc   :  { %4404 = vmatprep.subr.mxu0 %v6980_v6 }
0x17cd   :  { %4405 = vmatpush3.msk.msra.mxu0 %vm6498_vm10, %v4610_v5 }
0x17ce   :  { %4406 = vmatprep.subr.mxu0 %v6980_v6 }
0x17cf   :  { %4407 = vmatpush3.msk.msra.mxu0 %vm6508_vm11, %v4610_v5 }
0x17d0   :  { %4408 = vmatprep.subr.mxu0 %v6980_v6 }
0x17d1   :  { %4409 = vmatpush3.msk.msra.mxu0 %vm6518_vm7, %v4610_v5 }
0x17d2   :  { %4410 = vmatprep.subr.mxu0 %v6980_v6 }
0x17d3   :  { %4411 = vmatpush3.msk.msra.mxu0 %vm6528_vm0, %v4610_v5  ;;  %vm7065_vm0 = vcmask 781312  }
0x17d4   :  { %4412 = vmatprep.subr.mxu0 %v6980_v6 }
0x17d5   :  { %4413 = vmatpush3.msk.msra.mxu0 %vm7063_vm14, %v4610_v5  ;;  %vm7066_vm14 = vmmov %vm7065_vm0 }
0x17d6   :  { %4414 = vmatprep.subr.mxu0 %v6980_v6 }
0x17d7   :  { %4415 = vmatpush3.msk.msra.mxu0 %vm7064_vm13, %v4610_v5  ;;  %vm7067_vm13 = vcmask 785408  }
0x17d8   :  { %4446 = vmatprep.subr.mxu0 %v6980_v6 }
0x1880   :  { %v3166_v10 = vpop.f32.mrf.mxu0 }
0x1881   :  { %v6721_v49 = vadd.f32 %v3166_v10, %v6609_v50 }
0x1882   :  { %v4364_v21 = vpop.f32.mrf.mxu0 }
0x1883   :  { %v3171_v16 = vsel %vm7065_vm0, %v6721_v49, -inf  ;;  %vm7068_vm0 = vnez %v6988_v2 }
0x1884   :  { %3172 = vmax.xlane.f32.xlu0 %v3171_v16 }
0x190d   :  { %v3173_v26 = vpop.xlane.xlu0 %3172 }
0x190e   :  { %v3174_v59 = vsub.f32 %v6721_v49, %v3173_v26 }
0x1910   :  { %v3175_v51 = vmul.f32 1.442695, %v3174_v59 }
0x1912   :  { %4559 = vpow2.f32 %v3175_v51 }
0x191f   :  { %v4560_v19 = vpop.eup %4559 }
0x1920   :  { %v3177_v13 = vsel %vm7066_vm14, %v4560_v19, 0.0  ;;  %vm7069_vm14 = vnez %v6990_v48 }
0x1921   :  { %3178 = vadd.xlane.f32.xlu1 %v3177_v13 }
0x19aa   :  { %v3179_v37 = vpop.xlane.xlu1 %3178 }
0x19ab   :  { %v3180_v52 = vmul.f32 0.0625, %v3179_v37 }
0x19ad   :  { %4561 = vrcp.f32 %v3180_v52 }
0x19ba   :  { %v4562_v41 = vpop.eup %4561 }
0x19bb   :  { %v3182_v50 = vmul.f32 %v4562_v41, %v4560_v19 }
0x19bd   :  { %v3183_v40 = vmul.f32 %v3182_v50, %v6377_v24  ;;  %v3618_v50 = vld [vmem:[%s6926_s7 + $0x18] sm:$0xff] }
0x19bf   :  { %4390 = vmatmul.mubr.msk.f32.vlgmr.msra.gmra.mxu1 %vm7067_vm13, %v3183_v40  ;;  %vm7070_vm13 = vnez %v6992_v25  ;;  %v3617_v40 = vld [vmem:[%s6926_s7 + $0x10] sm:$0xff] }
0x19c0   :  { %4420 = vmatpush3.msk.msra.mxu1 %vm6202_vm9, %v4610_v5  ;;  %4443 = vmatprep.mubr.msk.f32.mxu1 %vm7020_vm6, %v6980_v6  ;;  %vm7071_vm9 = vnez %v6994_v18 }
0x19c1   :  { %4421 = vmatprep.subr.mxu1 %v6980_v6 }
0x19c2   :  { %4422 = vmatpush3.msk.msra.mxu1 %vm7068_vm0, %v4610_v5  ;;  %vm7072_vm0 = vnez %v6996_v7 }
0x19c3   :  { %4423 = vmatprep.subr.mxu1 %v6980_v6 }
0x19c4   :  { %4424 = vmatpush3.msk.msra.mxu1 %vm7069_vm14, %v4610_v5  ;;  %vm7073_vm14 = vnez %v6998_v38 }
0x19c5   :  { %4425 = vmatprep.subr.mxu1 %v6980_v6 }
0x19c6   :  { %4426 = vmatpush3.msk.msra.mxu1 %vm7070_vm13, %v4610_v5  ;;  %vm7074_vm13 = vnez %v7000_v42 }
0x19c7   :  { %4427 = vmatprep.subr.mxu1 %v6980_v6 }
0x19c8   :  { %4428 = vmatpush3.msk.msra.mxu1 %vm7071_vm9, %v4610_v5  ;;  %vm7075_vm9 = vnez %v7010_v23 }
0x19c9   :  { %4429 = vmatprep.subr.mxu1 %v6980_v6 }
0x19ca   :  { %4430 = vmatpush3.msk.msra.mxu1 %vm7072_vm0, %v4610_v5 }
0x19cb   :  { %4431 = vmatprep.subr.mxu1 %v6980_v6 }
0x19cc   :  { %4432 = vmatpush3.msk.msra.mxu1 %vm7073_vm14, %v4610_v5 }
0x19cd   :  { %4433 = vmatprep.subr.mxu1 %v6980_v6 }
0x19ce   :  { %4434 = vmatpush3.msk.msra.mxu1 %vm7074_vm13, %v4610_v5  ;;  %vm7076_vm13 = vnez %v7016_v39 }
0x19cf   :  { %4435 = vmatprep.subr.mxu1 %v6980_v6 }
0x19d0   :  { %4436 = vmatpush3.msk.msra.mxu1 %vm7075_vm9, %v4610_v5  ;;  %vm7077_vm9 = vcmask 781312  }
0x19d1   :  { %4437 = vmatprep.subr.mxu1 %v6980_v6 }
0x19d2   :  { %4438 = vmatpush3.msk.msra.mxu1 %vm7058_vm12, %v4610_v5 }
0x19d3   :  { %4439 = vmatprep.subr.mxu1 %v6980_v6 }
0x19d4   :  { %4440 = vmatpush3.msk.msra.mxu1 %vm7059_vm15, %v4610_v5 }
0x19d5   :  { %4441 = vmatprep.subr.mxu1 %v6980_v6 }
0x19d6   :  { %4442 = vmatpush3.msk.msra.mxu1 %vm7076_vm13, %v4610_v5  ;;  %vm7078_vm13 = vcmask 785408  }
0x19d7   :  { %4473 = vmatprep.subr.mxu1 %v6980_v6 }
0x1a7f   :  { %v3253_v61 = vpop.f32.mrf.mxu1 }
0x1a80   :  { %v3257_v54 = vmul.f32 %v3253_v61, %v3253_v61 }
0x1a81   :  { %v4391_v57 = vpop.f32.mrf.mxu1 }
0x1a82   :  { %v3258_v60 = vsel %vm7077_vm9, %v3257_v54, 0.0  ;;  %vm7079_vm9 = vnez %v7042_v15 }
0x1a83   :  { %3259 = vadd.xlane.f32.xlu0 %v3258_v60 }
0x1b0c   :  { %v3260_v62 = vpop.xlane.xlu0 %3259 }
0x1b0d   :  { %v3261_v3 = vmul.f32 0.16666667, %v3260_v62 }
0x1b0f   :  { %v3262_v28 = vadd.f32 1.0, %v3261_v3  ;;  %v3265_v22 = vadd.f32 1e-08, %v3261_v3 }
0x1b11   :  { %4563 = vrcp.f32 %v3262_v28 }
0x1b12   :  { %4565 = vrsqrt.f32 %v3265_v22 }
0x1b1e   :  { %v4564_v36 = vpop.eup %4563 }
0x1b1f   :  { %v4566_v8 = vpop.eup %4565  ;;  %v3264_v9 = vmul.f32 %v4564_v36, %v3261_v3 }
0x1b20   :  { %v3267_v12 = vmul.f32 %v4566_v8, %v3253_v61  ;;  %v3616_v8 = vld [vmem:[%s6926_s7 + $0x8] sm:$0xff] }
0x1b22   :  { %v3268_v34 = vmul.f32 %v3267_v12, %v3264_v9  ;;  %v3615_v9 = vld [vmem:[%s6926_s7] sm:$0xff] }
0x1b24   :  { %v3269_v43 = vmul.f32 %v3268_v34, %v6377_v24 }
0x1b26   :  { %4417 = vmatmul.mubr.msk.f32.vlgmr.msra.gmra.mxu0 %vm7078_vm13, %v3269_v43 }
0x1b27   :  { %4447 = vmatpush3.msk.msra.mxu0 %vm6438_vm2, %v4610_v5  ;;  %4470 = vmatprep.mubr.msk.f32.mxu0 %vm7020_vm6, %v6980_v6  ;;  %vm7087_vm2 = vnez %v6990_v48 }
0x1b28   :  { %4448 = vmatprep.subr.mxu0 %v6980_v6 }
0x1b29   :  { %4449 = vmatpush3.msk.msra.mxu0 %vm6448_vm1, %v4610_v5  ;;  %vm7088_vm1 = vnez %v6992_v25 }
0x1b2a   :  { %4450 = vmatprep.subr.mxu0 %v6980_v6 }
0x1b2b   :  { %4451 = vmatpush3.msk.msra.mxu0 %vm6458_vm5, %v4610_v5  ;;  %vm7086_vm5 = vnez %v6988_v2 }
0x1b2c   :  { %4452 = vmatprep.subr.mxu0 %v6980_v6 }
0x1b2d   :  { %4453 = vmatpush3.msk.msra.mxu0 %vm6468_vm4, %v4610_v5 }
0x1b2e   :  { %4454 = vmatprep.subr.mxu0 %v6980_v6 }
0x1b2f   :  { %4455 = vmatpush3.msk.msra.mxu0 %vm6478_vm3, %v4610_v5  ;;  %vm7082_vm3 = vcmask 781312  }
0x1b30   :  { %4456 = vmatprep.subr.mxu0 %v6980_v6  ;;  %vm7083_vm4 = vmmov %vm7082_vm3 }
0x1b31   :  { %4457 = vmatpush3.msk.msra.mxu0 %vm6488_vm8, %v4610_v5  ;;  %vm7081_vm8 = vnez %v7046_v31 }
0x1b32   :  { %4458 = vmatprep.subr.mxu0 %v6980_v6 }
0x1b33   :  { %4459 = vmatpush3.msk.msra.mxu0 %vm6498_vm10, %v4610_v5  ;;  %vm7080_vm10 = vnez %v7044_v58 }
0x1b34   :  { %4460 = vmatprep.subr.mxu0 %v6980_v6 }
0x1b35   :  { %4461 = vmatpush3.msk.msra.mxu0 %vm6508_vm11, %v4610_v5  ;;  %vm7085_vm11 = vnez %v6986_v63 }
0x1b36   :  { %4462 = vmatprep.subr.mxu0 %v6980_v6 }
0x1b37   :  { %4463 = vmatpush3.msk.msra.mxu0 %vm6518_vm7, %v4610_v5  ;;  %vm7084_vm7 = vmmov %vm7078_vm13  ;;  %vm7089_vm13 = vnez %v6994_v18 }
0x1b38   :  { %4464 = vmatprep.subr.mxu0 %v6980_v6 }
0x1b39   :  { %4465 = vmatpush3.msk.msra.mxu0 %vm7079_vm9, %v4610_v5  ;;  %vm7090_vm9 = vnez %v7000_v42 }
0x1b3a   :  { %4466 = vmatprep.subr.mxu0 %v6980_v6 }
0x1b3b   :  { %4467 = vmatpush3.msk.msra.mxu0 %vm7080_vm10, %v4610_v5  ;;  %vm7091_vm10 = vnez %v7010_v23 }
0x1b3c   :  { %4468 = vmatprep.subr.mxu0 %v6980_v6 }
0x1b3d   :  { %4469 = vmatpush3.msk.msra.mxu0 %vm7081_vm8, %v4610_v5  ;;  %vm7096_vm8 = vmmov %vm7082_vm3 }
0x1b3e   :  { %4500 = vmatprep.subr.mxu0 %v6980_v6 }
0x1be6   :  { %v3339_v44 = vpop.f32.mrf.mxu0 }
0x1be7   :  { %v3343_v53 = vadd.f32 %v3339_v44, %v6721_v49  ;;  %v3989_v44 = vld [vmem:[%s6926_s7 + $0x20] ss:$0 sm:$0xff] }
0x1be8   :  { %v4418_v32 = vpop.f32.mrf.mxu0 }
0x1be9   :  { %v3344_v35 = vsel %vm7082_vm3, %v3343_v53, -inf }
0x1bea   :  { %3345 = vmax.xlane.f32.xlu1 %v3344_v35 }
0x1c73   :  { %v3346_v56 = vpop.xlane.xlu1 %3345 }
0x1c74   :  { %v3347_v1 = vsub.f32 %v3343_v53, %v3346_v56 }
0x1c76   :  { %v3348_v4 = vmul.f32 1.442695, %v3347_v1 }
0x1c78   :  { %4567 = vpow2.f32 %v3348_v4 }
0x1c85   :  { %v4568_v55 = vpop.eup %4567 }
0x1c86   :  { %v3350_v0 = vsel %vm7083_vm4, %v4568_v55, 0.0 }
0x1c87   :  { %3351 = vadd.xlane.f32.xlu0 %v3350_v0 }
0x1d10   :  { %v3352_v15 = vpop.xlane.xlu0 %3351 }
0x1d11   :  { %v3353_v58 = vmul.f32 0.0625, %v3352_v15 }
0x1d13   :  { %4569 = vrcp.f32 %v3353_v58 }
0x1d20   :  { %v4570_v31 = vpop.eup %4569 }
0x1d21   :  { %v3355_v30 = vmul.f32 %v4570_v31, %v4568_v55 }
0x1d23   :  { %v3356_v33 = vmul.f32 %v3355_v30, %v6377_v24 }
0x1d25   :  { %4444 = vmatmul.mubr.msk.f32.vlgmr.msra.gmra.mxu1 %vm7084_vm7, %v3356_v33 }
0x1d26   :  { %4474 = vmatpush3.msk.msra.mxu1 %vm7085_vm11, %v4610_v5  ;;  %4497 = vmatprep.mubr.msk.f32.mxu1 %vm7020_vm6, %v6980_v6  ;;  %vm3772_vm11 = vcmask 9216  }
0x1d27   :  { %4475 = vmatprep.subr.mxu1 %v6980_v6 }
0x1d28   :  { %4476 = vmatpush3.msk.msra.mxu1 %vm7086_vm5, %v4610_v5 }
0x1d29   :  { %4477 = vmatprep.subr.mxu1 %v6980_v6 }
0x1d2a   :  { %4478 = vmatpush3.msk.msra.mxu1 %vm7087_vm2, %v4610_v5 }
0x1d2b   :  { %4479 = vmatprep.subr.mxu1 %v6980_v6 }
0x1d2c   :  { %4480 = vmatpush3.msk.msra.mxu1 %vm7088_vm1, %v4610_v5 }
0x1d2d   :  { %4481 = vmatprep.subr.mxu1 %v6980_v6 }
0x1d2e   :  { %4482 = vmatpush3.msk.msra.mxu1 %vm7089_vm13, %v4610_v5 }
0x1d2f   :  { %4483 = vmatprep.subr.mxu1 %v6980_v6 }
0x1d30   :  { %4484 = vmatpush3.msk.msra.mxu1 %vm7072_vm0, %v4610_v5  ;;  %vm7092_vm0 = vnez %v7016_v39 }
0x1d31   :  { %4485 = vmatprep.subr.mxu1 %v6980_v6 }
0x1d32   :  { %4486 = vmatpush3.msk.msra.mxu1 %vm7073_vm14, %v4610_v5  ;;  %vm7093_vm14 = vmmov %vm7082_vm3 }
0x1d33   :  { %4487 = vmatprep.subr.mxu1 %v6980_v6 }
0x1d34   :  { %4488 = vmatpush3.msk.msra.mxu1 %vm7090_vm9, %v4610_v5 }
0x1d35   :  { %4489 = vmatprep.subr.mxu1 %v6980_v6 }
0x1d36   :  { %4490 = vmatpush3.msk.msra.mxu1 %vm7091_vm10, %v4610_v5 }
0x1d37   :  { %4491 = vmatprep.subr.mxu1 %v6980_v6 }
0x1d38   :  { %4492 = vmatpush3.msk.msra.mxu1 %vm7058_vm12, %v4610_v5  ;;  %vm7094_vm12 = vmmov %vm7084_vm7 }
0x1d39   :  { %4493 = vmatprep.subr.mxu1 %v6980_v6 }
0x1d3a   :  { %4494 = vmatpush3.msk.msra.mxu1 %vm7059_vm15, %v4610_v5  ;;  %vm7095_vm15 = vmmov %vm7082_vm3 }
0x1d3b   :  { %4495 = vmatprep.subr.mxu1 %v6980_v6  ;;  %vm7097_vm3 = vmmov %vm7084_vm7  ;;  %vm3621_vm7 = vcmask 130048  }
0x1d3c   :  { %4496 = vmatpush3.msk.msra.mxu1 %vm7092_vm0, %v4610_v5 }
0x1de5   :  { %v3426_v63 = vpop.f32.mrf.mxu1 }
0x1de6   :  { %v3430_v2 = vmul.f32 %v3426_v63, %v3426_v63 }
0x1de7   :  { %v4445_v48 = vpop.f32.mrf.mxu1 }
0x1de8   :  { %v3431_v25 = vsel %vm7093_vm14, %v3430_v2, 0.0 }
0x1de9   :  { %3432 = vadd.xlane.f32.xlu1 %v3431_v25 }
0x1e72   :  { %v3433_v18 = vpop.xlane.xlu1 %3432 }
0x1e73   :  { %v3434_v7 = vmul.f32 0.16666667, %v3433_v18 }
0x1e75   :  { %v3435_v38 = vadd.f32 1.0, %v3434_v7  ;;  %v3438_v42 = vadd.f32 1e-08, %v3434_v7 }
0x1e77   :  { %4571 = vrcp.f32 %v3435_v38 }
0x1e78   :  { %4573 = vrsqrt.f32 %v3438_v42 }
0x1e84   :  { %v4572_v23 = vpop.eup %4571 }
0x1e85   :  { %v4574_v46 = vpop.eup %4573  ;;  %v3437_v11 = vmul.f32 %v4572_v23, %v3434_v7 }
0x1e86   :  { %v3440_v45 = vmul.f32 %v4574_v46, %v3426_v63 }
0x1e88   :  { %v3441_v17 = vmul.f32 %v3440_v45, %v3437_v11 }
0x1e8a   :  { %v3442_v39 = vmul.f32 %v3441_v17, %v6377_v24 }
0x1e8c   :  { %4471 = vmatmul.mubr.msk.f32.vlgmr.msra.gmra.mxu0 %vm7094_vm12, %v3442_v39 }
0x1e8d   :  { %4504 = vmatprep.mubr.msk.f32.mxu0 %vm7020_vm6, %v6980_v6  ;;  %4501 = vmatpush3.msra.mxu0 %v3618_v50 }
0x1e8e   :  { %4502 = vmatprep.subr.mxu0 %v6980_v6 }
0x1e8f   :  { %4503 = vmatpush3.msra.mxu0 %v3617_v40 }
0x1e90   :  { %4507 = vmatprep.subr.mxu0 %v6980_v6 }
0x1f4c   :  { %v3512_v5 = vpop.f32.mrf.mxu0 }
0x1f4d   :  { %v3516_v29 = vadd.f32 %v3512_v5, %v3343_v53 }
0x1f4e   :  { %v4472_v27 = vpop.f32.mrf.mxu0 }
0x1f4f   :  { %v3517_v20 = vsel %vm7095_vm15, %v3516_v29, -inf }
0x1f50   :  { %3518 = vmax.xlane.f32.xlu0 %v3517_v20 }
0x1fd9   :  { %v3519_v47 = vpop.xlane.xlu0 %3518 }
0x1fda   :  { %v3520_v14 = vsub.f32 %v3516_v29, %v3519_v47 }
0x1fdc   :  { %v3521_v10 = vmul.f32 1.442695, %v3520_v14 }
0x1fde   :  { %4575 = vpow2.f32 %v3521_v10 }
0x1feb   :  { %v4576_v49 = vpop.eup %4575 }
0x1fec   :  { %v3523_v21 = vsel %vm7096_vm8, %v4576_v49, 0.0 }
0x1fed   :  { %3524 = vadd.xlane.f32.xlu1 %v3523_v21 }
0x2076   :  { %v3525_v16 = vpop.xlane.xlu1 %3524 }
0x2077   :  { %v3526_v26 = vmul.f32 0.0625, %v3525_v16 }
0x2079   :  { %4577 = vrcp.f32 %v3526_v26 }
0x2086   :  { %v4578_v59 = vpop.eup %4577 }
0x2087   :  { %v3528_v51 = vmul.f32 %v4578_v59, %v4576_v49 }
0x2089   :  { %v3529_v19 = vmul.f32 %v3528_v51, %v6377_v24 }
0x208b   :  { %4498 = vmatmul.mubr.msk.f32.vlgmr.msra.gmra.mxu1 %vm7097_vm3, %v3529_v19 }
0x214b   :  { %v3599_v13 = vpop.f32.mrf.mxu1 }
0x214c   :  { %v3603_v37 = vmul.f32 %v3599_v13, %v3599_v13 }
0x214d   :  { %v4499_v52 = vpop.f32.mrf.mxu1 }
0x214e   :  { %v3604_v41 = vsel %vm7083_vm4, %v3603_v37, 0.0 }
0x214f   :  { %3605 = vadd.xlane.f32.xlu0 %v3604_v41 }
0x21d8   :  { %v3606_v24 = vpop.xlane.xlu0 %3605 }
0x21d9   :  { %v3607_v61 = vmul.f32 0.16666667, %v3606_v24 }
0x21db   :  { %v3608_v54 = vadd.f32 1.0, %v3607_v61  ;;  %v3611_v57 = vadd.f32 1e-08, %v3607_v61 }
0x21dd   :  { %4579 = vrcp.f32 %v3608_v54 }
0x21de   :  { %4581 = vrsqrt.f32 %v3611_v57 }
0x21ea   :  { %v4580_v60 = vpop.eup %4579 }
0x21eb   :  { %v4582_v62 = vpop.eup %4581  ;;  %v3610_v3 = vmul.f32 %v4580_v60, %v3607_v61 }
0x21ec   :  { %v3613_v28 = vmul.f32 %v4582_v62, %v3599_v13 }
0x21ee   :  { %v3614_v22 = vmul.f32 %v3613_v28, %v3610_v3 }
0x21f0   :  { %v3620_v36 = vrot.slane %v3614_v22, 2 }
0x21f2   :  { %4505 = vmatmul.mubr.msk.f32.vlgmr.msra.gmra.mxu0 %vm3621_vm7, %v3620_v36 }
0x21f3   :  { %4508 = vmatpush3.msra.mxu0 %v3616_v8  ;;  %4511 = vmatprep.mubr.msk.f32.mxu0 %vm7020_vm6, %v6980_v6 }
0x21f4   :  { %4509 = vmatprep.subr.mxu0 %v6980_v6 }
0x21f5   :  { %4510 = vmatpush3.msra.mxu0 %v3615_v9 }
0x21f6   :  { %4512 = vmatmul.mubr.msk.f32.vlgmr.msra.gmra.mxu0 %vm3621_vm7, %v3614_v22 }
0x22b2   :  { %v3690_v12 = vpop.f32.mrf.mxu0 }
0x22b4   :  { %v4506_v34 = vpop.f32.mrf.mxu0 }
0x22b6   :  { %v3762_v43 = vpop.f32.mrf.mxu0 }
0x22b7   :  { %v3763_v53 = vadd.f32 %v3762_v43, %v3690_v12 }
0x22b8   :  { %v4513_v32 = vpop.f32.mrf.mxu0 }
0x22b9   :  { %v3771_v35 = vadd.f32 %v3989_v44, %v3763_v53 }
0x22bb   :  { %3773 = vst.msk [vmem:[#allocation2] sm:$0x3] %vm3772_vm11, %v3771_v35 }
0x22bc   :  { %4594 = shalt.err (!%p4591_p4)
}
0x22bd   :  { %3783 = dma.vmem_to_hbm [thread:$0]  %s3781_s2, 32, %s6927_s8, [#allocation3]  }
0x22be   :  { %4603 = dma.done.wait [#allocation3], 32  }
0x22bf   :  { %4604 = vsyncadd [#allocation3], 4294967264 }
0x22c0   :  { %3787 = vsyncpa [#allocation3], 1 }

</bundles_post_ra>
